<compile_context>
chip_gen: v7x
topology: tpu7x:2x2x1
jax: 0.10.0
libtpu: 0.0.40
codegen_flags: <defaults>
</compile_context>

<pallas_src>
import functools
import math

import jax
import jax.numpy as jnp
from jax import lax
from jax.experimental import pallas as pl
from jax.experimental.pallas import tpu as pltpu


def _round_up(x, m):
    return ((x + m - 1) // m) * m


def _pick_tile(dim, target, aligns):
    """Largest tile <= target that divides dim and is align-friendly (or the full dim)."""
    if isinstance(aligns, int):
        aligns = (aligns,)
    if dim <= target:
        return dim
    for a in aligns:
        t = (target // a) * a
        while t >= a:
            if dim % t == 0:
                return t
            t -= a
    return dim


@functools.lru_cache(maxsize=None)
def _vmem_limit_bytes():
    # Generation-aware scoped-VMEM budget: ~75% of physical VMEM, capped at 100 MiB.
    # -> ~48 MiB on v7x (64 MiB/TC), ~96 MiB on v5e/v6e (128 MiB).
    cap = 64 * 1024 * 1024
    try:
        cap = int(pltpu.get_tpu_info().vmem_capacity_bytes)
    except Exception:
        pass
    return int(min(cap * 3 // 4, 100 * 1024 * 1024))


def _params(dims):
    return pltpu.CompilerParams(dimension_semantics=dims,
                                vmem_limit_bytes=_vmem_limit_bytes())


# --------------------------- audio-embedding mix ----------------------------

def _audio_mix_kernel(hid_ref, aud_ref, w_ref, o_ref, acc_ref):
    # out = hidden + sum_h token_weights[h] * audio_embedding[:, h]
    h = pl.program_id(2)

    @pl.when(h == 0)
    def _():
        acc_ref[...] = hid_ref[0].astype(jnp.float32)

    acc_ref[...] += aud_ref[0, 0].astype(jnp.float32) * w_ref[0]

    @pl.when(h == pl.num_programs(2) - 1)
    def _():
        o_ref[0] = acc_ref[...].astype(o_ref.dtype)


def pallas_audio_mix(hidden, audio_emb, token_weights):
    # hidden: (B, S, D) bf16; audio_emb: (B, Ho, S, D) bf16; token_weights: (Ho, 1, 1) f32
    B, S, D = hidden.shape
    Ho = audio_emb.shape[1]
    ts = _pick_tile(S, 512, 8)
    return pl.pallas_call(
        _audio_mix_kernel,
        out_shape=jax.ShapeDtypeStruct((B, S, D), jnp.bfloat16),
        grid=(B, S // ts, Ho),
        in_specs=[
            pl.BlockSpec((1, ts, D), lambda b, s, h: (b, s, 0)),
            pl.BlockSpec((1, 1, ts, D), lambda b, s, h: (b, h, s, 0)),
            pl.BlockSpec((1, 1, 1), lambda b, s, h: (h, 0, 0)),
        ],
        out_specs=pl.BlockSpec((1, ts, D), lambda b, s, h: (b, s, 0)),
        scratch_shapes=[pltpu.VMEM((ts, D), jnp.float32)],
        compiler_params=_params(("parallel", "parallel", "arbitrary")),
    )(hidden, audio_emb, token_weights)


# ------------------------------ RMSNorm kernel -------------------------------

def _rmsnorm_kernel(x_ref, w_ref, o_ref, *, eps):
    x = x_ref[...].astype(jnp.float32)
    var = jnp.mean(x * x, axis=-1, keepdims=True)
    o_ref[...] = (x * lax.rsqrt(var + eps)
                  * w_ref[...].astype(jnp.float32)).astype(o_ref.dtype)


def pallas_rmsnorm(x2, w, *, eps):
    M, D = x2.shape
    tm = _pick_tile(M, 512, 8)
    return pl.pallas_call(
        functools.partial(_rmsnorm_kernel, eps=eps),
        out_shape=jax.ShapeDtypeStruct((M, D), jnp.bfloat16),
        grid=(M // tm,),
        in_specs=[pl.BlockSpec((tm, D), lambda m: (m, 0)),
                  pl.BlockSpec((1, D), lambda m: (0, 0))],
        out_specs=pl.BlockSpec((tm, D), lambda m: (m, 0)),
        compiler_params=_params(("parallel",)),
    )(x2, w)


# ------------------------- generic tiled matmul kernels -----------------------

def _mm_kernel(x_ref, w_ref, o_ref, acc_ref):
    k = pl.program_id(2)

    @pl.when(k == 0)
    def _():
        acc_ref[...] = jnp.zeros_like(acc_ref)

    acc_ref[...] += jnp.dot(x_ref[...], w_ref[...], preferred_element_type=jnp.float32)

    @pl.when(k == pl.num_programs(2) - 1)
    def _():
        o_ref[...] = acc_ref[...].astype(o_ref.dtype)


def _mm_res_kernel(x_ref, w_ref, r_ref, o_ref, acc_ref):
    k = pl.program_id(2)

    @pl.when(k == 0)
    def _():
        acc_ref[...] = jnp.zeros_like(acc_ref)

    acc_ref[...] += jnp.dot(x_ref[...], w_ref[...], preferred_element_type=jnp.float32)

    @pl.when(k == pl.num_programs(2) - 1)
    def _():
        o_ref[...] = (acc_ref[...] + r_ref[...].astype(jnp.float32)).astype(o_ref.dtype)


def _mm_bias_kernel(x_ref, w_ref, b_ref, o_ref, acc_ref):
    k = pl.program_id(2)

    @pl.when(k == 0)
    def _():
        acc_ref[...] = jnp.zeros_like(acc_ref)

    acc_ref[...] += jnp.dot(x_ref[...], w_ref[...], preferred_element_type=jnp.float32)

    @pl.when(k == pl.num_programs(2) - 1)
    def _():
        o_ref[...] = (acc_ref[...] + b_ref[...].astype(jnp.float32)).astype(o_ref.dtype)


def pallas_matmul(x, w, *, residual=None, bias=None, out_dtype=jnp.bfloat16,
                  tm_target=256, tn_target=512, tk_target=512):
    """out = x @ w (+ residual | + bias), bf16 MXU matmul with f32 VMEM accumulator.

    Grid (M tiles, N tiles [256-aligned for v6e/v7x MXUs], K reduction tiles);
    weights are streamed in (tk, tn) slices so nothing large stays resident.
    """
    M, K = x.shape
    _, N = w.shape
    tm = _pick_tile(M, tm_target, 8)
    tn = _pick_tile(N, tn_target, (256, 128))
    tk = _pick_tile(K, tk_target, (256, 128))

    in_specs = [pl.BlockSpec((tm, tk), lambda m, n, k: (m, k)),
                pl.BlockSpec((tk, tn), lambda m, n, k: (k, n))]
    operands = [x, w]
    if residual is not None:
        kernel = _mm_res_kernel
        in_specs.append(pl.BlockSpec((tm, tn), lambda m, n, k: (m, n)))
        operands.append(residual)
    elif bias is not None:
        kernel = _mm_bias_kernel
        in_specs.append(pl.BlockSpec((1, tn), lambda m, n, k: (0, n)))
        operands.append(bias)
    else:
        kernel = _mm_kernel

    out_bytes = M * N * jnp.dtype(out_dtype).itemsize
    cost = pl.CostEstimate(
        flops=int(2 * M * N * K), transcendentals=0,
        bytes_accessed=int(M * K * x.dtype.itemsize + K * N * w.dtype.itemsize + out_bytes))

    return pl.pallas_call(
        kernel,
        out_shape=jax.ShapeDtypeStruct((M, N), out_dtype),
        grid=(M // tm, N // tn, K // tk),
        in_specs=in_specs,
        out_specs=pl.BlockSpec((tm, tn), lambda m, n, k: (m, n)),
        scratch_shapes=[pltpu.VMEM((tm, tn), jnp.float32)],
        compiler_params=_params(("parallel", "parallel", "arbitrary")),
        cost_estimate=cost,
    )(*operands)


# ------------------- flash attention (RoPE + causal online softmax) -----------

def _flash_kernel(q_ref, k_ref, v_ref, cos_q_ref, sin_q_ref, cos_k_ref, sin_k_ref,
                  o_ref, m_sc, l_sc, acc_sc, *, tq, tkv, scale, hd):
    qi = pl.program_id(2)
    ki = pl.program_id(3)

    @pl.when(ki == 0)
    def _():
        m_sc[...] = jnp.full(m_sc.shape, -jnp.inf, m_sc.dtype)
        l_sc[...] = jnp.zeros(l_sc.shape, l_sc.dtype)
        acc_sc[...] = jnp.zeros(acc_sc.shape, acc_sc.dtype)

    # Causal: skip kv blocks strictly above the diagonal (they can't contribute).
    @pl.when(ki * tkv <= qi * tq + tq - 1)
    def _():
        # rotate_half via XLU roll (shift == hd/2, so roll direction is irrelevant)
        sign = jnp.where(
            lax.broadcasted_iota(jnp.int32, (1, hd), 1) < (hd // 2), -1.0, 1.0)

        def rope(t, cos, sin):
            return t * cos + pltpu.roll(t, shift=hd // 2, axis=1) * sign * sin

        q = rope(q_ref[...].astype(jnp.float32), cos_q_ref[...], sin_q_ref[...]) * scale
        k = rope(k_ref[...].astype(jnp.float32), cos_k_ref[...], sin_k_ref[...])

        s = lax.dot_general(q.astype(jnp.bfloat16), k.astype(jnp.bfloat16),
                            dimension_numbers=(((1,), (1,)), ((), ())),
                            preferred_element_type=jnp.float32)          # (tq, tkv)
        row = qi * tq + lax.broadcasted_iota(jnp.int32, (tq, tkv), 0)
        col = ki * tkv + lax.broadcasted_iota(jnp.int32, (tq, tkv), 1)
        s = jnp.where(col <= row, s, -1e30)

        m_new = jnp.maximum(m_sc[...], s.max(axis=-1, keepdims=True))
        alpha = jnp.exp(m_sc[...] - m_new)
        p = jnp.exp(s - m_new)
        l_sc[...] = alpha * l_sc[...] + p.sum(axis=-1, keepdims=True)
        acc_sc[...] = alpha * acc_sc[...] + jnp.dot(
            p.astype(jnp.bfloat16), v_ref[...], preferred_element_type=jnp.float32)
        m_sc[...] = m_new

    @pl.when(ki == pl.num_programs(3) - 1)
    def _():
        o_ref[...] = (acc_sc[...] *
                      pl.reciprocal(l_sc[...], approx=True)).astype(o_ref.dtype)


def pallas_flash_attention(qkv, cos, sin, *, batch, seq, n_heads):
    """Causal MHA with RoPE reading the fused (M, 3D) QKV activation directly.

    BlockSpecs pick per-head q/k/v column slices out of (M, 3D) so no head-split
    transpose / merge is materialized in HBM.  Requires head_dim % 128 == 0.
    """
    M, threeD = qkv.shape
    D = threeD // 3
    hd = D // n_heads
    assert hd % 128 == 0, "head_dim must be a multiple of 128 for lane-aligned blocks"
    # TODO(synk): add a fallback path (explicit head-split layout) for head_dim == 64.
    scale = 1.0 / math.sqrt(hd)

    tq = _pick_tile(seq, 256, 8)
    tkv = _pick_tile(seq, 256, 8)
    nq, nkv = seq // tq, seq // tkv

    cost = pl.CostEstimate(
        flops=int(4 * batch * n_heads * seq * seq * hd),
        transcendentals=int(batch * n_heads * seq * seq),
        bytes_accessed=int(4 * M * D * 2 + 4 * seq * hd * 4))

    return pl.pallas_call(
        functools.partial(_flash_kernel, tq=tq, tkv=tkv, scale=scale, hd=hd),
        out_shape=jax.ShapeDtypeStruct((M, D), jnp.bfloat16),
        grid=(batch, n_heads, nq, nkv),
        in_specs=[
            # q / k / v column slices of the same fused QKV activation
            pl.BlockSpec((tq, hd), lambda b, h, qi, ki: (b * nq + qi, h)),
            pl.BlockSpec((tkv, hd), lambda b, h, qi, ki: (b * nkv + ki, n_heads + h)),
            pl.BlockSpec((tkv, hd), lambda b, h, qi, ki: (b * nkv + ki, 2 * n_heads + h)),
            pl.BlockSpec((tq, hd), lambda b, h, qi, ki: (qi, 0)),    # cos for q rows
            pl.BlockSpec((tq, hd), lambda b, h, qi, ki: (qi, 0)),    # sin for q rows
            pl.BlockSpec((tkv, hd), lambda b, h, qi, ki: (ki, 0)),   # cos for k rows
            pl.BlockSpec((tkv, hd), lambda b, h, qi, ki: (ki, 0)),   # sin for k rows
        ],
        out_specs=pl.BlockSpec((tq, hd), lambda b, h, qi, ki: (b * nq + qi, h)),
        scratch_shapes=[pltpu.VMEM((tq, 1), jnp.float32),
                        pltpu.VMEM((tq, 1), jnp.float32),
                        pltpu.VMEM((tq, hd), jnp.float32)],
        compiler_params=_params(("parallel", "parallel", "parallel", "arbitrary")),
        cost_estimate=cost,
    )(qkv, qkv, qkv, cos, sin, cos, sin)


# ----------------------- fused MLP block (one per layer) --------------------

def _mlp_block_kernel(x_ref, ln_ref, wg_ref, wu_ref, wd_ref, o_ref, acc_ref, xn_ref,
                      *, eps):
    it = pl.program_id(1)                                # intermediate-dim tile index

    @pl.when(it == 0)
    def _():
        x = x_ref[...].astype(jnp.float32)
        var = jnp.mean(x * x, axis=-1, keepdims=True)
        xn_ref[...] = (x * lax.rsqrt(var + eps)
                       * ln_ref[...].astype(jnp.float32)).astype(jnp.bfloat16)
        acc_ref[...] = x                                 # residual lives in the accumulator

    xn = xn_ref[...]
    g = jnp.dot(xn, wg_ref[...], preferred_element_type=jnp.float32)
    u = jnp.dot(xn, wu_ref[...], preferred_element_type=jnp.float32)
    hmid = (g * jax.nn.sigmoid(g)) * u                   # SiLU(gate) * up, f32
    acc_ref[...] += jnp.dot(hmid.astype(jnp.bfloat16), wd_ref[...],
                            preferred_element_type=jnp.float32)

    @pl.when(it == pl.num_programs(1) - 1)
    def _():
        o_ref[...] = acc_ref[...].astype(o_ref.dtype)


def pallas_mlp_block(x2, ln_w, wg, wu, wd, *, eps):
    M, D = x2.shape
    I = wg.shape[1]
    tm = _pick_tile(M, 512, 8)
    ti = _pick_tile(I, 512, (256, 128))
    cost = pl.CostEstimate(
        flops=int(6 * M * D * I), transcendentals=int(M * I),
        bytes_accessed=int(2 * M * D * 2 + 3 * D * I * 2 + D * 4))
    return pl.pallas_call(
        functools.partial(_mlp_block_kernel, eps=eps),
        out_shape=jax.ShapeDtypeStruct((M, D), jnp.bfloat16),
        grid=(M // tm, I // ti),
        in_specs=[
            pl.BlockSpec((tm, D), lambda m, i: (m, 0)),
            pl.BlockSpec((1, D), lambda m, i: (0, 0)),
            pl.BlockSpec((D, ti), lambda m, i: (0, i)),
            pl.BlockSpec((D, ti), lambda m, i: (0, i)),
            pl.BlockSpec((ti, D), lambda m, i: (i, 0)),
        ],
        out_specs=pl.BlockSpec((tm, D), lambda m, i: (m, 0)),
        scratch_shapes=[pltpu.VMEM((tm, D), jnp.float32),
                        pltpu.VMEM((tm, D), jnp.bfloat16)],
        compiler_params=_params(("parallel", "arbitrary")),
        cost_estimate=cost,
    )(x2, ln_w, wg, wu, wd)


# ------------------------------ RoPE tables (glue) ---------------------------

def rope_cos_sin(seq_len, head_dim, theta=10000.0):
    inv_freq = 1.0 / (theta ** (jnp.arange(0, head_dim, 2, dtype=jnp.float32) / head_dim))
    pos = jnp.arange(seq_len, dtype=jnp.float32)
    freqs = jnp.outer(pos, inv_freq)                      # (S, hd/2)
    emb = jnp.concatenate([freqs, freqs], axis=-1)        # (S, hd)
    return jnp.cos(emb), jnp.sin(emb)


# ------------------------------ Model wrapper --------------------------------

def speech_unit_forward(params, input_ids, audio_ids, cfg):
    B, S = input_ids.shape
    D = cfg["embed_dim"]
    H = cfg["n_attn_heads"]
    hd = D // H
    Ho = cfg["num_out_heads"]
    O = cfg["output_dim"]
    M = B * S
    eps = 1e-6

    # Embedding gathers stay in XLA.
    # TODO(synk): implement the gathers as a manual-DMA Pallas kernel if they dominate.
    hidden = jnp.take(params["embed_tokens"], input_ids, axis=0)     # (B, S, D) bf16
    audio_emb = jnp.take(params["audio_embed"], audio_ids, axis=0)   # (B, Ho, S, D) bf16

    x2 = pallas_audio_mix(hidden, audio_emb, params["token_weights"]).reshape(M, D)

    cos, sin = rope_cos_sin(S, hd, theta=cfg["rope_theta"])

    # TODO(synk): attention_mask / extended_attention_mask path not implemented
    # (the reference call uses attention_mask=None; only the causal mask is applied).
    # TODO(synk): GQA (num_key_value_heads < num_attention_heads) not implemented; MHA only.
    for layer in params["layers"]:
        xn = pallas_rmsnorm(x2, layer["input_ln"], eps=eps)                   # pre-norm
        qkv = pallas_matmul(xn, layer["wqkv"])                                # (M, 3D) bf16
        attn = pallas_flash_attention(qkv, cos, sin, batch=B, seq=S, n_heads=H)
        x2 = pallas_matmul(attn, layer["wo"], residual=x2)                    # + residual
        x2 = pallas_mlp_block(x2, layer["post_ln"],
                              layer["wg"], layer["wu"], layer["wd"], eps=eps)

    xn = pallas_rmsnorm(x2, params["final_norm"], eps=eps)                    # final norm, once
    logits_flat = pallas_matmul(xn, params["head_w"], bias=params["head_b"],
                                out_dtype=jnp.float32)                        # (M, Ho*Opad)
    Opad = params["head_w"].shape[1] // Ho
    logits = logits_flat.reshape(B, S, Ho, Opad).transpose(0, 2, 1, 3)[..., :O]
    return logits                                                             # (B, Ho, S, O)


def init_params(key, cfg):
    D = cfg["embed_dim"]
    I = cfg["intermediate"]
    V = cfg["vocab_size"]
    Ho = cfg["num_out_heads"]
    O = cfg["output_dim"]
    Opad = _round_up(O, 256)     # 256-wide N tiles keep v6e/v7x MXUs full; padding sliced off

    keys = jax.random.split(key, 6 + cfg["n_layers"])

    def nrm(k, shape, scale=0.02):
        return scale * jax.random.normal(k, shape, dtype=jnp.float32)

    # Output heads collapsed into one (D, Ho*Opad) matrix (+ (1, Ho*Opad) bias).
    head_w = jnp.pad(nrm(keys[2], (Ho, D, O)), ((0, 0), (0, 0), (0, Opad - O)))
    head_w = jnp.transpose(head_w, (1, 0, 2)).reshape(D, Ho * Opad).astype(jnp.bfloat16)
    head_b = jnp.pad(nrm(keys[3], (Ho, 1, O)), ((0, 0), (0, 0), (0, Opad - O)))
    head_b = head_b.reshape(1, Ho * Opad)

    params = {
        "embed_tokens": nrm(keys[0], (V, D)).astype(jnp.bfloat16),
        "audio_embed": nrm(keys[1], (Ho * O, D)).astype(jnp.bfloat16),  # codebook = O * Ho
        "token_weights": jnp.ones((Ho, 1, 1), jnp.float32),
        "final_norm": jnp.ones((1, D), jnp.float32),
        "head_w": head_w,
        "head_b": head_b,
        "layers": [],
    }
    for li in range(cfg["n_layers"]):
        lk = jax.random.split(keys[6 + li], 7)
        wq = nrm(lk[0], (D, D))
        wk = nrm(lk[1], (D, D))
        wv = nrm(lk[2], (D, D))
        params["layers"].append({
            "input_ln": jnp.ones((1, D), jnp.float32),
            "post_ln": jnp.ones((1, D), jnp.float32),
            "wqkv": jnp.concatenate([wq, wk, wv], axis=1).astype(jnp.bfloat16),
            "wo": nrm(lk[3], (D, D)).astype(jnp.bfloat16),
            "wg": nrm(lk[4], (D, I)).astype(jnp.bfloat16),
            "wu": nrm(lk[5], (D, I)).astype(jnp.bfloat16),
            "wd": nrm(lk[6], (I, D)).astype(jnp.bfloat16),
        })
    return params


if __name__ == "__main__":
    # Small synthetic config consistent with the module's structure:
    # llama_layers=3, num output heads=8; hidden/output dims shrunk, head_dim kept at 128
    # (lane-aligned, same head_dim as real Llama-3.2).
    cfg = dict(
        vocab_size=128,
        embed_dim=256,
        n_attn_heads=2,        # head_dim = 128
        intermediate=512,
        n_layers=3,
        output_dim=64,         # stands in for 2050 (padded to 256 lanes internally)
        num_out_heads=8,
        rope_theta=10000.0,
    )
    key = jax.random.PRNGKey(0)
    pk, ik, ak = jax.random.split(key, 3)
    params = init_params(pk, cfg)

    B, S = 2, 8
    input_ids = jax.random.randint(ik, (B, S), 0, cfg["vocab_size"])
    audio_ids = jax.random.randint(
        ak, (B, cfg["num_out_heads"], S), 0, cfg["output_dim"] * cfg["num_out_heads"]
    )

    fwd = jax.jit(lambda p, x, a: speech_unit_forward(p, x, a, cfg))
    logits = fwd(params, input_ids, audio_ids)
    jax.block_until_ready(logits)
    assert logits.shape == (B, cfg["num_out_heads"], S, cfg["output_dim"]), logits.shape
    print("KERNEL_OK")
</pallas_src>

<mosaic_0001>
module attributes {stable_mosaic.version = 11 : i64} {
  func.func @_rmsnorm_kernel(%arg0: i32, %arg1: memref<16x256xbf16, #tpu.memory_space<vmem>>, %arg2: memref<1x256xf32, #tpu.memory_space<vmem>>, %arg3: memref<16x256xbf16, #tpu.memory_space<vmem>>) attributes {dimension_semantics = [#tpu.dimension_semantics<parallel>], iteration_bounds = array<i64: 1>, scalar_prefetch = 0 : i64, scratch_operands = 0 : i64, tpu.core_type = #tpu.core_type<tc>, window_params = [{transform_indices = @transform_0, window_bounds = array<i64: 16, 256>}, {pipeline_mode = #tpu.pipeline_mode<synchronous>, transform_indices = @transform_1, window_bounds = array<i64: 1, 256>}, {transform_indices = @transform_2, window_bounds = array<i64: 16, 256>}]} {
    %c0 = arith.constant 0 : index
    %c0_0 = arith.constant 0 : index
    %0 = vector.load %arg1[%c0, %c0_0] : memref<16x256xbf16, #tpu.memory_space<vmem>>, vector<16x256xbf16>
    %1 = arith.extf %0 : vector<16x256xbf16> to vector<16x256xf32>
    %2 = arith.mulf %1, %1 : vector<16x256xf32>
    %cst = arith.constant dense<0.000000e+00> : vector<16xf32>
    %3 = vector.multi_reduction <add>, %2, %cst [1] : vector<16x256xf32> to vector<16xf32>
    %4 = vector.shape_cast %3 : vector<16xf32> to vector<16x1xf32>
    %cst_1 = arith.constant 2.560000e+02 : f32
    %5 = vector.broadcast %cst_1 : f32 to vector<16x1xf32>
    %6 = arith.divf %4, %5 : vector<16x1xf32>
    %cst_2 = arith.constant 9.99999997E-7 : f32
    %7 = vector.broadcast %cst_2 : f32 to vector<16x1xf32>
    %8 = arith.addf %6, %7 : vector<16x1xf32>
    %9 = math.rsqrt %8 : vector<16x1xf32>
    %10 = vector.broadcast %9 : vector<16x1xf32> to vector<16x256xf32>
    %11 = arith.mulf %1, %10 : vector<16x256xf32>
    %c0_3 = arith.constant 0 : index
    %c0_4 = arith.constant 0 : index
    %12 = vector.load %arg2[%c0_3, %c0_4] : memref<1x256xf32, #tpu.memory_space<vmem>>, vector<1x256xf32>
    %13 = vector.broadcast %12 : vector<1x256xf32> to vector<16x256xf32>
    %14 = arith.mulf %11, %13 : vector<16x256xf32>
    %15 = arith.truncf %14 : vector<16x256xf32> to vector<16x256xbf16>
    %c0_5 = arith.constant 0 : index
    %c0_6 = arith.constant 0 : index
    %16 = vector.load %arg3[%c0_5, %c0_6] : memref<16x256xbf16, #tpu.memory_space<vmem>>, vector<16x256xbf16>
    tpu.vector_store %arg3[%c0_5, %c0_6], %15 {strides = array<i32>} : memref<16x256xbf16, #tpu.memory_space<vmem>>, vector<16x256xbf16>,
    return
  }
  func.func @transform_0(%arg0: i32) -> (i32, i32) {
    %c0_i32 = arith.constant 0 : i32
    %c0_i32_0 = arith.constant 0 : i32
    return %arg0, %c0_i32 : i32, i32
  }
  func.func @transform_1(%arg0: i32) -> (i32, i32) {
    %c0_i32 = arith.constant 0 : i32
    %c0_i32_0 = arith.constant 0 : i32
    %c0_i32_1 = arith.constant 0 : i32
    return %c0_i32, %c0_i32_0 : i32, i32
  }
  func.func @transform_2(%arg0: i32) -> (i32, i32) {
    %c0_i32 = arith.constant 0 : i32
    %c0_i32_0 = arith.constant 0 : i32
    return %arg0, %c0_i32 : i32, i32
  }
}

module attributes {stable_mosaic.version = 11 : i64} {
  func.func @_audio_mix_kernel(%arg0: i32, %arg1: i32, %arg2: i32, %arg3: memref<1x8x256xbf16, #tpu.memory_space<vmem>>, %arg4: memref<1x1x8x256xbf16, #tpu.memory_space<vmem>>, %arg5: memref<1x1x1xf32, #tpu.memory_space<vmem>>, %arg6: memref<1x8x256xbf16, #tpu.memory_space<vmem>>, %arg7: memref<8x256xf32, #tpu.memory_space<vmem>>) attributes {dimension_semantics = [#tpu.dimension_semantics<parallel>, #tpu.dimension_semantics<parallel>, #tpu.dimension_semantics<arbitrary>], iteration_bounds = array<i64: 2, 1, 8>, scalar_prefetch = 0 : i64, scratch_operands = 1 : i64, tpu.core_type = #tpu.core_type<tc>, window_params = [{transform_indices = @transform_0, window_bounds = array<i64: 1, 8, 256>}, {transform_indices = @transform_1, window_bounds = array<i64: 1, 1, 8, 256>}, {transform_indices = @transform_2, window_bounds = array<i64: 1, 1, 1>}, {transform_indices = @transform_3, window_bounds = array<i64: 1, 8, 256>}]} {
    %c0_i32 = arith.constant 0 : i32
    %0 = arith.cmpi eq, %arg2, %c0_i32 : i32
    %1 = arith.extui %0 : i1 to i32
    %c0_i32_0 = arith.constant 0 : i32
    %2 = arith.cmpi ne, %1, %c0_i32_0 : i32
    scf.if %2 {
      %c0_12 = arith.constant 0 : index
      %c0_13 = arith.constant 0 : index
      %c0_14 = arith.constant 0 : index
      %16 = vector.load %arg3[%c0_12, %c0_13, %c0_14] : memref<1x8x256xbf16, #tpu.memory_space<vmem>>, vector<1x8x256xbf16>
      %17 = vector.shape_cast %16 : vector<1x8x256xbf16> to vector<8x256xbf16>
      %18 = arith.extf %17 : vector<8x256xbf16> to vector<8x256xf32>
      %c0_15 = arith.constant 0 : index
      %c0_16 = arith.constant 0 : index
      %19 = vector.load %arg7[%c0_15, %c0_16] : memref<8x256xf32, #tpu.memory_space<vmem>>, vector<8x256xf32>
      tpu.vector_store %arg7[%c0_15, %c0_16], %18 {strides = array<i32>} : memref<8x256xf32, #tpu.memory_space<vmem>>, vector<8x256xf32>,
    } else {
    }
    %c0 = arith.constant 0 : index
    %c0_1 = arith.constant 0 : index
    %3 = vector.load %arg7[%c0, %c0_1] : memref<8x256xf32, #tpu.memory_space<vmem>>, vector<8x256xf32>
    %c0_2 = arith.constant 0 : index
    %c0_3 = arith.constant 0 : index
    %c0_4 = arith.constant 0 : index
    %c0_5 = arith.constant 0 : index
    %4 = vector.load %arg4[%c0_2, %c0_3, %c0_4, %c0_5] : memref<1x1x8x256xbf16, #tpu.memory_space<vmem>>, vector<1x1x8x256xbf16>
    %5 = vector.shape_cast %4 : vector<1x1x8x256xbf16> to vector<8x256xbf16>
    %6 = arith.extf %5 : vector<8x256xbf16> to vector<8x256xf32>
    %c0_6 = arith.constant 0 : index
    %c0_7 = arith.constant 0 : index
    %c0_8 = arith.constant 0 : index
    %7 = vector.load %arg5[%c0_6, %c0_7, %c0_8] : memref<1x1x1xf32, #tpu.memory_space<vmem>>, vector<1x1x1xf32>
    %8 = vector.shape_cast %7 : vector<1x1x1xf32> to vector<1x1xf32>
    %9 = vector.broadcast %8 : vector<1x1xf32> to vector<8x256xf32>
    %10 = arith.mulf %6, %9 : vector<8x256xf32>
    %11 = arith.addf %3, %10 : vector<8x256xf32>
    %c0_9 = arith.constant 0 : index
    %c0_10 = arith.constant 0 : index
    %12 = vector.load %arg7[%c0_9, %c0_10] : memref<8x256xf32, #tpu.memory_space<vmem>>, vector<8x256xf32>
    tpu.vector_store %arg7[%c0_9, %c0_10], %11 {strides = array<i32>} : memref<8x256xf32, #tpu.memory_space<vmem>>, vector<8x256xf32>,
    %c7_i32 = arith.constant 7 : i32
    %13 = arith.cmpi eq, %arg2, %c7_i32 : i32
    %14 = arith.extui %13 : i1 to i32
    %c0_i32_11 = arith.constant 0 : i32
    %15 = arith.cmpi ne, %14, %c0_i32_11 : i32
    scf.if %15 {
      %c0_12 = arith.constant 0 : index
      %c0_13 = arith.constant 0 : index
      %16 = vector.load %arg7[%c0_12, %c0_13] : memref<8x256xf32, #tpu.memory_space<vmem>>, vector<8x256xf32>
      %17 = arith.truncf %16 : vector<8x256xf32> to vector<8x256xbf16>
      %c0_14 = arith.constant 0 : index
      %c0_15 = arith.constant 0 : index
      %c0_16 = arith.constant 0 : index
      %18 = vector.load %arg6[%c0_14, %c0_15, %c0_16] : memref<1x8x256xbf16, #tpu.memory_space<vmem>>, vector<1x8x256xbf16>
      %19 = vector.shape_cast %18 : vector<1x8x256xbf16> to vector<8x256xbf16>
      %20 = vector.shape_cast %17 : vector<8x256xbf16> to vector<1x8x256xbf16>
      tpu.vector_store %arg6[%c0_14, %c0_15, %c0_16], %20 {strides = array<i32>} : memref<1x8x256xbf16, #tpu.memory_space<vmem>>, vector<1x8x256xbf16>,
    } else {
    }
    return
  }
  func.func @transform_0(%arg0: i32, %arg1: i32, %arg2: i32) -> (i32, i32, i32) {
    %c0_i32 = arith.constant 0 : i32
    %c0_i32_0 = arith.constant 0 : i32
    return %arg0, %arg1, %c0_i32 : i32, i32, i32
  }
  func.func @transform_1(%arg0: i32, %arg1: i32, %arg2: i32) -> (i32, i32, i32, i32) {
    %c0_i32 = arith.constant 0 : i32
    %c0_i32_0 = arith.constant 0 : i32
    return %arg0, %arg2, %arg1, %c0_i32 : i32, i32, i32, i32
  }
  func.func @transform_2(%arg0: i32, %arg1: i32, %arg2: i32) -> (i32, i32, i32) {
    %c0_i32 = arith.constant 0 : i32
    %c0_i32_0 = arith.constant 0 : i32
    %c0_i32_1 = arith.constant 0 : i32
    return %arg2, %c0_i32, %c0_i32_0 : i32, i32, i32
  }
  func.func @transform_3(%arg0: i32, %arg1: i32, %arg2: i32) -> (i32, i32, i32) {
    %c0_i32 = arith.constant 0 : i32
    %c0_i32_0 = arith.constant 0 : i32
    return %arg0, %arg1, %c0_i32 : i32, i32, i32
  }
}

module attributes {stable_mosaic.version = 11 : i64} {
  func.func @_mm_kernel(%arg0: i32, %arg1: i32, %arg2: i32, %arg3: memref<16x256xbf16, #tpu.memory_space<vmem>>, %arg4: memref<256x256xbf16, #tpu.memory_space<vmem>>, %arg5: memref<16x256xbf16, #tpu.memory_space<vmem>>, %arg6: memref<16x256xf32, #tpu.memory_space<vmem>>) attributes {dimension_semantics = [#tpu.dimension_semantics<parallel>, #tpu.dimension_semantics<parallel>, #tpu.dimension_semantics<arbitrary>], iteration_bounds = array<i64: 1, 3, 1>, scalar_prefetch = 0 : i64, scratch_operands = 1 : i64, tpu.core_type = #tpu.core_type<tc>, window_params = [{transform_indices = @transform_0, window_bounds = array<i64: 16, 256>}, {transform_indices = @transform_1, window_bounds = array<i64: 256, 256>}, {transform_indices = @transform_2, window_bounds = array<i64: 16, 256>}]} {
    %c0_i32 = arith.constant 0 : i32
    %0 = arith.cmpi eq, %arg2, %c0_i32 : i32
    %1 = arith.extui %0 : i1 to i32
    %c0_i32_0 = arith.constant 0 : i32
    %2 = arith.cmpi ne, %1, %c0_i32_0 : i32
    scf.if %2 {
      %cst_10 = arith.constant 0.000000e+00 : f32
      %12 = vector.broadcast %cst_10 : f32 to vector<16x256xf32>
      %c0_11 = arith.constant 0 : index
      %c0_12 = arith.constant 0 : index
      %13 = vector.load %arg6[%c0_11, %c0_12] : memref<16x256xf32, #tpu.memory_space<vmem>>, vector<16x256xf32>
      tpu.vector_store %arg6[%c0_11, %c0_12], %12 {strides = array<i32>} : memref<16x256xf32, #tpu.memory_space<vmem>>, vector<16x256xf32>,
    } else {
    }
    %c0 = arith.constant 0 : index
    %c0_1 = arith.constant 0 : index
    %3 = vector.load %arg6[%c0, %c0_1] : memref<16x256xf32, #tpu.memory_space<vmem>>, vector<16x256xf32>
    %c0_2 = arith.constant 0 : index
    %c0_3 = arith.constant 0 : index
    %4 = vector.load %arg3[%c0_2, %c0_3] : memref<16x256xbf16, #tpu.memory_space<vmem>>, vector<16x256xbf16>
    %c0_4 = arith.constant 0 : index
    %c0_5 = arith.constant 0 : index
    %5 = vector.load %arg4[%c0_4, %c0_5] : memref<256x256xbf16, #tpu.memory_space<vmem>>, vector<256x256xbf16>
    %cst = arith.constant dense<0.000000e+00> : vector<16x256xf32>
    %6 = tpu.matmul %4, %5, %cst {dimension_numbers = #tpu.dot_dimension_numbers<[1], [0], [0], [1], [0, 0, 1, 1], [], []>} : vector<16x256xbf16>, vector<256x256xbf16>, vector<16x256xf32> -> vector<16x256xf32>
    %7 = arith.addf %3, %6 : vector<16x256xf32>
    %c0_6 = arith.constant 0 : index
    %c0_7 = arith.constant 0 : index
    %8 = vector.load %arg6[%c0_6, %c0_7] : memref<16x256xf32, #tpu.memory_space<vmem>>, vector<16x256xf32>
    tpu.vector_store %arg6[%c0_6, %c0_7], %7 {strides = array<i32>} : memref<16x256xf32, #tpu.memory_space<vmem>>, vector<16x256xf32>,
    %c0_i32_8 = arith.constant 0 : i32
    %9 = arith.cmpi eq, %arg2, %c0_i32_8 : i32
    %10 = arith.extui %9 : i1 to i32
    %c0_i32_9 = arith.constant 0 : i32
    %11 = arith.cmpi ne, %10, %c0_i32_9 : i32
    scf.if %11 {
      %c0_10 = arith.constant 0 : index
      %c0_11 = arith.constant 0 : index
      %12 = vector.load %arg6[%c0_10, %c0_11] : memref<16x256xf32, #tpu.memory_space<vmem>>, vector<16x256xf32>
      %13 = arith.truncf %12 : vector<16x256xf32> to vector<16x256xbf16>
      %c0_12 = arith.constant 0 : index
      %c0_13 = arith.constant 0 : index
      %14 = vector.load %arg5[%c0_12, %c0_13] : memref<16x256xbf16, #tpu.memory_space<vmem>>, vector<16x256xbf16>
      tpu.vector_store %arg5[%c0_12, %c0_13], %13 {strides = array<i32>} : memref<16x256xbf16, #tpu.memory_space<vmem>>, vector<16x256xbf16>,
    } else {
    }
    return
  }
  func.func @transform_0(%arg0: i32, %arg1: i32, %arg2: i32) -> (i32, i32) {
    %c0_i32 = arith.constant 0 : i32
    return %arg0, %arg2 : i32, i32
  }
  func.func @transform_1(%arg0: i32, %arg1: i32, %arg2: i32) -> (i32, i32) {
    %c0_i32 = arith.constant 0 : i32
    return %arg2, %arg1 : i32, i32
  }
  func.func @transform_2(%arg0: i32, %arg1: i32, %arg2: i32) -> (i32, i32) {
    %c0_i32 = arith.constant 0 : i32
    return %arg0, %arg1 : i32, i32
  }
}

module attributes {stable_mosaic.version = 11 : i64} {
  func.func @_mm_res_kernel(%arg0: i32, %arg1: i32, %arg2: i32, %arg3: memref<16x256xbf16, #tpu.memory_space<vmem>>, %arg4: memref<256x256xbf16, #tpu.memory_space<vmem>>, %arg5: memref<16x256xbf16, #tpu.memory_space<vmem>>, %arg6: memref<16x256xbf16, #tpu.memory_space<vmem>>, %arg7: memref<16x256xf32, #tpu.memory_space<vmem>>) attributes {dimension_semantics = [#tpu.dimension_semantics<parallel>, #tpu.dimension_semantics<parallel>, #tpu.dimension_semantics<arbitrary>], iteration_bounds = array<i64: 1, 1, 1>, scalar_prefetch = 0 : i64, scratch_operands = 1 : i64, tpu.core_type = #tpu.core_type<tc>, window_params = [{transform_indices = @transform_0, window_bounds = array<i64: 16, 256>}, {transform_indices = @transform_1, window_bounds = array<i64: 256, 256>}, {transform_indices = @transform_2, window_bounds = array<i64: 16, 256>}, {transform_indices = @transform_3, window_bounds = array<i64: 16, 256>}]} {
    %c0_i32 = arith.constant 0 : i32
    %0 = arith.cmpi eq, %arg2, %c0_i32 : i32
    %1 = arith.extui %0 : i1 to i32
    %c0_i32_0 = arith.constant 0 : i32
    %2 = arith.cmpi ne, %1, %c0_i32_0 : i32
    scf.if %2 {
      %cst_10 = arith.constant 0.000000e+00 : f32
      %12 = vector.broadcast %cst_10 : f32 to vector<16x256xf32>
      %c0_11 = arith.constant 0 : index
      %c0_12 = arith.constant 0 : index
      %13 = vector.load %arg7[%c0_11, %c0_12] : memref<16x256xf32, #tpu.memory_space<vmem>>, vector<16x256xf32>
      tpu.vector_store %arg7[%c0_11, %c0_12], %12 {strides = array<i32>} : memref<16x256xf32, #tpu.memory_space<vmem>>, vector<16x256xf32>,
    } else {
    }
    %c0 = arith.constant 0 : index
    %c0_1 = arith.constant 0 : index
    %3 = vector.load %arg7[%c0, %c0_1] : memref<16x256xf32, #tpu.memory_space<vmem>>, vector<16x256xf32>
    %c0_2 = arith.constant 0 : index
    %c0_3 = arith.constant 0 : index
    %4 = vector.load %arg3[%c0_2, %c0_3] : memref<16x256xbf16, #tpu.memory_space<vmem>>, vector<16x256xbf16>
    %c0_4 = arith.constant 0 : index
    %c0_5 = arith.constant 0 : index
    %5 = vector.load %arg4[%c0_4, %c0_5] : memref<256x256xbf16, #tpu.memory_space<vmem>>, vector<256x256xbf16>
    %cst = arith.constant dense<0.000000e+00> : vector<16x256xf32>
    %6 = tpu.matmul %4, %5, %cst {dimension_numbers = #tpu.dot_dimension_numbers<[1], [0], [0], [1], [0, 0, 1, 1], [], []>} : vector<16x256xbf16>, vector<256x256xbf16>, vector<16x256xf32> -> vector<16x256xf32>
    %7 = arith.addf %3, %6 : vector<16x256xf32>
    %c0_6 = arith.constant 0 : index
    %c0_7 = arith.constant 0 : index
    %8 = vector.load %arg7[%c0_6, %c0_7] : memref<16x256xf32, #tpu.memory_space<vmem>>, vector<16x256xf32>
    tpu.vector_store %arg7[%c0_6, %c0_7], %7 {strides = array<i32>} : memref<16x256xf32, #tpu.memory_space<vmem>>, vector<16x256xf32>,
    %c0_i32_8 = arith.constant 0 : i32
    %9 = arith.cmpi eq, %arg2, %c0_i32_8 : i32
    %10 = arith.extui %9 : i1 to i32
    %c0_i32_9 = arith.constant 0 : i32
    %11 = arith.cmpi ne, %10, %c0_i32_9 : i32
    scf.if %11 {
      %c0_10 = arith.constant 0 : index
      %c0_11 = arith.constant 0 : index
      %12 = vector.load %arg7[%c0_10, %c0_11] : memref<16x256xf32, #tpu.memory_space<vmem>>, vector<16x256xf32>
      %c0_12 = arith.constant 0 : index
      %c0_13 = arith.constant 0 : index
      %13 = vector.load %arg5[%c0_12, %c0_13] : memref<16x256xbf16, #tpu.memory_space<vmem>>, vector<16x256xbf16>
      %14 = arith.extf %13 : vector<16x256xbf16> to vector<16x256xf32>
      %15 = arith.addf %12, %14 : vector<16x256xf32>
      %16 = arith.truncf %15 : vector<16x256xf32> to vector<16x256xbf16>
      %c0_14 = arith.constant 0 : index
      %c0_15 = arith.constant 0 : index
      %17 = vector.load %arg6[%c0_14, %c0_15] : memref<16x256xbf16, #tpu.memory_space<vmem>>, vector<16x256xbf16>
      tpu.vector_store %arg6[%c0_14, %c0_15], %16 {strides = array<i32>} : memref<16x256xbf16, #tpu.memory_space<vmem>>, vector<16x256xbf16>,
    } else {
    }
    return
  }
  func.func @transform_0(%arg0: i32, %arg1: i32, %arg2: i32) -> (i32, i32) {
    %c0_i32 = arith.constant 0 : i32
    return %arg0, %arg2 : i32, i32
  }
  func.func @transform_1(%arg0: i32, %arg1: i32, %arg2: i32) -> (i32, i32) {
    %c0_i32 = arith.constant 0 : i32
    return %arg2, %arg1 : i32, i32
  }
  func.func @transform_2(%arg0: i32, %arg1: i32, %arg2: i32) -> (i32, i32) {
    %c0_i32 = arith.constant 0 : i32
    return %arg0, %arg1 : i32, i32
  }
  func.func @transform_3(%arg0: i32, %arg1: i32, %arg2: i32) -> (i32, i32) {
    %c0_i32 = arith.constant 0 : i32
    return %arg0, %arg1 : i32, i32
  }
}

module attributes {stable_mosaic.version = 11 : i64} {
  func.func @_flash_kernel(%arg0: i32, %arg1: i32, %arg2: i32, %arg3: i32, %arg4: memref<8x128xbf16, #tpu.memory_space<vmem>>, %arg5: memref<8x128xbf16, #tpu.memory_space<vmem>>, %arg6: memref<8x128xbf16, #tpu.memory_space<vmem>>, %arg7: memref<8x128xf32, #tpu.memory_space<vmem>>, %arg8: memref<8x128xf32, #tpu.memory_space<vmem>>, %arg9: memref<8x128xf32, #tpu.memory_space<vmem>>, %arg10: memref<8x128xf32, #tpu.memory_space<vmem>>, %arg11: memref<8x128xbf16, #tpu.memory_space<vmem>>, %arg12: memref<8x1xf32, #tpu.memory_space<vmem>>, %arg13: memref<8x1xf32, #tpu.memory_space<vmem>>, %arg14: memref<8x128xf32, #tpu.memory_space<vmem>>) attributes {dimension_semantics = [#tpu.dimension_semantics<parallel>, #tpu.dimension_semantics<parallel>, #tpu.dimension_semantics<parallel>, #tpu.dimension_semantics<arbitrary>], iteration_bounds = array<i64: 2, 2, 1, 1>, scalar_prefetch = 0 : i64, scratch_operands = 3 : i64, tpu.core_type = #tpu.core_type<tc>, window_params = [{transform_indices = @transform_0, window_bounds = array<i64: 8, 128>}, {transform_indices = @transform_1, window_bounds = array<i64: 8, 128>}, {transform_indices = @transform_2, window_bounds = array<i64: 8, 128>}, {transform_indices = @transform_3, window_bounds = array<i64: 8, 128>}, {transform_indices = @transform_4, window_bounds = array<i64: 8, 128>}, {transform_indices = @transform_5, window_bounds = array<i64: 8, 128>}, {transform_indices = @transform_6, window_bounds = array<i64: 8, 128>}, {transform_indices = @transform_7, window_bounds = array<i64: 8, 128>}]} {
    %c0_i32 = arith.constant 0 : i32
    %0 = arith.cmpi eq, %arg3, %c0_i32 : i32
    %1 = arith.extui %0 : i1 to i32
    %c0_i32_0 = arith.constant 0 : i32
    %2 = arith.cmpi ne, %1, %c0_i32_0 : i32
    scf.if %2 {
      %cst = arith.constant 0xFF800000 : f32
      %13 = vector.broadcast %cst : f32 to vector<8x1xf32>
      %c0 = arith.constant 0 : index
      %c0_6 = arith.constant 0 : index
      %14 = vector.load %arg12[%c0, %c0_6] : memref<8x1xf32, #tpu.memory_space<vmem>>, vector<8x1xf32>
      tpu.vector_store %arg12[%c0, %c0_6], %13 {strides = array<i32>} : memref<8x1xf32, #tpu.memory_space<vmem>>, vector<8x1xf32>,
      %cst_7 = arith.constant 0.000000e+00 : f32
      %15 = vector.broadcast %cst_7 : f32 to vector<8x1xf32>
      %c0_8 = arith.constant 0 : index
      %c0_9 = arith.constant 0 : index
      %16 = vector.load %arg13[%c0_8, %c0_9] : memref<8x1xf32, #tpu.memory_space<vmem>>, vector<8x1xf32>
      tpu.vector_store %arg13[%c0_8, %c0_9], %15 {strides = array<i32>} : memref<8x1xf32, #tpu.memory_space<vmem>>, vector<8x1xf32>,
      %cst_10 = arith.constant 0.000000e+00 : f32
      %17 = vector.broadcast %cst_10 : f32 to vector<8x128xf32>
      %c0_11 = arith.constant 0 : index
      %c0_12 = arith.constant 0 : index
      %18 = vector.load %arg14[%c0_11, %c0_12] : memref<8x128xf32, #tpu.memory_space<vmem>>, vector<8x128xf32>
      tpu.vector_store %arg14[%c0_11, %c0_12], %17 {strides = array<i32>} : memref<8x128xf32, #tpu.memory_space<vmem>>, vector<8x128xf32>,
    } else {
    }
    %c8_i32 = arith.constant 8 : i32
    %3 = arith.muli %arg3, %c8_i32 : i32
    %c8_i32_1 = arith.constant 8 : i32
    %4 = arith.muli %arg2, %c8_i32_1 : i32
    %c8_i32_2 = arith.constant 8 : i32
    %5 = arith.addi %4, %c8_i32_2 : i32
    %c1_i32 = arith.constant 1 : i32
    %6 = arith.subi %5, %c1_i32 : i32
    %7 = arith.cmpi sle, %3, %6 : i32
    %8 = arith.extui %7 : i1 to i32
    %c0_i32_3 = arith.constant 0 : i32
    %9 = arith.cmpi ne, %8, %c0_i32_3 : i32
    scf.if %9 {
      %13 = tpu.iota {dimensions = array<i32: 1>} : vector<1x128xi32>
      %c64_i32 = arith.constant 64 : i32
      %14 = vector.broadcast %c64_i32 : i32 to vector<1x128xi32>
      %15 = arith.cmpi slt, %13, %14 : vector<1x128xi32>
      %cst = arith.constant -1.000000e+00 : f32
      %cst_6 = arith.constant 1.000000e+00 : f32
      %16 = vector.broadcast %cst : f32 to vector<1x128xf32>
      %17 = vector.broadcast %cst_6 : f32 to vector<1x128xf32>
      %18 = arith.select %15, %16, %17 : vector<1x128xi1>, vector<1x128xf32>
      %c0 = arith.constant 0 : index
      %c0_7 = arith.constant 0 : index
      %19 = vector.load %arg4[%c0, %c0_7] : memref<8x128xbf16, #tpu.memory_space<vmem>>, vector<8x128xbf16>
      %20 = arith.extf %19 : vector<8x128xbf16> to vector<8x128xf32>
      %c0_8 = arith.constant 0 : index
      %c0_9 = arith.constant 0 : index
      %21 = vector.load %arg7[%c0_8, %c0_9] : memref<8x128xf32, #tpu.memory_space<vmem>>, vector<8x128xf32>
      %c0_10 = arith.constant 0 : index
      %c0_11 = arith.constant 0 : index
      %22 = vector.load %arg8[%c0_10, %c0_11] : memref<8x128xf32, #tpu.memory_space<vmem>>, vector<8x128xf32>
      %23 = arith.mulf %20, %21 : vector<8x128xf32>
      %c64_i32_12 = arith.constant 64 : i32
      %24 = tpu.dynamic_rotate %20 by %c64_i32_12 dim 1 : vector<8x128xf32>, i32 -> vector<8x128xf32>
      %25 = vector.broadcast %18 : vector<1x128xf32> to vector<8x128xf32>
      %26 = arith.mulf %24, %25 : vector<8x128xf32>
      %27 = arith.mulf %26, %22 : vector<8x128xf32>
      %28 = arith.addf %23, %27 : vector<8x128xf32>
      %cst_13 = arith.constant 0.0883883461 : f32
      %29 = vector.broadcast %cst_13 : f32 to vector<8x128xf32>
      %30 = arith.mulf %28, %29 : vector<8x128xf32>
      %c0_14 = arith.constant 0 : index
      %c0_15 = arith.constant 0 : index
      %31 = vector.load %arg5[%c0_14, %c0_15] : memref<8x128xbf16, #tpu.memory_space<vmem>>, vector<8x128xbf16>
      %32 = arith.extf %31 : vector<8x128xbf16> to vector<8x128xf32>
      %c0_16 = arith.constant 0 : index
      %c0_17 = arith.constant 0 : index
      %33 = vector.load %arg9[%c0_16, %c0_17] : memref<8x128xf32, #tpu.memory_space<vmem>>, vector<8x128xf32>
      %c0_18 = arith.constant 0 : index
      %c0_19 = arith.constant 0 : index
      %34 = vector.load %arg10[%c0_18, %c0_19] : memref<8x128xf32, #tpu.memory_space<vmem>>, vector<8x128xf32>
      %35 = arith.mulf %32, %33 : vector<8x128xf32>
      %c64_i32_20 = arith.constant 64 : i32
      %36 = tpu.dynamic_rotate %32 by %c64_i32_20 dim 1 : vector<8x128xf32>, i32 -> vector<8x128xf32>
      %37 = vector.broadcast %18 : vector<1x128xf32> to vector<8x128xf32>
      %38 = arith.mulf %36, %37 : vector<8x128xf32>
      %39 = arith.mulf %38, %34 : vector<8x128xf32>
      %40 = arith.addf %35, %39 : vector<8x128xf32>
      %41 = arith.truncf %30 : vector<8x128xf32> to vector<8x128xbf16>
      %42 = arith.truncf %40 : vector<8x128xf32> to vector<8x128xbf16>
      %cst_21 = arith.constant dense<0.000000e+00> : vector<8x8xf32>
      %43 = tpu.matmul %41, %42, %cst_21 {dimension_numbers = #tpu.dot_dimension_numbers<[1], [1], [0], [0], [0, 0, 1, 0], [], []>} : vector<8x128xbf16>, vector<8x128xbf16>, vector<8x8xf32> -> vector<8x8xf32>
      %c8_i32_22 = arith.constant 8 : i32
      %44 = arith.muli %arg2, %c8_i32_22 : i32
      %45 = tpu.iota {dimensions = array<i32: 0>} : vector<8x8xi32>
      %46 = vector.broadcast %44 : i32 to vector<8x8xi32>
      %47 = arith.addi %46, %45 : vector<8x8xi32>
      %c8_i32_23 = arith.constant 8 : i32
      %48 = arith.muli %arg3, %c8_i32_23 : i32
      %49 = tpu.iota {dimensions = array<i32: 1>} : vector<8x8xi32>
      %50 = vector.broadcast %48 : i32 to vector<8x8xi32>
      %51 = arith.addi %50, %49 : vector<8x8xi32>
      %52 = arith.cmpi sle, %51, %47 : vector<8x8xi32>
      %cst_24 = arith.constant -1.000000e+30 : f32
      %53 = vector.broadcast %cst_24 : f32 to vector<8x8xf32>
      %54 = arith.select %52, %43, %53 : vector<8x8xi1>, vector<8x8xf32>
      %c0_25 = arith.constant 0 : index
      %c0_26 = arith.constant 0 : index
      %55 = vector.load %arg12[%c0_25, %c0_26] : memref<8x1xf32, #tpu.memory_space<vmem>>, vector<8x1xf32>
      %cst_27 = arith.constant dense<0xFF800000> : vector<8xf32>
      %56 = vector.multi_reduction <maximumf>, %54, %cst_27 [1] : vector<8x8xf32> to vector<8xf32>
      %57 = vector.shape_cast %56 : vector<8xf32> to vector<8x1xf32>
      %58 = arith.maximumf %55, %57 : vector<8x1xf32>
      %c0_28 = arith.constant 0 : index
      %c0_29 = arith.constant 0 : index
      %59 = vector.load %arg12[%c0_28, %c0_29] : memref<8x1xf32, #tpu.memory_space<vmem>>, vector<8x1xf32>
      %60 = arith.subf %59, %58 : vector<8x1xf32>
      %61 = math.exp %60 : vector<8x1xf32>
      %62 = vector.broadcast %58 : vector<8x1xf32> to vector<8x8xf32>
      %63 = arith.subf %54, %62 : vector<8x8xf32>
      %64 = math.exp %63 : vector<8x8xf32>
      %c0_30 = arith.constant 0 : index
      %c0_31 = arith.constant 0 : index
      %65 = vector.load %arg13[%c0_30, %c0_31] : memref<8x1xf32, #tpu.memory_space<vmem>>, vector<8x1xf32>
      %66 = arith.mulf %61, %65 : vector<8x1xf32>
      %cst_32 = arith.constant dense<0.000000e+00> : vector<8xf32>
      %67 = vector.multi_reduction <add>, %64, %cst_32 [1] : vector<8x8xf32> to vector<8xf32>
      %68 = vector.shape_cast %67 : vector<8xf32> to vector<8x1xf32>
      %69 = arith.addf %66, %68 : vector<8x1xf32>
      %c0_33 = arith.constant 0 : index
      %c0_34 = arith.constant 0 : index
      %70 = vector.load %arg13[%c0_33, %c0_34] : memref<8x1xf32, #tpu.memory_space<vmem>>, vector<8x1xf32>
      tpu.vector_store %arg13[%c0_33, %c0_34], %69 {strides = array<i32>} : memref<8x1xf32, #tpu.memory_space<vmem>>, vector<8x1xf32>,
      %c0_35 = arith.constant 0 : index
      %c0_36 = arith.constant 0 : index
      %71 = vector.load %arg14[%c0_35, %c0_36] : memref<8x128xf32, #tpu.memory_space<vmem>>, vector<8x128xf32>
      %72 = vector.broadcast %61 : vector<8x1xf32> to vector<8x128xf32>
      %73 = arith.mulf %72, %71 : vector<8x128xf32>
      %74 = arith.truncf %64 : vector<8x8xf32> to vector<8x8xbf16>
      %c0_37 = arith.constant 0 : index
      %c0_38 = arith.constant 0 : index
      %75 = vector.load %arg6[%c0_37, %c0_38] : memref<8x128xbf16, #tpu.memory_space<vmem>>, vector<8x128xbf16>
      %cst_39 = arith.constant dense<0.000000e+00> : vector<8x128xf32>
      %76 = tpu.matmul %74, %75, %cst_39 {dimension_numbers = #tpu.dot_dimension_numbers<[1], [0], [0], [1], [0, 0, 1, 1], [], []>} : vector<8x8xbf16>, vector<8x128xbf16>, vector<8x128xf32> -> vector<8x128xf32>
      %77 = arith.addf %73, %76 : vector<8x128xf32>
      %c0_40 = arith.constant 0 : index
      %c0_41 = arith.constant 0 : index
      %78 = vector.load %arg14[%c0_40, %c0_41] : memref<8x128xf32, #tpu.memory_space<vmem>>, vector<8x128xf32>
      tpu.vector_store %arg14[%c0_40, %c0_41], %77 {strides = array<i32>} : memref<8x128xf32, #tpu.memory_space<vmem>>, vector<8x128xf32>,
      %c0_42 = arith.constant 0 : index
      %c0_43 = arith.constant 0 : index
      %79 = vector.load %arg12[%c0_42, %c0_43] : memref<8x1xf32, #tpu.memory_space<vmem>>, vector<8x1xf32>
      tpu.vector_store %arg12[%c0_42, %c0_43], %58 {strides = array<i32>} : memref<8x1xf32, #tpu.memory_space<vmem>>, vector<8x1xf32>,
    } else {
    }
    %c0_i32_4 = arith.constant 0 : i32
    %10 = arith.cmpi eq, %arg3, %c0_i32_4 : i32
    %11 = arith.extui %10 : i1 to i32
    %c0_i32_5 = arith.constant 0 : i32
    %12 = arith.cmpi ne, %11, %c0_i32_5 : i32
    scf.if %12 {
      %c0 = arith.constant 0 : index
      %c0_6 = arith.constant 0 : index
      %13 = vector.load %arg14[%c0, %c0_6] : memref<8x128xf32, #tpu.memory_space<vmem>>, vector<8x128xf32>
      %c0_7 = arith.constant 0 : index
      %c0_8 = arith.constant 0 : index
      %14 = vector.load %arg13[%c0_7, %c0_8] : memref<8x1xf32, #tpu.memory_space<vmem>>, vector<8x1xf32>
      %15 = tpu.reciprocal %14 {approx = true} : vector<8x1xf32> -> vector<8x1xf32>
      %16 = vector.broadcast %15 : vector<8x1xf32> to vector<8x128xf32>
      %17 = arith.mulf %13, %16 : vector<8x128xf32>
      %18 = arith.truncf %17 : vector<8x128xf32> to vector<8x128xbf16>
      %c0_9 = arith.constant 0 : index
      %c0_10 = arith.constant 0 : index
      %19 = vector.load %arg11[%c0_9, %c0_10] : memref<8x128xbf16, #tpu.memory_space<vmem>>, vector<8x128xbf16>
      tpu.vector_store %arg11[%c0_9, %c0_10], %18 {strides = array<i32>} : memref<8x128xbf16, #tpu.memory_space<vmem>>, vector<8x128xbf16>,
    } else {
    }
    return
  }
  func.func @transform_0(%arg0: i32, %arg1: i32, %arg2: i32, %arg3: i32) -> (i32, i32) {
    %c1_i32 = arith.constant 1 : i32
    %0 = arith.muli %arg0, %c1_i32 : i32
    %1 = arith.addi %0, %arg2 : i32
    %c0_i32 = arith.constant 0 : i32
    return %1, %arg1 : i32, i32
  }
  func.func @transform_1(%arg0: i32, %arg1: i32, %arg2: i32, %arg3: i32) -> (i32, i32) {
    %c1_i32 = arith.constant 1 : i32
    %0 = arith.muli %arg0, %c1_i32 : i32
    %1 = arith.addi %0, %arg3 : i32
    %c2_i32 = arith.constant 2 : i32
    %2 = arith.addi %c2_i32, %arg1 : i32
    %c0_i32 = arith.constant 0 : i32
    return %1, %2 : i32, i32
  }
  func.func @transform_2(%arg0: i32, %arg1: i32, %arg2: i32, %arg3: i32) -> (i32, i32) {
    %c1_i32 = arith.constant 1 : i32
    %0 = arith.muli %arg0, %c1_i32 : i32
    %1 = arith.addi %0, %arg3 : i32
    %c4_i32 = arith.constant 4 : i32
    %2 = arith.addi %c4_i32, %arg1 : i32
    %c0_i32 = arith.constant 0 : i32
    return %1, %2 : i32, i32
  }
  func.func @transform_3(%arg0: i32, %arg1: i32, %arg2: i32, %arg3: i32) -> (i32, i32) {
    %c0_i32 = arith.constant 0 : i32
    %c0_i32_0 = arith.constant 0 : i32
    return %arg2, %c0_i32 : i32, i32
  }
  func.func @transform_4(%arg0: i32, %arg1: i32, %arg2: i32, %arg3: i32) -> (i32, i32) {
    %c0_i32 = arith.constant 0 : i32
    %c0_i32_0 = arith.constant 0 : i32
    return %arg2, %c0_i32 : i32, i32
  }
  func.func @transform_5(%arg0: i32, %arg1: i32, %arg2: i32, %arg3: i32) -> (i32, i32) {
    %c0_i32 = arith.constant 0 : i32
    %c0_i32_0 = arith.constant 0 : i32
    return %arg3, %c0_i32 : i32, i32
  }
  func.func @transform_6(%arg0: i32, %arg1: i32, %arg2: i32, %arg3: i32) -> (i32, i32) {
    %c0_i32 = arith.constant 0 : i32
    %c0_i32_0 = arith.constant 0 : i32
    return %arg3, %c0_i32 : i32, i32
  }
  func.func @transform_7(%arg0: i32, %arg1: i32, %arg2: i32, %arg3: i32) -> (i32, i32) {
    %c1_i32 = arith.constant 1 : i32
    %0 = arith.muli %arg0, %c1_i32 : i32
    %1 = arith.addi %0, %arg2 : i32
    %c0_i32 = arith.constant 0 : i32
    return %1, %arg1 : i32, i32
  }
}

module attributes {stable_mosaic.version = 11 : i64} {
  func.func @_mlp_block_kernel(%arg0: i32, %arg1: i32, %arg2: memref<16x256xbf16, #tpu.memory_space<vmem>>, %arg3: memref<1x256xf32, #tpu.memory_space<vmem>>, %arg4: memref<256x512xbf16, #tpu.memory_space<vmem>>, %arg5: memref<256x512xbf16, #tpu.memory_space<vmem>>, %arg6: memref<512x256xbf16, #tpu.memory_space<vmem>>, %arg7: memref<16x256xbf16, #tpu.memory_space<vmem>>, %arg8: memref<16x256xf32, #tpu.memory_space<vmem>>, %arg9: memref<16x256xbf16, #tpu.memory_space<vmem>>) attributes {dimension_semantics = [#tpu.dimension_semantics<parallel>, #tpu.dimension_semantics<arbitrary>], iteration_bounds = array<i64: 1, 1>, scalar_prefetch = 0 : i64, scratch_operands = 2 : i64, tpu.core_type = #tpu.core_type<tc>, window_params = [{transform_indices = @transform_0, window_bounds = array<i64: 16, 256>}, {pipeline_mode = #tpu.pipeline_mode<synchronous>, transform_indices = @transform_1, window_bounds = array<i64: 1, 256>}, {transform_indices = @transform_2, window_bounds = array<i64: 256, 512>}, {transform_indices = @transform_3, window_bounds = array<i64: 256, 512>}, {transform_indices = @transform_4, window_bounds = array<i64: 512, 256>}, {transform_indices = @transform_5, window_bounds = array<i64: 16, 256>}]} {
    %c0_i32 = arith.constant 0 : i32
    %0 = arith.cmpi eq, %arg1, %c0_i32 : i32
    %1 = arith.extui %0 : i1 to i32
    %c0_i32_0 = arith.constant 0 : i32
    %2 = arith.cmpi ne, %1, %c0_i32_0 : i32
    scf.if %2 {
      %c0_17 = arith.constant 0 : index
      %c0_18 = arith.constant 0 : index
      %24 = vector.load %arg2[%c0_17, %c0_18] : memref<16x256xbf16, #tpu.memory_space<vmem>>, vector<16x256xbf16>
      %25 = arith.extf %24 : vector<16x256xbf16> to vector<16x256xf32>
      %26 = arith.mulf %25, %25 : vector<16x256xf32>
      %cst_19 = arith.constant dense<0.000000e+00> : vector<16xf32>
      %27 = vector.multi_reduction <add>, %26, %cst_19 [1] : vector<16x256xf32> to vector<16xf32>
      %28 = vector.shape_cast %27 : vector<16xf32> to vector<16x1xf32>
      %cst_20 = arith.constant 2.560000e+02 : f32
      %29 = vector.broadcast %cst_20 : f32 to vector<16x1xf32>
      %30 = arith.divf %28, %29 : vector<16x1xf32>
      %cst_21 = arith.constant 9.99999997E-7 : f32
      %31 = vector.broadcast %cst_21 : f32 to vector<16x1xf32>
      %32 = arith.addf %30, %31 : vector<16x1xf32>
      %33 = math.rsqrt %32 : vector<16x1xf32>
      %34 = vector.broadcast %33 : vector<16x1xf32> to vector<16x256xf32>
      %35 = arith.mulf %25, %34 : vector<16x256xf32>
      %c0_22 = arith.constant 0 : index
      %c0_23 = arith.constant 0 : index
      %36 = vector.load %arg3[%c0_22, %c0_23] : memref<1x256xf32, #tpu.memory_space<vmem>>, vector<1x256xf32>
      %37 = vector.broadcast %36 : vector<1x256xf32> to vector<16x256xf32>
      %38 = arith.mulf %35, %37 : vector<16x256xf32>
      %39 = arith.truncf %38 : vector<16x256xf32> to vector<16x256xbf16>
      %c0_24 = arith.constant 0 : index
      %c0_25 = arith.constant 0 : index
      %40 = vector.load %arg9[%c0_24, %c0_25] : memref<16x256xbf16, #tpu.memory_space<vmem>>, vector<16x256xbf16>
      tpu.vector_store %arg9[%c0_24, %c0_25], %39 {strides = array<i32>} : memref<16x256xbf16, #tpu.memory_space<vmem>>, vector<16x256xbf16>,
      %c0_26 = arith.constant 0 : index
      %c0_27 = arith.constant 0 : index
      %41 = vector.load %arg8[%c0_26, %c0_27] : memref<16x256xf32, #tpu.memory_space<vmem>>, vector<16x256xf32>
      tpu.vector_store %arg8[%c0_26, %c0_27], %25 {strides = array<i32>} : memref<16x256xf32, #tpu.memory_space<vmem>>, vector<16x256xf32>,
    } else {
    }
    %c0 = arith.constant 0 : index
    %c0_1 = arith.constant 0 : index
    %3 = vector.load %arg9[%c0, %c0_1] : memref<16x256xbf16, #tpu.memory_space<vmem>>, vector<16x256xbf16>
    %c0_2 = arith.constant 0 : index
    %c0_3 = arith.constant 0 : index
    %4 = vector.load %arg4[%c0_2, %c0_3] : memref<256x512xbf16, #tpu.memory_space<vmem>>, vector<256x512xbf16>
    %cst = arith.constant dense<0.000000e+00> : vector<16x512xf32>
    %5 = tpu.matmul %3, %4, %cst {dimension_numbers = #tpu.dot_dimension_numbers<[1], [0], [0], [1], [0, 0, 1, 1], [], []>} : vector<16x256xbf16>, vector<256x512xbf16>, vector<16x512xf32> -> vector<16x512xf32>
    %c0_4 = arith.constant 0 : index
    %c0_5 = arith.constant 0 : index
    %6 = vector.load %arg5[%c0_4, %c0_5] : memref<256x512xbf16, #tpu.memory_space<vmem>>, vector<256x512xbf16>
    %cst_6 = arith.constant dense<0.000000e+00> : vector<16x512xf32>
    %7 = tpu.matmul %3, %6, %cst_6 {dimension_numbers = #tpu.dot_dimension_numbers<[1], [0], [0], [1], [0, 0, 1, 1], [], []>} : vector<16x256xbf16>, vector<256x512xbf16>, vector<16x512xf32> -> vector<16x512xf32>
    %8 = arith.negf %5 : vector<16x512xf32>
    %9 = math.exp %8 : vector<16x512xf32>
    %cst_7 = arith.constant 1.000000e+00 : f32
    %10 = vector.broadcast %cst_7 : f32 to vector<16x512xf32>
    %11 = arith.addf %10, %9 : vector<16x512xf32>
    %12 = arith.divf %10, %11 : vector<16x512xf32>
    %13 = arith.mulf %5, %12 : vector<16x512xf32>
    %14 = arith.mulf %13, %7 : vector<16x512xf32>
    %c0_8 = arith.constant 0 : index
    %c0_9 = arith.constant 0 : index
    %15 = vector.load %arg8[%c0_8, %c0_9] : memref<16x256xf32, #tpu.memory_space<vmem>>, vector<16x256xf32>
    %16 = arith.truncf %14 : vector<16x512xf32> to vector<16x512xbf16>
    %c0_10 = arith.constant 0 : index
    %c0_11 = arith.constant 0 : index
    %17 = vector.load %arg6[%c0_10, %c0_11] : memref<512x256xbf16, #tpu.memory_space<vmem>>, vector<512x256xbf16>
    %cst_12 = arith.constant dense<0.000000e+00> : vector<16x256xf32>
    %18 = tpu.matmul %16, %17, %cst_12 {dimension_numbers = #tpu.dot_dimension_numbers<[1], [0], [0], [1], [0, 0, 1, 1], [], []>} : vector<16x512xbf16>, vector<512x256xbf16>, vector<16x256xf32> -> vector<16x256xf32>
    %19 = arith.addf %15, %18 : vector<16x256xf32>
    %c0_13 = arith.constant 0 : index
    %c0_14 = arith.constant 0 : index
    %20 = vector.load %arg8[%c0_13, %c0_14] : memref<16x256xf32, #tpu.memory_space<vmem>>, vector<16x256xf32>
    tpu.vector_store %arg8[%c0_13, %c0_14], %19 {strides = array<i32>} : memref<16x256xf32, #tpu.memory_space<vmem>>, vector<16x256xf32>,
    %c0_i32_15 = arith.constant 0 : i32
    %21 = arith.cmpi eq, %arg1, %c0_i32_15 : i32
    %22 = arith.extui %21 : i1 to i32
    %c0_i32_16 = arith.constant 0 : i32
    %23 = arith.cmpi ne, %22, %c0_i32_16 : i32
    scf.if %23 {
      %c0_17 = arith.constant 0 : index
      %c0_18 = arith.constant 0 : index
      %24 = vector.load %arg8[%c0_17, %c0_18] : memref<16x256xf32, #tpu.memory_space<vmem>>, vector<16x256xf32>
      %25 = arith.truncf %24 : vector<16x256xf32> to vector<16x256xbf16>
      %c0_19 = arith.constant 0 : index
      %c0_20 = arith.constant 0 : index
      %26 = vector.load %arg7[%c0_19, %c0_20] : memref<16x256xbf16, #tpu.memory_space<vmem>>, vector<16x256xbf16>
      tpu.vector_store %arg7[%c0_19, %c0_20], %25 {strides = array<i32>} : memref<16x256xbf16, #tpu.memory_space<vmem>>, vector<16x256xbf16>,
    } else {
    }
    return
  }
  func.func @transform_0(%arg0: i32, %arg1: i32) -> (i32, i32) {
    %c0_i32 = arith.constant 0 : i32
    %c0_i32_0 = arith.constant 0 : i32
    return %arg0, %c0_i32 : i32, i32
  }
  func.func @transform_1(%arg0: i32, %arg1: i32) -> (i32, i32) {
    %c0_i32 = arith.constant 0 : i32
    %c0_i32_0 = arith.constant 0 : i32
    %c0_i32_1 = arith.constant 0 : i32
    return %c0_i32, %c0_i32_0 : i32, i32
  }
  func.func @transform_2(%arg0: i32, %arg1: i32) -> (i32, i32) {
    %c0_i32 = arith.constant 0 : i32
    %c0_i32_0 = arith.constant 0 : i32
    return %c0_i32, %arg1 : i32, i32
  }
  func.func @transform_3(%arg0: i32, %arg1: i32) -> (i32, i32) {
    %c0_i32 = arith.constant 0 : i32
    %c0_i32_0 = arith.constant 0 : i32
    return %c0_i32, %arg1 : i32, i32
  }
  func.func @transform_4(%arg0: i32, %arg1: i32) -> (i32, i32) {
    %c0_i32 = arith.constant 0 : i32
    %c0_i32_0 = arith.constant 0 : i32
    return %arg1, %c0_i32 : i32, i32
  }
  func.func @transform_5(%arg0: i32, %arg1: i32) -> (i32, i32) {
    %c0_i32 = arith.constant 0 : i32
    %c0_i32_0 = arith.constant 0 : i32
    return %arg0, %c0_i32 : i32, i32
  }
}

module attributes {stable_mosaic.version = 11 : i64} {
  func.func @_mm_bias_kernel(%arg0: i32, %arg1: i32, %arg2: i32, %arg3: memref<16x256xbf16, #tpu.memory_space<vmem>>, %arg4: memref<256x512xbf16, #tpu.memory_space<vmem>>, %arg5: memref<1x512xf32, #tpu.memory_space<vmem>>, %arg6: memref<16x512xf32, #tpu.memory_space<vmem>>, %arg7: memref<16x512xf32, #tpu.memory_space<vmem>>) attributes {dimension_semantics = [#tpu.dimension_semantics<parallel>, #tpu.dimension_semantics<parallel>, #tpu.dimension_semantics<arbitrary>], iteration_bounds = array<i64: 1, 4, 1>, scalar_prefetch = 0 : i64, scratch_operands = 1 : i64, tpu.core_type = #tpu.core_type<tc>, window_params = [{transform_indices = @transform_0, window_bounds = array<i64: 16, 256>}, {transform_indices = @transform_1, window_bounds = array<i64: 256, 512>}, {transform_indices = @transform_2, window_bounds = array<i64: 1, 512>}, {transform_indices = @transform_3, window_bounds = array<i64: 16, 512>}]} {
    %c0_i32 = arith.constant 0 : i32
    %0 = arith.cmpi eq, %arg2, %c0_i32 : i32
    %1 = arith.extui %0 : i1 to i32
    %c0_i32_0 = arith.constant 0 : i32
    %2 = arith.cmpi ne, %1, %c0_i32_0 : i32
    scf.if %2 {
      %cst_10 = arith.constant 0.000000e+00 : f32
      %12 = vector.broadcast %cst_10 : f32 to vector<16x512xf32>
      %c0_11 = arith.constant 0 : index
      %c0_12 = arith.constant 0 : index
      %13 = vector.load %arg7[%c0_11, %c0_12] : memref<16x512xf32, #tpu.memory_space<vmem>>, vector<16x512xf32>
      tpu.vector_store %arg7[%c0_11, %c0_12], %12 {strides = array<i32>} : memref<16x512xf32, #tpu.memory_space<vmem>>, vector<16x512xf32>,
    } else {
    }
    %c0 = arith.constant 0 : index
    %c0_1 = arith.constant 0 : index
    %3 = vector.load %arg7[%c0, %c0_1] : memref<16x512xf32, #tpu.memory_space<vmem>>, vector<16x512xf32>
    %c0_2 = arith.constant 0 : index
    %c0_3 = arith.constant 0 : index
    %4 = vector.load %arg3[%c0_2, %c0_3] : memref<16x256xbf16, #tpu.memory_space<vmem>>, vector<16x256xbf16>
    %c0_4 = arith.constant 0 : index
    %c0_5 = arith.constant 0 : index
    %5 = vector.load %arg4[%c0_4, %c0_5] : memref<256x512xbf16, #tpu.memory_space<vmem>>, vector<256x512xbf16>
    %cst = arith.constant dense<0.000000e+00> : vector<16x512xf32>
    %6 = tpu.matmul %4, %5, %cst {dimension_numbers = #tpu.dot_dimension_numbers<[1], [0], [0], [1], [0, 0, 1, 1], [], []>} : vector<16x256xbf16>, vector<256x512xbf16>, vector<16x512xf32> -> vector<16x512xf32>
    %7 = arith.addf %3, %6 : vector<16x512xf32>
    %c0_6 = arith.constant 0 : index
    %c0_7 = arith.constant 0 : index
    %8 = vector.load %arg7[%c0_6, %c0_7] : memref<16x512xf32, #tpu.memory_space<vmem>>, vector<16x512xf32>
    tpu.vector_store %arg7[%c0_6, %c0_7], %7 {strides = array<i32>} : memref<16x512xf32, #tpu.memory_space<vmem>>, vector<16x512xf32>,
    %c0_i32_8 = arith.constant 0 : i32
    %9 = arith.cmpi eq, %arg2, %c0_i32_8 : i32
    %10 = arith.extui %9 : i1 to i32
    %c0_i32_9 = arith.constant 0 : i32
    %11 = arith.cmpi ne, %10, %c0_i32_9 : i32
    scf.if %11 {
      %c0_10 = arith.constant 0 : index
      %c0_11 = arith.constant 0 : index
      %12 = vector.load %arg7[%c0_10, %c0_11] : memref<16x512xf32, #tpu.memory_space<vmem>>, vector<16x512xf32>
      %c0_12 = arith.constant 0 : index
      %c0_13 = arith.constant 0 : index
      %13 = vector.load %arg5[%c0_12, %c0_13] : memref<1x512xf32, #tpu.memory_space<vmem>>, vector<1x512xf32>
      %14 = vector.broadcast %13 : vector<1x512xf32> to vector<16x512xf32>
      %15 = arith.addf %12, %14 : vector<16x512xf32>
      %c0_14 = arith.constant 0 : index
      %c0_15 = arith.constant 0 : index
      %16 = vector.load %arg6[%c0_14, %c0_15] : memref<16x512xf32, #tpu.memory_space<vmem>>, vector<16x512xf32>
      tpu.vector_store %arg6[%c0_14, %c0_15], %15 {strides = array<i32>} : memref<16x512xf32, #tpu.memory_space<vmem>>, vector<16x512xf32>,
    } else {
    }
    return
  }
  func.func @transform_0(%arg0: i32, %arg1: i32, %arg2: i32) -> (i32, i32) {
    %c0_i32 = arith.constant 0 : i32
    return %arg0, %arg2 : i32, i32
  }
  func.func @transform_1(%arg0: i32, %arg1: i32, %arg2: i32) -> (i32, i32) {
    %c0_i32 = arith.constant 0 : i32
    return %arg2, %arg1 : i32, i32
  }
  func.func @transform_2(%arg0: i32, %arg1: i32, %arg2: i32) -> (i32, i32) {
    %c0_i32 = arith.constant 0 : i32
    %c0_i32_0 = arith.constant 0 : i32
    return %c0_i32, %arg1 : i32, i32
  }
  func.func @transform_3(%arg0: i32, %arg1: i32, %arg2: i32) -> (i32, i32) {
    %c0_i32 = arith.constant 0 : i32
    return %arg0, %arg1 : i32, i32
  }
}

</mosaic_0001>

<bundles_post_ra>
// kernel: _lambda_.18
= control target key start
LH: loop header
LB: loop body
LE: loop exit
PB: predicated region body
PF: predicated region fallthrough
CT: control target
= control target key end

     0   :  { %s579_s12 = smov 0   ;;  %s581_s13 = smov 0   ;;  %s645_s0 = inlined_call_operand.vmem [shape: bf16[2,8,256], index: 0, kind: input, shape index: {}]   ;;  %s646_s1 = inlined_call_operand.vmem [shape: bf16[2,8,8,256], index: 1, kind: input, shape index: {}]   ;;  %s647_s2 = inlined_call_operand.vmem [shape: f32[8,1,1], index: 2, kind: input, shape index: {}]   ;;  %s648_s3 = inlined_call_operand.vmem [shape: bf16[2,8,256], index: 3, kind: output, shape index: {}]  }
   0x1   :  { %s583_s14 = smov 0   ;;  %s585_s15 = smov 0  }
   0x2   :  { %s587_s16 = smov 0  }
   0x3 LB: > { %s25_s17 = sadd.s32 1, %s548_s14  ;;  %s32_s18 = sadd.s32 1, %s552_s15  ;;  %s556_s16 = sphi %s587_s16, %s13_s16   ;;  %s552_s15 = sphi %s585_s15, %s652_s15   ;;  %s548_s14 = sphi %s583_s14, %s651_s14   ;;  %s544_s13 = sphi %s581_s13, %s650_s13   ;;  %s540_s12 = sphi %s579_s12, %s649_s12  }
   0x4   : > { %p26_p0 = scmp.ge.s32.totalorder %s25_s17, 8  ;;  %p459_p1 = scmp.ge.s32.totalorder %s556_s16, 1 }
   0x5   : > { %p194_p2 = scmp.lt.s32.totalorder %s556_s16, 17 }
   0x6   : > { %s654_s17 = smov (%p26_p0, %s25_s17), 0  ;;  %s656_s18 = smov (!%p26_p0, %s32_s18), %s552_s15 }
   0x7   : > { %p195_p3 = pnand %p459_p1, %p194_p2  ;;  %p34_p4 = scmp.ge.s32.totalorder %s656_s18, 2 }
   0x8   : > { %p242_p5 = scmp.lt.s32.totalorder (!%p195_p3), %s544_s13, 1  ;;  %p253_p6 = scmp.lt.s32.totalorder (!%p195_p3), %s540_s12, 7 }
   0x9   : > { %s658_s18 = smov (%p34_p4, %s656_s18), 0  ;;  %198 = sbr.rel (%p195_p3) target bundleno = 169 (0xa9), region = 32 }
   0xa   : > { %p467_p7 = scmp.ne.s32.totalorder (!%p195_p3), %s540_s12, 0 }
  0x10   : > { %s660_s13 = smov (!%p242_p5, %s544_s13), 1  ;;  %279 = sbr.rel (%p467_p7) target bundleno = 24 (0x18), region = 36 }
  0x11   : > { %s254_s19 = scalar_select %p253_p6, %s540_s12, 7 }
  0x12   : > { %s473_s20 = sshll.u32 %s660_s13, 3  ;;  %s463_s21 = sshll.u32 %s660_s13, 4 }
  0x13   : > { %s250_s24 = scalar_lea.vmem %s645_s0, %s473_s20  ;;  %s462_s25 = sshll.u32 %s254_s19, 1 }
  0x14   : > { %s261_s26 = sadd.s32 %s463_s21, %s462_s25  ;;  %s266_s29 = scalar_lea.vmem %s647_s2, %s254_s19  ;;  %v280_v0 = vld [vmem:[%s250_s24] sm:$0xff] (!%p467_p7) }
  0x15   : > { %s464_s30 = sshll.u32 %s261_s26, 2  ;;  %s622_s6 = scalar_lea.vmem %s648_s3, %s473_s20  ;;  %v281_v1 = vunpack.c.l.bf16 (!%p467_p7), %v280_v0  ;;  %v282_v2 = vunpack.c.h.bf16 (!%p467_p7), %v280_v0 }
  0x16   : > { %s263_s9 = scalar_lea.vmem %s646_s1, %s464_s30 }
  0x17   : > { %283 = vst [vmem:[#allocation2] sm:$0xff] %v281_v1  ;;  %284 = vst [vmem:[#allocation2 + $0x8] sm:$0xff] %v282_v2 }
  0x18 PF: > { %v468_v3 = vld [vmem:[%s266_s29] ss:$0 sm:$0xff]  ;;  %v558_v4 = vmov 0   ;;  %p469_p8 = scmp.ne.s32.totalorder %s540_s12, 7 }
  0x19   : > { %517 = vset.pattern.permute.xlu0 %v558_v4  ;;  %v287_v5 = vld [vmem:[%s263_s9] sm:$0xff] }
  0x1a   : > { %297 = vperm.xlu0 %517, %v468_v3   ;;  %v288_v6 = vunpack.c.l.bf16 %v287_v5  ;;  %v289_v7 = vunpack.c.h.bf16 %v287_v5 }
  0x1e   : > { %v285_v9 = vld [vmem:[#allocation2] sm:$0xff]  ;;  %v286_v10 = vld [vmem:[#allocation2 + $0x8] sm:$0xff] }
  0x98   : > { %309 = sbr.rel (%p469_p8) target bundleno = 169 (0xa9), region = 40 }
  0x99   : > { %v298_v8 = vpop.permute.xlu0 %297 }
  0x9a   : > { %v300_v11 = vmul.f32 %v298_v8, %v288_v6  ;;  %v301_v12 = vmul.f32 %v298_v8, %v289_v7 }
  0x9c   : > { %v302_v13 = vadd.f32 %v300_v11, %v285_v9  ;;  %v303_v14 = vadd.f32 %v301_v12, %v286_v10 }
  0x9e   : > { %304 = vst [vmem:[#allocation2] sm:$0xff] %v302_v13  ;;  %305 = vst [vmem:[#allocation2 + $0x8] sm:$0xff] %v303_v14 }
  0xa5   : > { %v310_v15 = vld [vmem:[#allocation2] sm:$0xff]  ;;  %v311_v16 = vld [vmem:[#allocation2 + $0x8] sm:$0xff] }
  0xa6   : > { %v475_v17 = vpack.c.bf16 %v311_v16, %v310_v15 }
  0xa8   : > { %320 = vst [vmem:[%s622_s6] sm:$0xff] %v475_v17 }
  0xa9 PF: > { %s13_s16 = sadd.s32 1, %s556_s16   ;;  %s649_s12 = smov %s548_s14 }
  0xaa   : > { %p10_p9 = scmp.ge.s32.totalorder %s13_s16, 18   ;;  %s650_s13 = smov %s552_s15 }
  0xab   : > { %s651_s14 = smov %s654_s17  ;;  %s652_s15 = smov %s658_s18 }
  0xac   :  { %12 = sbr.rel (!%p10_p9) target bundleno = 3 (0x3), region = 76 }

// kernel: _lambda_.19
= control target key start
LH: loop header
LB: loop body
LE: loop exit
PB: predicated region body
PF: predicated region fallthrough
CT: control target
= control target key end

     0   :  { %v40_v14 = vlaneseq  ;;  %s110_s0 = inlined_call_operand.vmem [shape: bf16[16,256], index: 0, kind: input, shape index: {}]   ;;  %s111_s1 = inlined_call_operand.vmem [shape: f32[1,256], index: 1, kind: input, shape index: {}]   ;;  %s112_s2 = inlined_call_operand.vmem [shape: bf16[16,256], index: 2, kind: output, shape index: {}]  }
   0x1   :  { %v11_v0 = vld [vmem:[%s110_s0] sm:$0xff]  ;;  %v12_v1 = vld [vmem:[%s110_s0 + $0x8] sm:$0xff] }
   0x2   :  { %v13_v2 = vunpack.c.l.bf16 %v11_v0  ;;  %v14_v3 = vunpack.c.h.bf16 %v11_v0  ;;  %v15_v4 = vunpack.c.l.bf16 %v12_v1  ;;  %v16_v5 = vunpack.c.h.bf16 %v12_v1  ;;  %v38_v22 = vld [vmem:[%s111_s1] sm:$0x3] }
   0x3   :  { %v41_v18 = vshrl.u32 %v40_v14, 7 }
   0x4   :  { %v17_v6 = vmul.f32 %v13_v2, %v13_v2  ;;  %v18_v7 = vmul.f32 %v14_v3, %v14_v3  ;;  %v19_v8 = vmul.f32 %v15_v4, %v15_v4  ;;  %v20_v9 = vmul.f32 %v16_v5, %v16_v5 }
   0x5   :  { %v42_v20 = vsub.s32 0, %v41_v18  ;;  %v46_v21 = vsub.s32 1, %v41_v18 }
   0x6   :  { %v21_v10 = vadd.f32 %v18_v7, %v17_v6  ;;  %v24_v11 = vadd.f32 %v20_v9, %v19_v8 }
   0x7   :  { %v43_v23 = vrot.slane %v38_v22, %v42_v20  ;;  %v47_v24 = vrot.slane %v38_v22, %v46_v21 }
   0x8   :  { %22 = vadd.xlane.f32.xlu0 %v21_v10 }
   0xc   :  { %25 = vadd.xlane.f32.xlu0 %v24_v11 }
  0x95   :  { %v23_v12 = vpop.xlane.xlu0 %22 }
  0x96   :  { %v28_v13 = vmul.f32 0.00390625, %v23_v12 }
  0x98   :  { %v30_v15 = vadd.f32 1e-06, %v28_v13 }
  0x99   :  { %v26_v16 = vpop.xlane.xlu0 %25 }
  0x9a   :  { %76 = vrsqrt.f32 %v30_v15  ;;  %v29_v17 = vmul.f32 0.00390625, %v26_v16 }
  0x9c   :  { %v31_v19 = vadd.f32 1e-06, %v29_v17 }
  0x9e   :  { %78 = vrsqrt.f32 %v31_v19 }
  0xa4   :  { %v77_v25 = vpop.eup %76 }
  0xa5   :  { %v34_v26 = vmul.f32 %v77_v25, %v13_v2  ;;  %v35_v27 = vmul.f32 %v77_v25, %v14_v3 }
  0xa7   :  { %v50_v28 = vmul.f32 %v43_v23, %v34_v26  ;;  %v51_v29 = vmul.f32 %v47_v24, %v35_v27 }
  0xa8   :  { %v79_v30 = vpop.eup %78 }
  0xa9   :  { %v74_v31 = vpack.c.bf16 %v51_v29, %v50_v28  ;;  %v36_v32 = vmul.f32 %v79_v30, %v15_v4  ;;  %v37_v33 = vmul.f32 %v79_v30, %v16_v5 }
  0xab   :  { %66 = vst [vmem:[%s112_s2] sm:$0xff] %v74_v31  ;;  %v52_v34 = vmul.f32 %v43_v23, %v36_v32  ;;  %v53_v35 = vmul.f32 %v47_v24, %v37_v33 }
  0xad   :  { %v75_v36 = vpack.c.bf16 %v53_v35, %v52_v34 }
  0xaf   :  { %67 = vst [vmem:[%s112_s2 + $0x8] sm:$0xff] %v75_v36 }

// kernel: _lambda_.20
= control target key start
LH: loop header
LB: loop body
LE: loop exit
PB: predicated region body
PF: predicated region fallthrough
CT: control target
= control target key end

     0   :  { %s1002_s9 = smov 0   ;;  %s1004_s10 = smov 0   ;;  %s1186_s0 = inlined_call_operand.vmem [shape: bf16[16,256], index: 0, kind: input, shape index: {}]   ;;  %s1187_s1 = inlined_call_operand.vmem [shape: bf16[256,768], index: 1, kind: input, shape index: {}]   ;;  %s1188_s2 = inlined_call_operand.vmem [shape: bf16[16,768], index: 2, kind: output, shape index: {}]  }
   0x1   :  { %s1006_s11 = smov 0   ;;  %s1008_s12 = smov 0  }
   0x2   :  { %s1010_s13 = smov 0  }
   0x3 LB: > { %s27_s14 = sadd.s32 1, %s981_s12  ;;  %s800_s15 = sadd.s32 4294967295, %s985_s13   ;;  %s985_s13 = sphi %s1010_s13, %s12_s13   ;;  %s981_s12 = sphi %s1008_s12, %s1193_s12   ;;  %s977_s11 = sphi %s1006_s11, %s1192_s11   ;;  %s973_s10 = sphi %s1004_s10, %s1191_s10   ;;  %s969_s9 = sphi %s1002_s9, %s1190_s9  }
   0x4   : > { %p29_p0 = scmp.ge.s32.totalorder %s27_s14, 3  ;;  %p75_p1 = scmp.ne.s32.totalorder %s973_s10, %s969_s9 }
   0x5   : > { %p76_p2 = scmp.eq.s32.totalorder %s985_s13, 0  ;;  %p107_p4 = scmp.eq.s32.totalorder %s800_s15, 2 }
   0x6   : > { %s1195_s14 = smov (%p29_p0, %s27_s14), 0  ;;  %s68_s17 = sadd.s32 1, %s973_s10 }
   0x7   : > { %p77_p3 = por %p76_p2, %p75_p1  ;;  %s64_s16 = ssub.s32 %s981_s12, %s1195_s14 }
   0x8   : > { %p66_p5 = scmp.eq.s32.totalorder %s64_s16, 0  ;;  %p1037_p6 = por %p107_p4, %p75_p1 }
   0x9   : > { %p804_p7 = scmp.ge.s32.totalorder %s985_s13, 3 }
   0xa   : > { %s1042_s19 = scalar_select %p66_p5, %s973_s10, %s68_s17  }
   0xb   : > { %144 = sbr.rel (%p804_p7) target bundleno = 38 (0x26), region = 20 }
  0x12   : > { %147 = sbr.rel (!%p77_p3) target bundleno = 38 (0x26), region = 24  ;;  %s149_s20 = sand.u32 (%p77_p3), 1, %s973_s10  }
  0x13   : > { %s852_s21 = sshll.u32 (%p77_p3), %s981_s12, 3  ;;  %s805_s22 = sshll.u32 (%p77_p3), %s149_s20, 8 }
  0x14   : > { %s1050_s25 = scalar_lea.vmem (%p77_p3), %s1187_s1, %s852_s21  ;;  %s1055_s26 = scalar_lea.vmem (%p77_p3), [#allocation3], %s805_s22 }
  0x15   : > { %v247_v0 = vld [vmem:[%s1050_s25] sm:$0xff] (%p77_p3)  ;;  %v249_v1 = vld [vmem:[%s1050_s25 + $0x18] sm:$0xff] (%p77_p3)  ;;  %v251_v2 = vld [vmem:[%s1050_s25 + $0x30] sm:$0xff] (%p77_p3) }
  0x16   : > { %248 = vst [vmem:[%s1055_s26] sm:$0xff] (%p77_p3), %v247_v0  ;;  %250 = vst [vmem:[%s1055_s26 + $0x8] sm:$0xff] (%p77_p3), %v249_v1  ;;  %v253_v3 = vld [vmem:[%s1050_s25 + $0x48] sm:$0xff] (%p77_p3)  ;;  %v255_v4 = vld [vmem:[%s1050_s25 + $0x60] sm:$0xff] (%p77_p3) }
  0x17   : > { %252 = vst [vmem:[%s1055_s26 + $0x10] sm:$0xff] (%p77_p3), %v251_v2  ;;  %v257_v5 = vld [vmem:[%s1050_s25 + $0x78] sm:$0xff] (%p77_p3)  ;;  %254 = vst [vmem:[%s1055_s26 + $0x18] sm:$0xff] (%p77_p3), %v253_v3  ;;  %v259_v6 = vld [vmem:[%s1050_s25 + $0x90] sm:$0xff] (%p77_p3) }
  0x18   : > { %256 = vst [vmem:[%s1055_s26 + $0x20] sm:$0xff] (%p77_p3), %v255_v4  ;;  %258 = vst [vmem:[%s1055_s26 + $0x28] sm:$0xff] (%p77_p3), %v257_v5  ;;  %v261_v7 = vld [vmem:[%s1050_s25 + $0xa8] sm:$0xff] (%p77_p3)  ;;  %v263_v8 = vld [vmem:[%s1050_s25 + $0xc0] sm:$0xff] (%p77_p3) }
  0x19   : > { %260 = vst [vmem:[%s1055_s26 + $0x30] sm:$0xff] %v259_v6  ;;  %262 = vst [vmem:[%s1055_s26 + $0x38] sm:$0xff] %v261_v7  ;;  %v265_v9 = vld [vmem:[%s1050_s25 + $0xd8] sm:$0xff]  ;;  %v267_v10 = vld [vmem:[%s1050_s25 + $0xf0] sm:$0xff] }
  0x1a   : > { %264 = vst [vmem:[%s1055_s26 + $0x40] sm:$0xff] %v263_v8  ;;  %v269_v11 = vld [vmem:[%s1050_s25 + $0x108] sm:$0xff]  ;;  %266 = vst [vmem:[%s1055_s26 + $0x48] sm:$0xff] %v265_v9  ;;  %v271_v12 = vld [vmem:[%s1050_s25 + $0x120] sm:$0xff] }
  0x1b   : > { %268 = vst [vmem:[%s1055_s26 + $0x50] sm:$0xff] %v267_v10  ;;  %270 = vst [vmem:[%s1055_s26 + $0x58] sm:$0xff] %v269_v11  ;;  %v273_v13 = vld [vmem:[%s1050_s25 + $0x138] sm:$0xff]  ;;  %v275_v14 = vld [vmem:[%s1050_s25 + $0x150] sm:$0xff] }
  0x1c   : > { %272 = vst [vmem:[%s1055_s26 + $0x60] sm:$0xff] %v271_v12  ;;  %274 = vst [vmem:[%s1055_s26 + $0x68] sm:$0xff] %v273_v13  ;;  %v277_v15 = vld [vmem:[%s1050_s25 + $0x168] sm:$0xff]  ;;  %v279_v16 = vld [vmem:[%s1050_s25 + $0x180] sm:$0xff] }
  0x1d   : > { %276 = vst [vmem:[%s1055_s26 + $0x70] sm:$0xff] %v275_v14  ;;  %v281_v17 = vld [vmem:[%s1050_s25 + $0x198] sm:$0xff]  ;;  %278 = vst [vmem:[%s1055_s26 + $0x78] sm:$0xff] %v277_v15  ;;  %v283_v18 = vld [vmem:[%s1050_s25 + $0x1b0] sm:$0xff] }
  0x1e   : > { %280 = vst [vmem:[%s1055_s26 + $0x80] sm:$0xff] %v279_v16  ;;  %282 = vst [vmem:[%s1055_s26 + $0x88] sm:$0xff] %v281_v17  ;;  %v285_v19 = vld [vmem:[%s1050_s25 + $0x1c8] sm:$0xff]  ;;  %v287_v20 = vld [vmem:[%s1050_s25 + $0x1e0] sm:$0xff] }
  0x1f   : > { %284 = vst [vmem:[%s1055_s26 + $0x90] sm:$0xff] %v283_v18  ;;  %286 = vst [vmem:[%s1055_s26 + $0x98] sm:$0xff] %v285_v19  ;;  %v289_v21 = vld [vmem:[%s1050_s25 + $0x1f8] sm:$0xff]  ;;  %v291_v22 = vld [vmem:[%s1050_s25 + $0x210] sm:$0xff] }
  0x20   : > { %288 = vst [vmem:[%s1055_s26 + $0xa0] sm:$0xff] %v287_v20  ;;  %v293_v23 = vld [vmem:[%s1050_s25 + $0x228] sm:$0xff]  ;;  %290 = vst [vmem:[%s1055_s26 + $0xa8] sm:$0xff] %v289_v21  ;;  %v295_v24 = vld [vmem:[%s1050_s25 + $0x240] sm:$0xff] }
  0x21   : > { %292 = vst [vmem:[%s1055_s26 + $0xb0] sm:$0xff] %v291_v22  ;;  %294 = vst [vmem:[%s1055_s26 + $0xb8] sm:$0xff] %v293_v23  ;;  %v297_v25 = vld [vmem:[%s1050_s25 + $0x258] sm:$0xff]  ;;  %v299_v26 = vld [vmem:[%s1050_s25 + $0x270] sm:$0xff] }
  0x22   : > { %296 = vst [vmem:[%s1055_s26 + $0xc0] sm:$0xff] %v295_v24  ;;  %298 = vst [vmem:[%s1055_s26 + $0xc8] sm:$0xff] %v297_v25  ;;  %v301_v27 = vld [vmem:[%s1050_s25 + $0x288] sm:$0xff]  ;;  %v303_v28 = vld [vmem:[%s1050_s25 + $0x2a0] sm:$0xff] }
  0x23   : > { %300 = vst [vmem:[%s1055_s26 + $0xd0] sm:$0xff] %v299_v26  ;;  %v305_v29 = vld [vmem:[%s1050_s25 + $0x2b8] sm:$0xff]  ;;  %302 = vst [vmem:[%s1055_s26 + $0xd8] sm:$0xff] %v301_v27  ;;  %v307_v30 = vld [vmem:[%s1050_s25 + $0x2d0] sm:$0xff] }
  0x24   : > { %304 = vst [vmem:[%s1055_s26 + $0xe0] sm:$0xff] %v303_v28  ;;  %306 = vst [vmem:[%s1055_s26 + $0xe8] sm:$0xff] %v305_v29  ;;  %v309_v31 = vld [vmem:[%s1050_s25 + $0x2e8] sm:$0xff] }
  0x25   : > { %308 = vst [vmem:[%s1055_s26 + $0xf0] sm:$0xff] %v307_v30  ;;  %310 = vst [vmem:[%s1055_s26 + $0xf8] sm:$0xff] %v309_v31 }
  0x26 PF: > { %p808_p8 = scmp.ge.s32.totalorder %s985_s13, 1  ;;  %p315_p9 = scmp.lt.s32.totalorder %s985_s13, 4 }
  0x28   : > { %p316_p10 = pnand %p808_p8, %p315_p9 }
  0x29   : > { %s322_s27 = sand.u32 (!%p316_p10), 1, %s969_s9   ;;  %v946_v32 = vld [vmem:[%s1186_s0 + $0x4] ss:$8 sps:$4 sm:$0xff] (!%p316_p10)   ;;  %v944_v1 = vld [vmem:[%s1186_s0] ss:$8 sps:$4 sm:$0xff] (!%p316_p10)  }
  0x2a   : > { %319 = sbr.rel (%p316_p10) target bundleno = 335 (0x14f), region = 62  ;;  %s809_s28 = sshll.u32 (!%p316_p10), %s322_s27, 8  ;;  %616 = vmatprep.mubr.bf16.mxu0 (!%p316_p10), %v946_v32 }
  0x2b   : > { %s1126_s3 = scalar_lea.vmem (!%p316_p10), [#allocation3], %s809_s28  ;;  %s810_s6 = sshll.u32 (!%p316_p10), %s322_s27, 4 }
  0x2c   : > { %v896_v33 = vld [vmem:[%s1126_s3 + $0x4] ss:$8 sps:$4 sm:$0xff] (!%p316_p10)   ;;  %v898_v34 = vld [vmem:[%s1126_s3] ss:$8 sps:$4 sm:$0xff] (!%p316_p10)   ;;  %v899_v35 = vld [vmem:[%s1126_s3 + $0x14] ss:$8 sps:$4 sm:$0xff] (!%p316_p10)  }
  0x2d   : > { %584 = vmatprep.subr.bf16.mxu0 (!%p316_p10), %v896_v33  ;;  %v901_v36 = vld [vmem:[%s1126_s3 + $0x10] ss:$8 sps:$4 sm:$0xff] (!%p316_p10)   ;;  %v902_v37 = vld [vmem:[%s1126_s3 + $0x24] ss:$8 sps:$4 sm:$0xff] (!%p316_p10)   ;;  %v904_v38 = vld [vmem:[%s1126_s3 + $0x20] ss:$8 sps:$4 sm:$0xff] (!%p316_p10)  }
  0x2e   : > { %585 = vmatpush1.bf16.msra.mxu0 (!%p316_p10), %v898_v34  ;;  %v905_v39 = vld [vmem:[%s1126_s3 + $0x34] ss:$8 sps:$4 sm:$0xff] (!%p316_p10)   ;;  %v907_v40 = vld [vmem:[%s1126_s3 + $0x30] ss:$8 sps:$4 sm:$0xff] (!%p316_p10)   ;;  %v908_v41 = vld [vmem:[%s1126_s3 + $0x44] ss:$8 sps:$4 sm:$0xff] (!%p316_p10)  }
  0x2f   : > { %586 = vmatprep.subr.bf16.mxu0 (!%p316_p10), %v899_v35  ;;  %v910_v42 = vld [vmem:[%s1126_s3 + $0x40] ss:$8 sps:$4 sm:$0xff] (!%p316_p10)   ;;  %v911_v43 = vld [vmem:[%s1126_s3 + $0x54] ss:$8 sps:$4 sm:$0xff] (!%p316_p10)   ;;  %v913_v44 = vld [vmem:[%s1126_s3 + $0x50] ss:$8 sps:$4 sm:$0xff] (!%p316_p10)  }
  0x30   : > { %v914_v45 = vld [vmem:[%s1126_s3 + $0x64] ss:$8 sps:$4 sm:$0xff] (!%p316_p10)   ;;  %v916_v46 = vld [vmem:[%s1126_s3 + $0x60] ss:$8 sps:$4 sm:$0xff] (!%p316_p10)   ;;  %v917_v47 = vld [vmem:[%s1126_s3 + $0x74] ss:$8 sps:$4 sm:$0xff] (!%p316_p10)  }
  0x31   : > { %v919_v48 = vld [vmem:[%s1126_s3 + $0x70] ss:$8 sps:$4 sm:$0xff]   ;;  %v920_v49 = vld [vmem:[%s1126_s3 + $0x84] ss:$8 sps:$4 sm:$0xff]   ;;  %v922_v50 = vld [vmem:[%s1126_s3 + $0x80] ss:$8 sps:$4 sm:$0xff]  }
  0x32   : > { %587 = vmatpush1.bf16.msra.mxu0 %v901_v36  ;;  %v923_v51 = vld [vmem:[%s1126_s3 + $0x94] ss:$8 sps:$4 sm:$0xff]   ;;  %v925_v52 = vld [vmem:[%s1126_s3 + $0x90] ss:$8 sps:$4 sm:$0xff]   ;;  %v926_v53 = vld [vmem:[%s1126_s3 + $0xa4] ss:$8 sps:$4 sm:$0xff]  }
  0x33   : > { %588 = vmatprep.subr.bf16.mxu0 %v902_v37  ;;  %v928_v54 = vld [vmem:[%s1126_s3 + $0xa0] ss:$8 sps:$4 sm:$0xff]   ;;  %v929_v55 = vld [vmem:[%s1126_s3 + $0xb4] ss:$8 sps:$4 sm:$0xff]   ;;  %v931_v56 = vld [vmem:[%s1126_s3 + $0xb0] ss:$8 sps:$4 sm:$0xff]  }
  0x34   : > { %v932_v57 = vld [vmem:[%s1126_s3 + $0xc4] ss:$8 sps:$4 sm:$0xff]   ;;  %v934_v58 = vld [vmem:[%s1126_s3 + $0xc0] ss:$8 sps:$4 sm:$0xff]   ;;  %v935_v59 = vld [vmem:[%s1126_s3 + $0xd4] ss:$8 sps:$4 sm:$0xff]  }
  0x35   : > { %v937_v60 = vld [vmem:[%s1126_s3 + $0xd0] ss:$8 sps:$4 sm:$0xff]   ;;  %v938_v61 = vld [vmem:[%s1126_s3 + $0xe4] ss:$8 sps:$4 sm:$0xff]   ;;  %v940_v62 = vld [vmem:[%s1126_s3 + $0xe0] ss:$8 sps:$4 sm:$0xff]  }
  0x36   : > { %589 = vmatpush1.bf16.msra.mxu0 %v904_v38  ;;  %v941_v63 = vld [vmem:[%s1126_s3 + $0xf4] ss:$8 sps:$4 sm:$0xff]   ;;  %v943_v0 = vld [vmem:[%s1126_s3 + $0xf0] ss:$8 sps:$4 sm:$0xff]   ;;  %s351_s7 = scalar_lea.vmem [#allocation4], %s810_s6  ;;  %s855_s8 = sshll.u32 (%p1037_p6), %s977_s11, 3 }
  0x37   : > { %590 = vmatprep.subr.bf16.mxu0 %v905_v39  ;;  %s668_s9 = scalar_lea.vmem (%p1037_p6), %s1188_s2, %s855_s8 }
  0x3a   : > { %591 = vmatpush1.bf16.msra.mxu0 %v907_v40 }
  0x3b   : > { %592 = vmatprep.subr.bf16.mxu0 %v908_v41 }
  0x3e   : > { %593 = vmatpush1.bf16.msra.mxu0 %v910_v42 }
  0x3f   : > { %594 = vmatprep.subr.bf16.mxu0 %v911_v43 }
  0x42   : > { %595 = vmatpush1.bf16.msra.mxu0 %v913_v44 }
  0x43   : > { %596 = vmatprep.subr.bf16.mxu0 %v914_v45 }
  0x46   : > { %597 = vmatpush1.bf16.msra.mxu0 %v916_v46 }
  0x47   : > { %598 = vmatprep.subr.bf16.mxu0 %v917_v47 }
  0x4a   : > { %599 = vmatpush1.bf16.msra.mxu0 %v919_v48 }
  0x4b   : > { %600 = vmatprep.subr.bf16.mxu0 %v920_v49 }
  0x4e   : > { %601 = vmatpush1.bf16.msra.mxu0 %v922_v50 }
  0x4f   : > { %602 = vmatprep.subr.bf16.mxu0 %v923_v51 }
  0x52   : > { %603 = vmatpush1.bf16.msra.mxu0 %v925_v52 }
  0x53   : > { %604 = vmatprep.subr.bf16.mxu0 %v926_v53 }
  0x56   : > { %605 = vmatpush1.bf16.msra.mxu0 %v928_v54 }
  0x57   : > { %606 = vmatprep.subr.bf16.mxu0 %v929_v55 }
  0x5a   : > { %607 = vmatpush1.bf16.msra.mxu0 %v931_v56 }
  0x5b   : > { %608 = vmatprep.subr.bf16.mxu0 %v932_v57 }
  0x5e   : > { %609 = vmatpush1.bf16.msra.mxu0 %v934_v58 }
  0x5f   : > { %610 = vmatprep.subr.bf16.mxu0 %v935_v59 }
  0x62   : > { %611 = vmatpush1.bf16.msra.mxu0 %v937_v60 }
  0x63   : > { %612 = vmatprep.subr.bf16.mxu0 %v938_v61 }
  0x66   : > { %613 = vmatpush1.bf16.msra.mxu0 %v940_v62 }
  0x67   : > { %614 = vmatprep.subr.bf16.mxu0 %v941_v63 }
  0x6a   : > { %615 = vmatpush1.bf16.msra.mxu0 %v943_v0 }
  0x6d   : > { %617 = vmatmul.mubr.bf16.vlgmr.msra.gmra.mrb[0].mxu0 %v944_v1 }
 0x140   : > { %v618_v2 = vpop.f32.mrb[0].mxu0  ;;  %662 = sbr.rel (!%p1037_p6) target bundleno = 335 (0x14f), region = 78 }
 0x141   : > { %v620_v3 = vpop.f32.mrb[1].mxu0 }
 0x142   : > { %v853_v4 = vpack.c.bf16 %v620_v3, %v618_v2  ;;  %v622_v5 = vpop.f32.mrb[2].mxu0 }
 0x143   : > { %v624_v6 = vpop.f32.mrb[3].mxu0 }
 0x144   : > { %654 = vst [vmem:[%s351_s7] sm:$0xff] %v853_v4  ;;  %v854_v7 = vpack.c.bf16 %v624_v6, %v622_v5 }
 0x146   : > { %655 = vst [vmem:[%s351_s7 + $0x8] sm:$0xff] %v854_v7 }
 0x14b   : > { %v698_v8 = vld [vmem:[%s351_s7] sm:$0xff] }
 0x14c   : > { %699 = vst [vmem:[%s668_s9] sm:$0xff] %v698_v8 }
 0x14d   : > { %v700_v9 = vld [vmem:[%s351_s7 + $0x8] sm:$0xff] }
 0x14e   : > { %701 = vst [vmem:[%s668_s9 + $0x18] sm:$0xff] %v700_v9 }
 0x14f PF: > { %s12_s13 = sadd.s32 1, %s985_s13   ;;  %s1190_s9 = smov %s973_s10 }
 0x150   : > { %p9_p11 = scmp.ge.s32.totalorder %s12_s13, 5   ;;  %s1191_s10 = smov %s1042_s19 }
 0x151   : > { %s1192_s11 = smov %s981_s12  ;;  %s1193_s12 = smov %s1195_s14 }
 0x152   :  { %11 = sbr.rel (!%p9_p11) target bundleno = 3 (0x3), region = 150 }

// kernel: _lambda_.22
= control target key start
LH: loop header
LB: loop body
LE: loop exit
PB: predicated region body
PF: predicated region fallthrough
CT: control target
= control target key end

     0   :  { %s539_s1 = inlined_call_operand.vmem [shape: bf16[256,256], index: 1, kind: input, shape index: {}]   ;;  %s540_s0 = inlined_call_operand.vmem [shape: bf16[16,256], index: 0, kind: input, shape index: {}]   ;;  %s541_s2 = inlined_call_operand.vmem [shape: bf16[16,256], index: 2, kind: input, shape index: {}]   ;;  %s542_s3 = inlined_call_operand.vmem [shape: bf16[16,256], index: 3, kind: output, shape index: {}]  }
   0x1   :  { %v354_v0 = vld [vmem:[%s539_s1 + $0x4] ss:$8 sps:$4 sm:$0xff]   ;;  %v356_v1 = vld [vmem:[%s539_s1] ss:$8 sps:$4 sm:$0xff]   ;;  %v357_v2 = vld [vmem:[%s539_s1 + $0x14] ss:$8 sps:$4 sm:$0xff]  }
   0x2   :  { %230 = vmatprep.subr.bf16.mxu0 %v354_v0  ;;  %v359_v3 = vld [vmem:[%s539_s1 + $0x10] ss:$8 sps:$4 sm:$0xff]   ;;  %v360_v4 = vld [vmem:[%s539_s1 + $0x24] ss:$8 sps:$4 sm:$0xff]   ;;  %v362_v5 = vld [vmem:[%s539_s1 + $0x20] ss:$8 sps:$4 sm:$0xff]  }
   0x3   :  { %231 = vmatpush1.bf16.msra.mxu0 %v356_v1  ;;  %v363_v6 = vld [vmem:[%s539_s1 + $0x34] ss:$8 sps:$4 sm:$0xff]   ;;  %v365_v7 = vld [vmem:[%s539_s1 + $0x30] ss:$8 sps:$4 sm:$0xff]   ;;  %v366_v8 = vld [vmem:[%s539_s1 + $0x44] ss:$8 sps:$4 sm:$0xff]  }
   0x4   :  { %232 = vmatprep.subr.bf16.mxu0 %v357_v2  ;;  %v368_v9 = vld [vmem:[%s539_s1 + $0x40] ss:$8 sps:$4 sm:$0xff]   ;;  %v369_v10 = vld [vmem:[%s539_s1 + $0x54] ss:$8 sps:$4 sm:$0xff]   ;;  %v371_v11 = vld [vmem:[%s539_s1 + $0x50] ss:$8 sps:$4 sm:$0xff]  }
   0x5   :  { %v372_v12 = vld [vmem:[%s539_s1 + $0x64] ss:$8 sps:$4 sm:$0xff]   ;;  %v374_v14 = vld [vmem:[%s539_s1 + $0x60] ss:$8 sps:$4 sm:$0xff]   ;;  %v375_v15 = vld [vmem:[%s539_s1 + $0x74] ss:$8 sps:$4 sm:$0xff]  }
   0x6   :  { %v404_v13 = vld [vmem:[%s540_s0 + $0x4] ss:$8 sps:$4 sm:$0xff]   ;;  %v377_v16 = vld [vmem:[%s539_s1 + $0x70] ss:$8 sps:$4 sm:$0xff]   ;;  %v380_v18 = vld [vmem:[%s539_s1 + $0x80] ss:$8 sps:$4 sm:$0xff]  }
   0x7   :  { %233 = vmatpush1.bf16.msra.mxu0 %v359_v3  ;;  %262 = vmatprep.mubr.bf16.mxu0 %v404_v13  ;;  %v378_v17 = vld [vmem:[%s539_s1 + $0x84] ss:$8 sps:$4 sm:$0xff]   ;;  %v381_v19 = vld [vmem:[%s539_s1 + $0x94] ss:$8 sps:$4 sm:$0xff]   ;;  %v383_v20 = vld [vmem:[%s539_s1 + $0x90] ss:$8 sps:$4 sm:$0xff]  }
   0x8   :  { %234 = vmatprep.subr.bf16.mxu0 %v360_v4  ;;  %v384_v21 = vld [vmem:[%s539_s1 + $0xa4] ss:$8 sps:$4 sm:$0xff]   ;;  %v386_v22 = vld [vmem:[%s539_s1 + $0xa0] ss:$8 sps:$4 sm:$0xff]   ;;  %v387_v23 = vld [vmem:[%s539_s1 + $0xb4] ss:$8 sps:$4 sm:$0xff]  }
   0x9   :  { %v389_v24 = vld [vmem:[%s539_s1 + $0xb0] ss:$8 sps:$4 sm:$0xff]   ;;  %v390_v25 = vld [vmem:[%s539_s1 + $0xc4] ss:$8 sps:$4 sm:$0xff]   ;;  %v392_v26 = vld [vmem:[%s539_s1 + $0xc0] ss:$8 sps:$4 sm:$0xff]  }
   0xa   :  { %v393_v27 = vld [vmem:[%s539_s1 + $0xd4] ss:$8 sps:$4 sm:$0xff]   ;;  %v395_v28 = vld [vmem:[%s539_s1 + $0xd0] ss:$8 sps:$4 sm:$0xff]   ;;  %v396_v29 = vld [vmem:[%s539_s1 + $0xe4] ss:$8 sps:$4 sm:$0xff]  }
   0xb   :  { %235 = vmatpush1.bf16.msra.mxu0 %v362_v5  ;;  %v398_v30 = vld [vmem:[%s539_s1 + $0xe0] ss:$8 sps:$4 sm:$0xff]   ;;  %v399_v31 = vld [vmem:[%s539_s1 + $0xf4] ss:$8 sps:$4 sm:$0xff]   ;;  %v401_v32 = vld [vmem:[%s539_s1 + $0xf0] ss:$8 sps:$4 sm:$0xff]  }
   0xc   :  { %236 = vmatprep.subr.bf16.mxu0 %v363_v6  ;;  %v402_v33 = vld [vmem:[%s540_s0] ss:$8 sps:$4 sm:$0xff]  }
   0xd   :  { %v288_v34 = vld [vmem:[%s541_s2] sm:$0xff]  ;;  %v289_v35 = vld [vmem:[%s541_s2 + $0x8] sm:$0xff] }
   0xe   :  { %v290_v36 = vunpack.c.l.bf16 %v288_v34  ;;  %v291_v37 = vunpack.c.h.bf16 %v288_v34  ;;  %v292_v38 = vunpack.c.l.bf16 %v289_v35  ;;  %v293_v40 = vunpack.c.h.bf16 %v289_v35 }
   0xf   :  { %237 = vmatpush1.bf16.msra.mxu0 %v365_v7 }
  0x10   :  { %238 = vmatprep.subr.bf16.mxu0 %v366_v8 }
  0x13   :  { %239 = vmatpush1.bf16.msra.mxu0 %v368_v9 }
  0x14   :  { %240 = vmatprep.subr.bf16.mxu0 %v369_v10 }
  0x17   :  { %241 = vmatpush1.bf16.msra.mxu0 %v371_v11 }
  0x18   :  { %242 = vmatprep.subr.bf16.mxu0 %v372_v12 }
  0x1b   :  { %243 = vmatpush1.bf16.msra.mxu0 %v374_v14 }
  0x1c   :  { %244 = vmatprep.subr.bf16.mxu0 %v375_v15 }
  0x1f   :  { %245 = vmatpush1.bf16.msra.mxu0 %v377_v16 }
  0x20   :  { %246 = vmatprep.subr.bf16.mxu0 %v378_v17 }
  0x23   :  { %247 = vmatpush1.bf16.msra.mxu0 %v380_v18 }
  0x24   :  { %248 = vmatprep.subr.bf16.mxu0 %v381_v19 }
  0x27   :  { %249 = vmatpush1.bf16.msra.mxu0 %v383_v20 }
  0x28   :  { %250 = vmatprep.subr.bf16.mxu0 %v384_v21 }
  0x2b   :  { %251 = vmatpush1.bf16.msra.mxu0 %v386_v22 }
  0x2c   :  { %252 = vmatprep.subr.bf16.mxu0 %v387_v23 }
  0x2f   :  { %253 = vmatpush1.bf16.msra.mxu0 %v389_v24 }
  0x30   :  { %254 = vmatprep.subr.bf16.mxu0 %v390_v25 }
  0x33   :  { %255 = vmatpush1.bf16.msra.mxu0 %v392_v26 }
  0x34   :  { %256 = vmatprep.subr.bf16.mxu0 %v393_v27 }
  0x37   :  { %257 = vmatpush1.bf16.msra.mxu0 %v395_v28 }
  0x38   :  { %258 = vmatprep.subr.bf16.mxu0 %v396_v29 }
  0x3b   :  { %259 = vmatpush1.bf16.msra.mxu0 %v398_v30 }
  0x3c   :  { %260 = vmatprep.subr.bf16.mxu0 %v399_v31 }
  0x3f   :  { %261 = vmatpush1.bf16.msra.mxu0 %v401_v32 }
  0x42   :  { %263 = vmatmul.mubr.bf16.vlgmr.msra.gmra.mrb[0].mxu0 %v402_v33 }
 0x115   :  { %v264_v39 = vpop.f32.mrb[0].mxu0 }
 0x116   :  { %v294_v41 = vadd.f32 %v290_v36, %v264_v39  ;;  %v266_v42 = vpop.f32.mrb[1].mxu0 }
 0x117   :  { %v295_v43 = vadd.f32 %v291_v37, %v266_v42  ;;  %v268_v44 = vpop.f32.mrb[2].mxu0 }
 0x118   :  { %v296_v45 = vadd.f32 %v292_v38, %v268_v44  ;;  %v270_v46 = vpop.f32.mrb[3].mxu0 }
 0x119   :  { %v352_v47 = vpack.c.bf16 %v295_v43, %v294_v41  ;;  %v297_v48 = vadd.f32 %v293_v40, %v270_v46 }
 0x11b   :  { %310 = vst [vmem:[%s542_s3] sm:$0xff] %v352_v47  ;;  %v353_v49 = vpack.c.bf16 %v297_v48, %v296_v45 }
 0x11d   :  { %311 = vst [vmem:[%s542_s3 + $0x8] sm:$0xff] %v353_v49 }

// kernel: _lambda_.21
= control target key start
LH: loop header
LB: loop body
LE: loop exit
PB: predicated region body
PF: predicated region fallthrough
CT: control target
= control target key end

     0   :  { %s1049_s24 = smov 0   ;;  %s1051_s25 = smov 0   ;;  %s1142_s0 = inlined_call_operand.vmem [shape: bf16[16,768], index: 0, kind: input, shape index: {}, may-alias: {0,1,2}]   ;;  %s1143_s1 = inlined_call_operand.vmem [shape: bf16[16,768], index: 1, kind: input, shape index: {}, may-alias: {0,1,2}]   ;;  %s1144_s2 = inlined_call_operand.vmem [shape: bf16[16,768], index: 2, kind: input, shape index: {}, may-alias: {0,1,2}]   ;;  %s1145_s3 = inlined_call_operand.vmem [shape: f32[8,128], index: 3, kind: input, shape index: {}, may-alias: {3,5}]   ;;  %s1146_s4 = inlined_call_operand.vmem [shape: f32[8,128], index: 4, kind: input, shape index: {}, may-alias: {4,6}]   ;;  %s1147_s5 = inlined_call_operand.vmem [shape: f32[8,128], index: 5, kind: input, shape index: {}, may-alias: {3,5}]   ;;  %s1148_s6 = inlined_call_operand.vmem [shape: f32[8,128], index: 6, kind: input, shape index: {}, may-alias: {4,6}]   ;;  %s1149_s7 = inlined_call_operand.vmem [shape: bf16[16,256], index: 7, kind: output, shape index: {}]  }
   0x1   :  { %s1053_s26 = smov 0   ;;  %s1055_s27 = smov 0  }
   0x2   :  { %s1057_s28 = smov 0  }
   0x3 LB: > { %s39_s29 = sadd.s32 1, %s993_s26  ;;  %s43_s30 = sadd.s32 1, %s997_s27  ;;  %s1001_s28 = sphi %s1057_s28, %s17_s28   ;;  %s997_s27 = sphi %s1055_s27, %s1153_s27   ;;  %s993_s26 = sphi %s1053_s26, %s1152_s26   ;;  %s989_s25 = sphi %s1051_s25, %s1151_s25   ;;  %s985_s24 = sphi %s1049_s24, %s1150_s24  }
   0x4   : > { %p41_p0 = scmp.ge.s32.totalorder %s39_s29, 2  ;;  %p883_p1 = scmp.ge.s32.totalorder %s1001_s28, 1 }
   0x5   : > { %p358_p2 = scmp.lt.s32.totalorder %s1001_s28, 5 }
   0x6   : > { %s1155_s29 = smov (%p41_p0, %s39_s29), 0  ;;  %s1157_s30 = smov (!%p41_p0, %s43_s30), %s997_s27 }
   0x7   : > { %p359_p3 = pnand %p883_p1, %p358_p2  ;;  %p45_p4 = scmp.ge.s32.totalorder %s1157_s30, 2 }
   0x8   : > { %p435_p5 = scmp.lt.s32.totalorder (!%p359_p3), %s989_s25, 1  ;;  %s445_s8 = sadd.s32 (!%p359_p3), 2, %s985_s24  ;;  %v1003_v0 = vmov (!%p359_p3), 0.0   ;;  %vm1004_vm0 = vmmov (!%p359_p3), 0   ;;  %v510_v5 = vlaneseq (!%p359_p3)  ;;  %v527_v7 = vld [vmem:[%s1147_s5] sm:$0xff] (!%p359_p3)  ;;  %v1006_v8 = vmov (!%p359_p3), 1.0  }
   0x9   : > { %s1159_s30 = smov (%p45_p4, %s1157_s30), 0  ;;  %362 = sbr.rel (%p359_p3) target bundleno = 953 (0x3b9), region = 48 }
   0xa   : > { %p448_p6 = scmp.lt.s32.totalorder (!%p359_p3), %s445_s8, 5  ;;  %p437_p7 = scmp.lt.s32.totalorder (!%p359_p3), %s985_s24, 5  ;;  %896 = vmatprep.subr.bf16.mxu0 (!%p359_p3), %v1003_v0  ;;  %902 = vmatprep.subr.bf16.mxu1 (!%p359_p3), %v1003_v0  ;;  %v511_v6 = vand.u32 (!%p359_p3), 127, %v510_v5  ;;  %v528_v10 = vld [vmem:[%s1148_s6] sm:$0xff] (!%p359_p3)  ;;  %vm499_vm2 = vcmask (!%p359_p3), 7168   ;;  %v1007_v26 = vmov (!%p359_p3), -inf  }
   0xb   : > { %898 = vmatprep.mubr.msk.bf16.mxu0 (!%p359_p3), %vm1004_vm0, %v1003_v0  ;;  %904 = vmatprep.mubr.msk.bf16.mxu1 (!%p359_p3), %vm1004_vm0, %v1003_v0  ;;  %s1005_s17 = smov (!%p359_p3), 64   ;;  %v516_v14 = vld [vmem:[%s1145_s3] sm:$0xff] (!%p359_p3)  ;;  %500 = vst.msk [vmem:[#allocation2] sm:$0xff] (!%p359_p3), %vm499_vm2, %v1007_v26  ;;  %501 = vst.msk [vmem:[#allocation3] sm:$0xff] (!%p359_p3), %vm499_vm2, %v1003_v0  ;;  %v578_v27 = vshrl.u32 (!%p359_p3), %v510_v5, 7  ;;  %vm586_vm4 = vcmask (!%p359_p3), 64512  }
   0xc   : > { %vm512_vm1 = vcmp.lt.s32.totalorder (!%p359_p3), %v511_v6, 64  ;;  %v517_v16 = vld [vmem:[%s1146_s4] sm:$0xff] (!%p359_p3)  ;;  %v1008_v34 = vmov (!%p359_p3), 0   ;;  %vm622_vm5 = vcmask (!%p359_p3), 1043456   ;;  %p487_p9 = scmp.lt.s32.totalorder (!%p359_p3), %s985_s24, 1 }
   0xd   : > { %v513_v9 = vsel (!%p359_p3), %vm512_vm1, -1.0, %v1006_v8  ;;  %vm583_vm3 = vcmp.le.s32.totalorder (!%p359_p3), %v511_v6, %v578_v27  ;;  %955 = vset.pattern.permute.xlu1 (!%p359_p3), %v1008_v34  ;;  %956 = vset.pattern.permute.xlu0 (!%p359_p3), %v1008_v34 }
  0x10   : > { %s1161_s25 = smov (!%p435_p5, %s989_s25), 1  ;;  %s1163_s8 = smov (!%p448_p6, %s445_s8), 5 }
  0x11   : > { %s1085_s9 = smul.u32 6, %s1161_s25 }
  0x12   : > { %s438_s15 = scalar_select %p437_p7, %s985_s24, 5  ;;  %v585_v35 = vld [vmem:[#allocation2] sm:$0xff]  ;;  %v602_v49 = vld [vmem:[#allocation3] sm:$0xff] }
  0x13   : > { %s451_s10 = sadd.s32 %s1085_s9, %s1163_s8 }
  0x14   : > { %s885_s11 = sshll.u32 %s451_s10, 2  ;;  %s440_s16 = sadd.s32 %s1085_s9, %s438_s15 }
  0x15   : > { %s453_s14 = scalar_lea.vmem %s1143_s1, %s885_s11  ;;  %s884_s18 = sshll.u32 %s440_s16, 2 }
  0x16   : > { %v525_v1 = vld [vmem:[%s453_s14] sm:$0xf]  ;;  %s442_s21 = scalar_lea.vmem %s1142_s0, %s884_s18  ;;  %s457_s15 = sadd.s32 4, %s985_s24 }
  0x17   : > { %v526_v2 = vunpack.c.l.bf16 %v525_v1  ;;  %v514_v3 = vld [vmem:[%s442_s21] sm:$0xf]  ;;  %p460_p8 = scmp.lt.s32.totalorder %s457_s15, 5  ;;  %s1167_s24 = smov (!%p487_p9, %s985_s24), 1 }
  0x18   : > { %v515_v4 = vunpack.c.l.bf16 %v514_v3 }
  0x19   : > { %530 = vrot.lane.b32.xlu0 %v526_v2, %s1005_s17  ;;  %v529_v12 = vmul.f32 %v527_v7, %v526_v2  ;;  %s1165_s15 = smov (!%p460_p8, %s457_s15), 5 }
  0x1a   : > { %v518_v19 = vmul.f32 %v516_v14, %v515_v4  ;;  %s463_s16 = sadd.s32 %s1085_s9, %s1165_s15  ;;  %s887_s9 = sshll.u32 %s1161_s25, 1 }
  0x1b   : > { %s490_s21 = sadd.s32 %s887_s9, %s1167_s24 }
  0x1c   : > { %s888_s22 = sshll.u32 %s490_s21, 2 }
  0x1d   : > { %519 = vrot.lane.b32.xlu0 %v515_v4, %s1005_s17  ;;  %s886_s17 = sshll.u32 %s463_s16, 2  ;;  %s492_s10 = scalar_lea.vmem %s1149_s7, %s888_s22 }
  0x1e   : > { %s465_s20 = scalar_lea.vmem %s1144_s2, %s886_s17 }
  0x1f   : > { %v618_v40 = vld [vmem:[%s465_s20] sm:$0xf] }
  0x20   : > { %v624_v41 = vsel %vm622_vm5, %v618_v40, 0 }
  0x21   : > { %903 = vmatpush3.bf16.msra.mxu1 %v624_v41 }
  0x8b   : > { %v531_v11 = vpop.permute.xlu0 %530 }
  0x8c   : > { %v532_v13 = vmul.f32 %v531_v11, %v513_v9 }
  0x8e   : > { %v533_v15 = vmul.f32 %v532_v13, %v528_v10 }
  0x8f   : > { %v520_v17 = vpop.permute.xlu0 %519 }
  0x90   : > { %v534_v18 = vadd.f32 %v533_v15, %v529_v12  ;;  %v521_v20 = vmul.f32 %v520_v17, %v513_v9 }
  0x92   : > { %v536_v21 = vpack.c.bf16 %v534_v18, %v534_v18  ;;  %v522_v22 = vmul.f32 %v521_v20, %v517_v16 }
  0x94   : > { %897 = vmatpush3.bf16.xpose.msra.mxu0 %v536_v21  ;;  %v523_v23 = vadd.f32 %v522_v22, %v518_v19 }
  0x96   : > { %v524_v24 = vmul.f32 0.088388346, %v523_v23 }
  0x98   : > { %v535_v25 = vpack.c.bf16 %v524_v24, %v524_v24 }
  0x9b   : > { %899 = vmatmul.mubr.bf16.vlgmr.msra.gmra.mrb[0].mxu0 %v535_v25 }
 0x16e   : > { %v571_v28 = vpop.f32.mrb[0].mxu0 }
 0x16f   : > { %v584_v29 = vsel %vm583_vm3, %v571_v28, -1e+30  ;;  %v900_v30 = vpop.f32.mrb[1].mxu0 }
 0x170   : > { %v574_v31 = vpop.f32.mrb[2].mxu0  ;;  %v587_v32 = vsel %vm586_vm4, %v584_v29, -inf }
 0x171   : > { %588 = vmax.xlane.f32.xlu1 %v587_v32  ;;  %v901_v33 = vpop.f32.mrb[3].mxu0 }
 0x1fe   : > { %v589_v36 = vpop.xlane.xlu1 %588 }
 0x1ff   : > { %v590_v37 = vmax.f32 %v585_v35, %v589_v36 }
 0x201   : > { %v591_v38 = vsub.f32 %v585_v35, %v590_v37  ;;  %668 = vst.msk [vmem:[#allocation2] sm:$0xff] %vm499_vm2, %v590_v37  ;;  %596 = vperm.xlu1 %955, %v590_v37  }
 0x203   : > { %v592_v39 = vmul.f32 1.442695, %v591_v38 }
 0x205   : > { %957 = vpow2.f32 %v592_v39 }
 0x20f   : > { %v958_v42 = vpop.eup %957 }
 0x210   : > { %613 = vperm.xlu1 %955, %v958_v42   ;;  %v603_v50 = vmul.f32 %v958_v42, %v602_v49 }
 0x280   : > { %v597_v43 = vpop.permute.xlu1 %596 }
 0x281   : > { %v599_v44 = vsub.f32 %v584_v29, %v597_v43 }
 0x283   : > { %v600_v45 = vmul.f32 1.442695, %v599_v44 }
 0x285   : > { %959 = vpow2.f32 %v600_v45 }
 0x28f   : > { %v960_v46 = vpop.eup %959  ;;  %v614_v59 = vpop.permute.xlu1 %613 }
 0x290   : > { %v604_v47 = vsel %vm586_vm4, %v960_v46, 0.0  ;;  %v617_v48 = vpack.c.bf16 %v960_v46, %v960_v46  ;;  %v616_v60 = vmul.f32 0.0, %v614_v59 }
 0x291   : > { %605 = vadd.xlane.f32.xlu0 %v604_v47 }
 0x292   : > { %905 = vmatmul.mubr.msk.bf16.vlgmr.msra.gmra.mrb[0].mxu1 %vm586_vm4, %v617_v48 }
 0x31e   : > { %v606_v51 = vpop.xlane.xlu0 %605 }
 0x31f   : > { %v607_v52 = vadd.f32 %v606_v51, %v603_v50 }
 0x321   : > { %609 = vst.msk [vmem:[#allocation3] sm:$0xff] %vm499_vm2, %v607_v52 }
 0x328   : > { %v673_v53 = vld [vmem:[#allocation3] sm:$0xff] }
 0x329   : > { %961 = vrcp.f32 %v673_v53 }
 0x333   : > { %v962_v54 = vpop.eup %961 }
 0x334   : > { %677 = vperm.xlu1 %955, %v962_v54  }
 0x365   : > { %v660_v55 = vpop.f32.mrb[0].mxu1 }
 0x366   : > { %v906_v56 = vpop.f32.mrb[1].mxu1  ;;  %v666_v61 = vadd.f32 %v660_v55, %v616_v60 }
 0x367   : > { %v663_v57 = vpop.f32.mrb[2].mxu1 }
 0x368   : > { %v907_v58 = vpop.f32.mrb[3].mxu1 }
 0x3b3   : > { %v678_v62 = vpop.permute.xlu1 %677 }
 0x3b4   : > { %v680_v63 = vmul.f32 %v678_v62, %v666_v61 }
 0x3b6   : > { %v681_v0 = vpack.c.bf16 %v680_v63, %v680_v63 }
 0x3b8   : > { %682 = vst [vmem:[%s492_s10] sm:$0xf] %v681_v0 }
 0x3b9 PF: > { %s17_s28 = sadd.s32 1, %s1001_s28   ;;  %s1150_s24 = smov %s993_s26 }
 0x3ba   : > { %p14_p10 = scmp.ge.s32.totalorder %s17_s28, 6   ;;  %s1151_s25 = smov %s997_s27 }
 0x3bb   : > { %s1152_s26 = smov %s1155_s29  ;;  %s1153_s27 = smov %s1159_s30 }
 0x3bc   :  { %16 = sbr.rel (!%p14_p10) target bundleno = 3 (0x3), region = 108 }

// kernel: _lambda_.35
= control target key start
LH: loop header
LB: loop body
LE: loop exit
PB: predicated region body
PF: predicated region fallthrough
CT: control target
= control target key end

     0   :  { %s1400_s12 = smov 0   ;;  %s1402_s13 = smov 0   ;;  %s1702_s0 = inlined_call_operand.vmem [shape: bf16[16,256], index: 0, kind: input, shape index: {}]   ;;  %s1703_s1 = inlined_call_operand.vmem [shape: bf16[256,2048], index: 1, kind: input, shape index: {}]   ;;  %s1704_s2 = inlined_call_operand.vmem [shape: f32[1,2048], index: 2, kind: input, shape index: {}]   ;;  %s1705_s3 = inlined_call_operand.vmem [shape: f32[16,2048], index: 3, kind: output, shape index: {}]  }
   0x1   :  { %s1404_s14 = smov 0   ;;  %s1406_s15 = smov 0  }
   0x2   :  { %s1408_s16 = smov 0  }
   0x3 LB: > { %s28_s17 = sadd.s32 1, %s1374_s15  ;;  %s1116_s18 = sadd.s32 4294967295, %s1378_s16   ;;  %s1378_s16 = sphi %s1408_s16, %s13_s16   ;;  %s1374_s15 = sphi %s1406_s15, %s1710_s15   ;;  %s1370_s14 = sphi %s1404_s14, %s1709_s14   ;;  %s1366_s13 = sphi %s1402_s13, %s1708_s13   ;;  %s1362_s12 = sphi %s1400_s12, %s1707_s12  }
   0x4   : > { %p30_p0 = scmp.ge.s32.totalorder %s28_s17, 4  ;;  %p76_p1 = scmp.ne.s32.totalorder %s1366_s13, %s1362_s12 }
   0x5   : > { %p77_p2 = scmp.eq.s32.totalorder %s1378_s16, 0  ;;  %p134_p4 = scmp.eq.s32.totalorder %s1116_s18, 3 }
   0x6   : > { %s1712_s17 = smov (%p30_p0, %s28_s17), 0  ;;  %s69_s20 = sadd.s32 1, %s1366_s13 }
   0x7   : > { %p78_p3 = por %p77_p2, %p76_p1  ;;  %s65_s19 = ssub.s32 %s1374_s15, %s1712_s17 }
   0x8   : > { %p67_p5 = scmp.eq.s32.totalorder %s65_s19, 0  ;;  %p1435_p6 = por %p134_p4, %p76_p1 }
   0x9   : > { %p1120_p7 = scmp.ge.s32.totalorder %s1378_s16, 4 }
   0xa   : > { %s1440_s22 = scalar_select %p67_p5, %s1366_s13, %s69_s20  }
   0xb   : > { %171 = sbr.rel (%p1120_p7) target bundleno = 54 (0x36), region = 20 }
  0x12   : > { %174 = sbr.rel (!%p78_p3) target bundleno = 54 (0x36), region = 24  ;;  %s176_s23 = sand.u32 (%p78_p3), 1, %s1366_s13  }
  0x13   : > { %s1199_s24 = sshll.u32 (%p78_p3), %s1374_s15, 4  ;;  %s1121_s25 = sshll.u32 (%p78_p3), %s176_s23, 9 }
  0x14   : > { %s1448_s28 = scalar_lea.vmem (%p78_p3), %s1703_s1, %s1199_s24  ;;  %s1453_s29 = scalar_lea.vmem (%p78_p3), [#allocation3], %s1121_s25 }
  0x15   : > { %v197_v0 = vld [vmem:[%s1448_s28] sm:$0xff] (%p78_p3)  ;;  %v199_v1 = vld [vmem:[%s1448_s28 + $0x8] sm:$0xff] (%p78_p3) }
  0x16   : > { %v201_v2 = vld [vmem:[%s1448_s28 + $0x40] sm:$0xff] (%p78_p3)  ;;  %198 = vst [vmem:[%s1453_s29] sm:$0xff] (%p78_p3), %v197_v0  ;;  %200 = vst [vmem:[%s1453_s29 + $0x8] sm:$0xff] (%p78_p3), %v199_v1  ;;  %v203_v3 = vld [vmem:[%s1448_s28 + $0x48] sm:$0xff] (%p78_p3) }
  0x17   : > { %202 = vst [vmem:[%s1453_s29 + $0x10] sm:$0xff] (%p78_p3), %v201_v2  ;;  %v205_v4 = vld [vmem:[%s1448_s28 + $0x80] sm:$0xff] (%p78_p3)  ;;  %v207_v5 = vld [vmem:[%s1448_s28 + $0x88] sm:$0xff] (%p78_p3)  ;;  %204 = vst [vmem:[%s1453_s29 + $0x18] sm:$0xff] (%p78_p3), %v203_v3 }
  0x18   : > { %206 = vst [vmem:[%s1453_s29 + $0x20] sm:$0xff] (%p78_p3), %v205_v4  ;;  %208 = vst [vmem:[%s1453_s29 + $0x28] sm:$0xff] (%p78_p3), %v207_v5  ;;  %v209_v6 = vld [vmem:[%s1448_s28 + $0xc0] sm:$0xff] (%p78_p3)  ;;  %v211_v7 = vld [vmem:[%s1448_s28 + $0xc8] sm:$0xff] (%p78_p3) }
  0x19   : > { %v213_v8 = vld [vmem:[%s1448_s28 + $0x100] sm:$0xff]  ;;  %210 = vst [vmem:[%s1453_s29 + $0x30] sm:$0xff] %v209_v6  ;;  %212 = vst [vmem:[%s1453_s29 + $0x38] sm:$0xff] %v211_v7  ;;  %v215_v9 = vld [vmem:[%s1448_s28 + $0x108] sm:$0xff] }
  0x1a   : > { %214 = vst [vmem:[%s1453_s29 + $0x40] sm:$0xff] %v213_v8  ;;  %v217_v10 = vld [vmem:[%s1448_s28 + $0x140] sm:$0xff]  ;;  %v219_v11 = vld [vmem:[%s1448_s28 + $0x148] sm:$0xff]  ;;  %216 = vst [vmem:[%s1453_s29 + $0x48] sm:$0xff] %v215_v9 }
  0x1b   : > { %218 = vst [vmem:[%s1453_s29 + $0x50] sm:$0xff] %v217_v10  ;;  %220 = vst [vmem:[%s1453_s29 + $0x58] sm:$0xff] %v219_v11  ;;  %v221_v12 = vld [vmem:[%s1448_s28 + $0x180] sm:$0xff]  ;;  %v223_v13 = vld [vmem:[%s1448_s28 + $0x188] sm:$0xff] }
  0x1c   : > { %v225_v14 = vld [vmem:[%s1448_s28 + $0x1c0] sm:$0xff]  ;;  %222 = vst [vmem:[%s1453_s29 + $0x60] sm:$0xff] %v221_v12  ;;  %224 = vst [vmem:[%s1453_s29 + $0x68] sm:$0xff] %v223_v13  ;;  %v227_v15 = vld [vmem:[%s1448_s28 + $0x1c8] sm:$0xff] }
  0x1d   : > { %226 = vst [vmem:[%s1453_s29 + $0x70] sm:$0xff] %v225_v14  ;;  %v229_v16 = vld [vmem:[%s1448_s28 + $0x200] sm:$0xff]  ;;  %v231_v17 = vld [vmem:[%s1448_s28 + $0x208] sm:$0xff]  ;;  %228 = vst [vmem:[%s1453_s29 + $0x78] sm:$0xff] %v227_v15 }
  0x1e   : > { %230 = vst [vmem:[%s1453_s29 + $0x80] sm:$0xff] %v229_v16  ;;  %232 = vst [vmem:[%s1453_s29 + $0x88] sm:$0xff] %v231_v17  ;;  %v233_v18 = vld [vmem:[%s1448_s28 + $0x240] sm:$0xff]  ;;  %v235_v19 = vld [vmem:[%s1448_s28 + $0x248] sm:$0xff] }
  0x1f   : > { %v237_v20 = vld [vmem:[%s1448_s28 + $0x280] sm:$0xff]  ;;  %234 = vst [vmem:[%s1453_s29 + $0x90] sm:$0xff] %v233_v18  ;;  %236 = vst [vmem:[%s1453_s29 + $0x98] sm:$0xff] %v235_v19  ;;  %v239_v21 = vld [vmem:[%s1448_s28 + $0x288] sm:$0xff] }
  0x20   : > { %238 = vst [vmem:[%s1453_s29 + $0xa0] sm:$0xff] %v237_v20  ;;  %v241_v22 = vld [vmem:[%s1448_s28 + $0x2c0] sm:$0xff]  ;;  %v243_v23 = vld [vmem:[%s1448_s28 + $0x2c8] sm:$0xff]  ;;  %240 = vst [vmem:[%s1453_s29 + $0xa8] sm:$0xff] %v239_v21 }
  0x21   : > { %242 = vst [vmem:[%s1453_s29 + $0xb0] sm:$0xff] %v241_v22  ;;  %244 = vst [vmem:[%s1453_s29 + $0xb8] sm:$0xff] %v243_v23  ;;  %v245_v24 = vld [vmem:[%s1448_s28 + $0x300] sm:$0xff]  ;;  %v247_v25 = vld [vmem:[%s1448_s28 + $0x308] sm:$0xff] }
  0x22   : > { %v249_v26 = vld [vmem:[%s1448_s28 + $0x340] sm:$0xff]  ;;  %246 = vst [vmem:[%s1453_s29 + $0xc0] sm:$0xff] %v245_v24  ;;  %248 = vst [vmem:[%s1453_s29 + $0xc8] sm:$0xff] %v247_v25  ;;  %v251_v27 = vld [vmem:[%s1448_s28 + $0x348] sm:$0xff] }
  0x23   : > { %250 = vst [vmem:[%s1453_s29 + $0xd0] sm:$0xff] %v249_v26  ;;  %v253_v28 = vld [vmem:[%s1448_s28 + $0x380] sm:$0xff]  ;;  %v255_v29 = vld [vmem:[%s1448_s28 + $0x388] sm:$0xff]  ;;  %252 = vst [vmem:[%s1453_s29 + $0xd8] sm:$0xff] %v251_v27 }
  0x24   : > { %254 = vst [vmem:[%s1453_s29 + $0xe0] sm:$0xff] %v253_v28  ;;  %256 = vst [vmem:[%s1453_s29 + $0xe8] sm:$0xff] %v255_v29  ;;  %v257_v30 = vld [vmem:[%s1448_s28 + $0x3c0] sm:$0xff]  ;;  %v259_v31 = vld [vmem:[%s1448_s28 + $0x3c8] sm:$0xff] }
  0x25   : > { %v261_v32 = vld [vmem:[%s1448_s28 + $0x400] sm:$0xff]  ;;  %258 = vst [vmem:[%s1453_s29 + $0xf0] sm:$0xff] %v257_v30  ;;  %260 = vst [vmem:[%s1453_s29 + $0xf8] sm:$0xff] %v259_v31  ;;  %v263_v33 = vld [vmem:[%s1448_s28 + $0x408] sm:$0xff] }
  0x26   : > { %262 = vst [vmem:[%s1453_s29 + $0x100] sm:$0xff] %v261_v32  ;;  %v265_v34 = vld [vmem:[%s1448_s28 + $0x440] sm:$0xff]  ;;  %v267_v35 = vld [vmem:[%s1448_s28 + $0x448] sm:$0xff]  ;;  %264 = vst [vmem:[%s1453_s29 + $0x108] sm:$0xff] %v263_v33 }
  0x27   : > { %266 = vst [vmem:[%s1453_s29 + $0x110] sm:$0xff] %v265_v34  ;;  %268 = vst [vmem:[%s1453_s29 + $0x118] sm:$0xff] %v267_v35  ;;  %v269_v36 = vld [vmem:[%s1448_s28 + $0x480] sm:$0xff]  ;;  %v271_v37 = vld [vmem:[%s1448_s28 + $0x488] sm:$0xff] }
  0x28   : > { %v273_v38 = vld [vmem:[%s1448_s28 + $0x4c0] sm:$0xff]  ;;  %270 = vst [vmem:[%s1453_s29 + $0x120] sm:$0xff] %v269_v36  ;;  %272 = vst [vmem:[%s1453_s29 + $0x128] sm:$0xff] %v271_v37  ;;  %v275_v39 = vld [vmem:[%s1448_s28 + $0x4c8] sm:$0xff] }
  0x29   : > { %274 = vst [vmem:[%s1453_s29 + $0x130] sm:$0xff] %v273_v38  ;;  %v277_v40 = vld [vmem:[%s1448_s28 + $0x500] sm:$0xff]  ;;  %v279_v41 = vld [vmem:[%s1448_s28 + $0x508] sm:$0xff]  ;;  %276 = vst [vmem:[%s1453_s29 + $0x138] sm:$0xff] %v275_v39 }
  0x2a   : > { %278 = vst [vmem:[%s1453_s29 + $0x140] sm:$0xff] %v277_v40  ;;  %280 = vst [vmem:[%s1453_s29 + $0x148] sm:$0xff] %v279_v41  ;;  %v281_v42 = vld [vmem:[%s1448_s28 + $0x540] sm:$0xff]  ;;  %v283_v43 = vld [vmem:[%s1448_s28 + $0x548] sm:$0xff] }
  0x2b   : > { %v285_v44 = vld [vmem:[%s1448_s28 + $0x580] sm:$0xff]  ;;  %282 = vst [vmem:[%s1453_s29 + $0x150] sm:$0xff] %v281_v42  ;;  %284 = vst [vmem:[%s1453_s29 + $0x158] sm:$0xff] %v283_v43  ;;  %v287_v45 = vld [vmem:[%s1448_s28 + $0x588] sm:$0xff] }
  0x2c   : > { %286 = vst [vmem:[%s1453_s29 + $0x160] sm:$0xff] %v285_v44  ;;  %v289_v46 = vld [vmem:[%s1448_s28 + $0x5c0] sm:$0xff]  ;;  %v291_v47 = vld [vmem:[%s1448_s28 + $0x5c8] sm:$0xff]  ;;  %288 = vst [vmem:[%s1453_s29 + $0x168] sm:$0xff] %v287_v45 }
  0x2d   : > { %290 = vst [vmem:[%s1453_s29 + $0x170] sm:$0xff] %v289_v46  ;;  %292 = vst [vmem:[%s1453_s29 + $0x178] sm:$0xff] %v291_v47  ;;  %v293_v48 = vld [vmem:[%s1448_s28 + $0x600] sm:$0xff]  ;;  %v295_v49 = vld [vmem:[%s1448_s28 + $0x608] sm:$0xff] }
  0x2e   : > { %v297_v50 = vld [vmem:[%s1448_s28 + $0x640] sm:$0xff]  ;;  %294 = vst [vmem:[%s1453_s29 + $0x180] sm:$0xff] %v293_v48  ;;  %296 = vst [vmem:[%s1453_s29 + $0x188] sm:$0xff] %v295_v49  ;;  %v299_v51 = vld [vmem:[%s1448_s28 + $0x648] sm:$0xff] }
  0x2f   : > { %298 = vst [vmem:[%s1453_s29 + $0x190] sm:$0xff] %v297_v50  ;;  %v301_v52 = vld [vmem:[%s1448_s28 + $0x680] sm:$0xff]  ;;  %v303_v53 = vld [vmem:[%s1448_s28 + $0x688] sm:$0xff]  ;;  %300 = vst [vmem:[%s1453_s29 + $0x198] sm:$0xff] %v299_v51 }
  0x30   : > { %302 = vst [vmem:[%s1453_s29 + $0x1a0] sm:$0xff] %v301_v52  ;;  %304 = vst [vmem:[%s1453_s29 + $0x1a8] sm:$0xff] %v303_v53  ;;  %v305_v54 = vld [vmem:[%s1448_s28 + $0x6c0] sm:$0xff]  ;;  %v307_v55 = vld [vmem:[%s1448_s28 + $0x6c8] sm:$0xff] }
  0x31   : > { %v309_v56 = vld [vmem:[%s1448_s28 + $0x700] sm:$0xff]  ;;  %306 = vst [vmem:[%s1453_s29 + $0x1b0] sm:$0xff] %v305_v54  ;;  %308 = vst [vmem:[%s1453_s29 + $0x1b8] sm:$0xff] %v307_v55  ;;  %v311_v57 = vld [vmem:[%s1448_s28 + $0x708] sm:$0xff] }
  0x32   : > { %310 = vst [vmem:[%s1453_s29 + $0x1c0] sm:$0xff] %v309_v56  ;;  %v313_v58 = vld [vmem:[%s1448_s28 + $0x740] sm:$0xff]  ;;  %v315_v59 = vld [vmem:[%s1448_s28 + $0x748] sm:$0xff]  ;;  %312 = vst [vmem:[%s1453_s29 + $0x1c8] sm:$0xff] %v311_v57 }
  0x33   : > { %314 = vst [vmem:[%s1453_s29 + $0x1d0] sm:$0xff] %v313_v58  ;;  %316 = vst [vmem:[%s1453_s29 + $0x1d8] sm:$0xff] %v315_v59  ;;  %v317_v60 = vld [vmem:[%s1448_s28 + $0x780] sm:$0xff]  ;;  %v319_v61 = vld [vmem:[%s1448_s28 + $0x788] sm:$0xff] }
  0x34   : > { %v321_v62 = vld [vmem:[%s1448_s28 + $0x7c0] sm:$0xff]  ;;  %318 = vst [vmem:[%s1453_s29 + $0x1e0] sm:$0xff] %v317_v60  ;;  %320 = vst [vmem:[%s1453_s29 + $0x1e8] sm:$0xff] %v319_v61  ;;  %v323_v63 = vld [vmem:[%s1448_s28 + $0x7c8] sm:$0xff] }
  0x35   : > { %322 = vst [vmem:[%s1453_s29 + $0x1f0] sm:$0xff] %v321_v62  ;;  %324 = vst [vmem:[%s1453_s29 + $0x1f8] sm:$0xff] %v323_v63 }
  0x36 PF: > { %p1124_p8 = scmp.ge.s32.totalorder %s1378_s16, 1  ;;  %p337_p9 = scmp.lt.s32.totalorder %s1378_s16, 5 }
  0x38   : > { %p338_p10 = pnand %p1124_p8, %p337_p9 }
  0x39   : > { %s344_s30 = sand.u32 (!%p338_p10), 1, %s1362_s12   ;;  %v1339_v0 = vld [vmem:[%s1702_s0 + $0x4] ss:$8 sps:$4 sm:$0xff] (!%p338_p10)   ;;  %s1127_s10 = sshll.u32 (!%p338_p10), %s1370_s14, 2 }
  0x3a   : > { %341 = sbr.rel (%p338_p10) target bundleno = 351 (0x15f), region = 51  ;;  %s1125_s4 = sshll.u32 (!%p338_p10), %s344_s30, 9  ;;  %849 = vmatprep.mubr.bf16.mxu0 (!%p338_p10), %v1339_v0  ;;  %892 = vmatprep.mubr.bf16.mxu1 (!%p338_p10), %v1339_v0 }
  0x3b   : > { %s1588_s7 = scalar_lea.vmem (!%p338_p10), [#allocation3], %s1125_s4  ;;  %p395_p11 = scmp.lt.s32.totalorder (!%p338_p10), %s1127_s10, 15 }
  0x3c   : > { %v1241_v1 = vld [vmem:[%s1588_s7 + $0x4] ss:$16 sps:$4 sm:$0xff] (!%p338_p10)   ;;  %v1243_v2 = vld [vmem:[%s1588_s7 + $0xc] ss:$16 sps:$4 sm:$0xff] (!%p338_p10)   ;;  %v1245_v3 = vld [vmem:[%s1588_s7] ss:$16 sps:$4 sm:$0xff] (!%p338_p10)  }
  0x3d   : > { %817 = vmatprep.subr.bf16.mxu0 (!%p338_p10), %v1241_v1  ;;  %v1246_v4 = vld [vmem:[%s1588_s7 + $0x8] ss:$16 sps:$4 sm:$0xff] (!%p338_p10)   ;;  %860 = vmatprep.subr.bf16.mxu1 (!%p338_p10), %v1243_v2  ;;  %v1247_v5 = vld [vmem:[%s1588_s7 + $0x24] ss:$16 sps:$4 sm:$0xff] (!%p338_p10)   ;;  %v1249_v6 = vld [vmem:[%s1588_s7 + $0x2c] ss:$16 sps:$4 sm:$0xff] (!%p338_p10)   ;;  %v932_v2 = vlaneseq (!%p338_p10) }
  0x3e   : > { %818 = vmatpush1.bf16.msra.mxu0 (!%p338_p10), %v1245_v3  ;;  %861 = vmatpush1.bf16.msra.mxu1 (!%p338_p10), %v1246_v4  ;;  %v1251_v7 = vld [vmem:[%s1588_s7 + $0x20] ss:$16 sps:$4 sm:$0xff] (!%p338_p10)   ;;  %v1252_v8 = vld [vmem:[%s1588_s7 + $0x28] ss:$16 sps:$4 sm:$0xff] (!%p338_p10)   ;;  %v1253_v9 = vld [vmem:[%s1588_s7 + $0x44] ss:$16 sps:$4 sm:$0xff] (!%p338_p10)  }
  0x3f   : > { %819 = vmatprep.subr.bf16.mxu0 (!%p338_p10), %v1247_v5  ;;  %862 = vmatprep.subr.bf16.mxu1 (!%p338_p10), %v1249_v6  ;;  %v1255_v10 = vld [vmem:[%s1588_s7 + $0x4c] ss:$16 sps:$4 sm:$0xff] (!%p338_p10)   ;;  %v1257_v11 = vld [vmem:[%s1588_s7 + $0x40] ss:$16 sps:$4 sm:$0xff] (!%p338_p10)   ;;  %v1258_v12 = vld [vmem:[%s1588_s7 + $0x48] ss:$16 sps:$4 sm:$0xff] (!%p338_p10)  }
  0x40   : > { %v1259_v13 = vld [vmem:[%s1588_s7 + $0x64] ss:$16 sps:$4 sm:$0xff] (!%p338_p10)   ;;  %v1261_v14 = vld [vmem:[%s1588_s7 + $0x6c] ss:$16 sps:$4 sm:$0xff] (!%p338_p10)   ;;  %v1263_v15 = vld [vmem:[%s1588_s7 + $0x60] ss:$16 sps:$4 sm:$0xff] (!%p338_p10)  }
  0x41   : > { %v1264_v16 = vld [vmem:[%s1588_s7 + $0x68] ss:$16 sps:$4 sm:$0xff]   ;;  %v1265_v17 = vld [vmem:[%s1588_s7 + $0x84] ss:$16 sps:$4 sm:$0xff]   ;;  %v1267_v18 = vld [vmem:[%s1588_s7 + $0x8c] ss:$16 sps:$4 sm:$0xff]  }
  0x42   : > { %820 = vmatpush1.bf16.msra.mxu0 %v1251_v7  ;;  %863 = vmatpush1.bf16.msra.mxu1 %v1252_v8  ;;  %v1269_v19 = vld [vmem:[%s1588_s7 + $0x80] ss:$16 sps:$4 sm:$0xff]   ;;  %v1270_v20 = vld [vmem:[%s1588_s7 + $0x88] ss:$16 sps:$4 sm:$0xff]   ;;  %v1271_v21 = vld [vmem:[%s1588_s7 + $0xa4] ss:$16 sps:$4 sm:$0xff]  }
  0x43   : > { %821 = vmatprep.subr.bf16.mxu0 %v1253_v9  ;;  %864 = vmatprep.subr.bf16.mxu1 %v1255_v10  ;;  %v1273_v22 = vld [vmem:[%s1588_s7 + $0xac] ss:$16 sps:$4 sm:$0xff]   ;;  %v1275_v23 = vld [vmem:[%s1588_s7 + $0xa0] ss:$16 sps:$4 sm:$0xff]   ;;  %v1276_v24 = vld [vmem:[%s1588_s7 + $0xa8] ss:$16 sps:$4 sm:$0xff]  }
  0x44   : > { %v1277_v25 = vld [vmem:[%s1588_s7 + $0xc4] ss:$16 sps:$4 sm:$0xff]   ;;  %v1279_v26 = vld [vmem:[%s1588_s7 + $0xcc] ss:$16 sps:$4 sm:$0xff]   ;;  %v1281_v27 = vld [vmem:[%s1588_s7 + $0xc0] ss:$16 sps:$4 sm:$0xff]  }
  0x45   : > { %v1282_v28 = vld [vmem:[%s1588_s7 + $0xc8] ss:$16 sps:$4 sm:$0xff]   ;;  %v1283_v29 = vld [vmem:[%s1588_s7 + $0xe4] ss:$16 sps:$4 sm:$0xff]   ;;  %v1285_v30 = vld [vmem:[%s1588_s7 + $0xec] ss:$16 sps:$4 sm:$0xff]  }
  0x46   : > { %822 = vmatpush1.bf16.msra.mxu0 %v1257_v11  ;;  %865 = vmatpush1.bf16.msra.mxu1 %v1258_v12  ;;  %v1287_v31 = vld [vmem:[%s1588_s7 + $0xe0] ss:$16 sps:$4 sm:$0xff]   ;;  %v1288_v32 = vld [vmem:[%s1588_s7 + $0xe8] ss:$16 sps:$4 sm:$0xff]   ;;  %v1289_v33 = vld [vmem:[%s1588_s7 + $0x104] ss:$16 sps:$4 sm:$0xff]  }
  0x47   : > { %823 = vmatprep.subr.bf16.mxu0 %v1259_v13  ;;  %866 = vmatprep.subr.bf16.mxu1 %v1261_v14  ;;  %v1291_v34 = vld [vmem:[%s1588_s7 + $0x10c] ss:$16 sps:$4 sm:$0xff]   ;;  %v1293_v35 = vld [vmem:[%s1588_s7 + $0x100] ss:$16 sps:$4 sm:$0xff]   ;;  %v1294_v36 = vld [vmem:[%s1588_s7 + $0x108] ss:$16 sps:$4 sm:$0xff]  }
  0x48   : > { %v1295_v37 = vld [vmem:[%s1588_s7 + $0x124] ss:$16 sps:$4 sm:$0xff]   ;;  %v1297_v38 = vld [vmem:[%s1588_s7 + $0x12c] ss:$16 sps:$4 sm:$0xff]   ;;  %v1299_v39 = vld [vmem:[%s1588_s7 + $0x120] ss:$16 sps:$4 sm:$0xff]  }
  0x49   : > { %v1300_v40 = vld [vmem:[%s1588_s7 + $0x128] ss:$16 sps:$4 sm:$0xff]   ;;  %v1301_v41 = vld [vmem:[%s1588_s7 + $0x144] ss:$16 sps:$4 sm:$0xff]   ;;  %v1303_v42 = vld [vmem:[%s1588_s7 + $0x14c] ss:$16 sps:$4 sm:$0xff]  }
  0x4a   : > { %824 = vmatpush1.bf16.msra.mxu0 %v1263_v15  ;;  %867 = vmatpush1.bf16.msra.mxu1 %v1264_v16  ;;  %v1305_v43 = vld [vmem:[%s1588_s7 + $0x140] ss:$16 sps:$4 sm:$0xff]   ;;  %v1306_v44 = vld [vmem:[%s1588_s7 + $0x148] ss:$16 sps:$4 sm:$0xff]   ;;  %v1307_v45 = vld [vmem:[%s1588_s7 + $0x164] ss:$16 sps:$4 sm:$0xff]  }
  0x4b   : > { %825 = vmatprep.subr.bf16.mxu0 %v1265_v17  ;;  %868 = vmatprep.subr.bf16.mxu1 %v1267_v18  ;;  %v1309_v46 = vld [vmem:[%s1588_s7 + $0x16c] ss:$16 sps:$4 sm:$0xff]   ;;  %v1311_v47 = vld [vmem:[%s1588_s7 + $0x160] ss:$16 sps:$4 sm:$0xff]   ;;  %v1312_v48 = vld [vmem:[%s1588_s7 + $0x168] ss:$16 sps:$4 sm:$0xff]  }
  0x4c   : > { %v1313_v49 = vld [vmem:[%s1588_s7 + $0x184] ss:$16 sps:$4 sm:$0xff]   ;;  %v1315_v50 = vld [vmem:[%s1588_s7 + $0x18c] ss:$16 sps:$4 sm:$0xff]   ;;  %v1317_v51 = vld [vmem:[%s1588_s7 + $0x180] ss:$16 sps:$4 sm:$0xff]  }
  0x4d   : > { %v1318_v52 = vld [vmem:[%s1588_s7 + $0x188] ss:$16 sps:$4 sm:$0xff]   ;;  %v1319_v53 = vld [vmem:[%s1588_s7 + $0x1a4] ss:$16 sps:$4 sm:$0xff]   ;;  %v1321_v54 = vld [vmem:[%s1588_s7 + $0x1ac] ss:$16 sps:$4 sm:$0xff]  }
  0x4e   : > { %826 = vmatpush1.bf16.msra.mxu0 %v1269_v19  ;;  %869 = vmatpush1.bf16.msra.mxu1 %v1270_v20  ;;  %v1323_v55 = vld [vmem:[%s1588_s7 + $0x1a0] ss:$16 sps:$4 sm:$0xff]   ;;  %v1324_v56 = vld [vmem:[%s1588_s7 + $0x1a8] ss:$16 sps:$4 sm:$0xff]   ;;  %v1325_v57 = vld [vmem:[%s1588_s7 + $0x1c4] ss:$16 sps:$4 sm:$0xff]  }
  0x4f   : > { %827 = vmatprep.subr.bf16.mxu0 %v1271_v21  ;;  %870 = vmatprep.subr.bf16.mxu1 %v1273_v22  ;;  %v1327_v58 = vld [vmem:[%s1588_s7 + $0x1cc] ss:$16 sps:$4 sm:$0xff]   ;;  %v1329_v59 = vld [vmem:[%s1588_s7 + $0x1c0] ss:$16 sps:$4 sm:$0xff]   ;;  %v1330_v60 = vld [vmem:[%s1588_s7 + $0x1c8] ss:$16 sps:$4 sm:$0xff]  }
  0x50   : > { %v1331_v61 = vld [vmem:[%s1588_s7 + $0x1e4] ss:$16 sps:$4 sm:$0xff]   ;;  %v1333_v62 = vld [vmem:[%s1588_s7 + $0x1ec] ss:$16 sps:$4 sm:$0xff]   ;;  %v1335_v63 = vld [vmem:[%s1588_s7 + $0x1e0] ss:$16 sps:$4 sm:$0xff]  }
  0x51   : > { %v1336_v0 = vld [vmem:[%s1588_s7 + $0x1e8] ss:$16 sps:$4 sm:$0xff]   ;;  %s1714_s10 = smov (!%p395_p11, %s1127_s10), 15  ;;  %v933_v3 = vshrl.u32 %v932_v2, 7  ;;  %s1126_s20 = sshll.u32 %s344_s30, 6 }
  0x52   : > { %828 = vmatpush1.bf16.msra.mxu0 %v1275_v23  ;;  %871 = vmatpush1.bf16.msra.mxu1 %v1276_v24  ;;  %v1337_v1 = vld [vmem:[%s1702_s0] ss:$8 sps:$4 sm:$0xff]   ;;  %s397_s19 = scalar_lea.vmem %s1704_s2, %s1714_s10  ;;  %s1663_s23 = scalar_lea.vmem [#allocation4], %s1126_s20 }
  0x53   : > { %829 = vmatprep.subr.bf16.mxu0 %v1277_v25  ;;  %872 = vmatprep.subr.bf16.mxu1 %v1279_v26  ;;  %v934_v4 = vsub.s32 0, %v933_v3  ;;  %v942_v5 = vsub.s32 2, %v933_v3  ;;  %v930_v6 = vld [vmem:[%s397_s19] sm:$0xf]  ;;  %v938_v7 = vsub.s32 1, %v933_v3  ;;  %v946_v8 = vsub.s32 3, %v933_v3 }
  0x54   : > { %s1200_s12 = sshll.u32 (%p1435_p6), %s1370_s14, 5 }
  0x55   : > { %v935_v9 = vrot.slane %v930_v6, %v934_v4  ;;  %v943_v10 = vrot.slane %v930_v6, %v942_v5  ;;  %v939_v11 = vrot.slane %v930_v6, %v938_v7  ;;  %v947_v12 = vrot.slane %v930_v6, %v946_v8  ;;  %s980_s26 = scalar_lea.vmem (%p1435_p6), %s1705_s3, %s1200_s12 }
  0x56   : > { %830 = vmatpush1.bf16.msra.mxu0 %v1281_v27  ;;  %873 = vmatpush1.bf16.msra.mxu1 %v1282_v28 }
  0x57   : > { %831 = vmatprep.subr.bf16.mxu0 %v1283_v29  ;;  %874 = vmatprep.subr.bf16.mxu1 %v1285_v30 }
  0x5a   : > { %832 = vmatpush1.bf16.msra.mxu0 %v1287_v31  ;;  %875 = vmatpush1.bf16.msra.mxu1 %v1288_v32 }
  0x5b   : > { %833 = vmatprep.subr.bf16.mxu0 %v1289_v33  ;;  %876 = vmatprep.subr.bf16.mxu1 %v1291_v34 }
  0x5e   : > { %834 = vmatpush1.bf16.msra.mxu0 %v1293_v35  ;;  %877 = vmatpush1.bf16.msra.mxu1 %v1294_v36 }
  0x5f   : > { %835 = vmatprep.subr.bf16.mxu0 %v1295_v37  ;;  %878 = vmatprep.subr.bf16.mxu1 %v1297_v38 }
  0x62   : > { %836 = vmatpush1.bf16.msra.mxu0 %v1299_v39  ;;  %879 = vmatpush1.bf16.msra.mxu1 %v1300_v40 }
  0x63   : > { %837 = vmatprep.subr.bf16.mxu0 %v1301_v41  ;;  %880 = vmatprep.subr.bf16.mxu1 %v1303_v42 }
  0x66   : > { %838 = vmatpush1.bf16.msra.mxu0 %v1305_v43  ;;  %881 = vmatpush1.bf16.msra.mxu1 %v1306_v44 }
  0x67   : > { %839 = vmatprep.subr.bf16.mxu0 %v1307_v45  ;;  %882 = vmatprep.subr.bf16.mxu1 %v1309_v46 }
  0x6a   : > { %840 = vmatpush1.bf16.msra.mxu0 %v1311_v47  ;;  %883 = vmatpush1.bf16.msra.mxu1 %v1312_v48 }
  0x6b   : > { %841 = vmatprep.subr.bf16.mxu0 %v1313_v49  ;;  %884 = vmatprep.subr.bf16.mxu1 %v1315_v50 }
  0x6e   : > { %842 = vmatpush1.bf16.msra.mxu0 %v1317_v51  ;;  %885 = vmatpush1.bf16.msra.mxu1 %v1318_v52 }
  0x6f   : > { %843 = vmatprep.subr.bf16.mxu0 %v1319_v53  ;;  %886 = vmatprep.subr.bf16.mxu1 %v1321_v54 }
  0x72   : > { %844 = vmatpush1.bf16.msra.mxu0 %v1323_v55  ;;  %887 = vmatpush1.bf16.msra.mxu1 %v1324_v56 }
  0x73   : > { %845 = vmatprep.subr.bf16.mxu0 %v1325_v57  ;;  %888 = vmatprep.subr.bf16.mxu1 %v1327_v58 }
  0x76   : > { %846 = vmatpush1.bf16.msra.mxu0 %v1329_v59  ;;  %889 = vmatpush1.bf16.msra.mxu1 %v1330_v60 }
  0x77   : > { %847 = vmatprep.subr.bf16.mxu0 %v1331_v61  ;;  %890 = vmatprep.subr.bf16.mxu1 %v1333_v62 }
  0x7a   : > { %848 = vmatpush1.bf16.msra.mxu0 %v1335_v63  ;;  %891 = vmatpush1.bf16.msra.mxu1 %v1336_v0 }
  0x7d   : > { %850 = vmatmul.mubr.bf16.vlgmr.msra.gmra.mrb[0].mxu0 %v1337_v1  ;;  %893 = vmatmul.mubr.bf16.vlgmr.msra.gmra.mrb[0].mxu1 %v1337_v1 }
 0x150   : > { %v851_v13 = vpop.f32.mrb[0].mxu0  ;;  %v894_v14 = vpop.f32.mrb[0].mxu1  ;;  %974 = sbr.rel (!%p1435_p6) target bundleno = 351 (0x15f), region = 67 }
 0x151   : > { %v952_v15 = vadd.f32 %v935_v9, %v851_v13  ;;  %v954_v16 = vadd.f32 %v943_v10, %v894_v14  ;;  %v853_v17 = vpop.f32.mrb[1].mxu0  ;;  %v896_v18 = vpop.f32.mrb[1].mxu1 }
 0x152   : > { %v953_v19 = vadd.f32 %v939_v11, %v853_v17  ;;  %v955_v20 = vadd.f32 %v947_v12, %v896_v18  ;;  %v855_v21 = vpop.f32.mrb[2].mxu0  ;;  %v898_v22 = vpop.f32.mrb[2].mxu1 }
 0x153   : > { %960 = vst [vmem:[%s1663_s23] sm:$0xff] %v952_v15  ;;  %962 = vst [vmem:[%s1663_s23 + $0x10] sm:$0xff] %v954_v16  ;;  %v956_v23 = vadd.f32 %v935_v9, %v855_v21  ;;  %v958_v24 = vadd.f32 %v943_v10, %v898_v22  ;;  %v857_v25 = vpop.f32.mrb[3].mxu0  ;;  %v900_v26 = vpop.f32.mrb[3].mxu1 }
 0x154   : > { %961 = vst [vmem:[%s1663_s23 + $0x8] sm:$0xff] %v953_v19  ;;  %963 = vst [vmem:[%s1663_s23 + $0x18] sm:$0xff] %v955_v20  ;;  %v957_v27 = vadd.f32 %v939_v11, %v857_v25  ;;  %v959_v28 = vadd.f32 %v947_v12, %v900_v26 }
 0x155   : > { %964 = vst [vmem:[%s1663_s23 + $0x20] sm:$0xff] %v956_v23  ;;  %966 = vst [vmem:[%s1663_s23 + $0x30] sm:$0xff] %v958_v24 }
 0x156   : > { %965 = vst [vmem:[%s1663_s23 + $0x28] sm:$0xff] %v957_v27  ;;  %967 = vst [vmem:[%s1663_s23 + $0x38] sm:$0xff] %v959_v28 }
 0x15a   : > { %v993_v29 = vld [vmem:[%s1663_s23] sm:$0xff]  ;;  %v997_v31 = vld [vmem:[%s1663_s23 + $0x10] sm:$0xff] }
 0x15b   : > { %v995_v30 = vld [vmem:[%s1663_s23 + $0x8] sm:$0xff]  ;;  %v999_v32 = vld [vmem:[%s1663_s23 + $0x18] sm:$0xff]  ;;  %994 = vst [vmem:[%s980_s26] sm:$0xff] %v993_v29  ;;  %998 = vst [vmem:[%s980_s26 + $0x10] sm:$0xff] %v997_v31 }
 0x15c   : > { %v1001_v33 = vld [vmem:[%s1663_s23 + $0x20] sm:$0xff]  ;;  %996 = vst [vmem:[%s980_s26 + $0x8] sm:$0xff] %v995_v30  ;;  %1000 = vst [vmem:[%s980_s26 + $0x18] sm:$0xff] %v999_v32  ;;  %v1005_v35 = vld [vmem:[%s1663_s23 + $0x30] sm:$0xff] }
 0x15d   : > { %v1003_v34 = vld [vmem:[%s1663_s23 + $0x28] sm:$0xff]  ;;  %1002 = vst [vmem:[%s980_s26 + $0x80] sm:$0xff] %v1001_v33  ;;  %v1007_v36 = vld [vmem:[%s1663_s23 + $0x38] sm:$0xff]  ;;  %1006 = vst [vmem:[%s980_s26 + $0x90] sm:$0xff] %v1005_v35 }
 0x15e   : > { %1004 = vst [vmem:[%s980_s26 + $0x88] sm:$0xff] %v1003_v34  ;;  %1008 = vst [vmem:[%s980_s26 + $0x98] sm:$0xff] %v1007_v36 }
 0x15f PF: > { %s13_s16 = sadd.s32 1, %s1378_s16   ;;  %s1707_s12 = smov %s1366_s13 }
 0x160   : > { %p10_p12 = scmp.ge.s32.totalorder %s13_s16, 6   ;;  %s1708_s13 = smov %s1440_s22 }
 0x161   : > { %s1709_s14 = smov %s1374_s15  ;;  %s1710_s15 = smov %s1712_s17 }
 0x162   :  { %12 = sbr.rel (!%p10_p12) target bundleno = 3 (0x3), region = 127 }

// kernel: _lambda_.23
= control target key start
LH: loop header
LB: loop body
LE: loop exit
PB: predicated region body
PF: predicated region fallthrough
CT: control target
= control target key end

     0   :  { %s2781_s0 = inlined_call_operand.vmem [shape: bf16[16,256], index: 0, kind: input, shape index: {}]   ;;  %s2782_s2 = inlined_call_operand.vmem [shape: bf16[256,512], index: 2, kind: input, shape index: {}]   ;;  %s2783_s3 = inlined_call_operand.vmem [shape: bf16[256,512], index: 3, kind: input, shape index: {}]   ;;  %s2784_s1 = inlined_call_operand.vmem [shape: f32[1,256], index: 1, kind: input, shape index: {}]   ;;  %s2785_s4 = inlined_call_operand.vmem [shape: bf16[512,256], index: 4, kind: input, shape index: {}]   ;;  %s2786_s5 = inlined_call_operand.vmem [shape: bf16[16,256], index: 5, kind: output, shape index: {}]  }
   0x1   :  { %v24_v0 = vld [vmem:[%s2781_s0] sm:$0xff]  ;;  %v25_v1 = vld [vmem:[%s2781_s0 + $0x8] sm:$0xff] }
   0x2   :  { %v2160_v2 = vunpack.c.l.bf16 %v24_v0  ;;  %v2162_v3 = vunpack.c.h.bf16 %v24_v0  ;;  %v2164_v4 = vunpack.c.l.bf16 %v25_v1  ;;  %v2166_v5 = vunpack.c.h.bf16 %v25_v1  ;;  %v1800_v6 = vld [vmem:[%s2782_s2 + $0x4] ss:$16 sps:$4 sm:$0xff]   ;;  %v1802_v7 = vld [vmem:[%s2782_s2] ss:$16 sps:$4 sm:$0xff]  }
   0x3   :  { %v1803_v8 = vld [vmem:[%s2783_s3 + $0x4] ss:$16 sps:$4 sm:$0xff]   ;;  %461 = vmatprep.subr.bf16.mxu1 %v1800_v6  ;;  %v1805_v13 = vld [vmem:[%s2783_s3] ss:$16 sps:$4 sm:$0xff]  }
   0x4   :  { %v30_v9 = vmul.f32 %v2160_v2, %v2160_v2  ;;  %v31_v10 = vmul.f32 %v2162_v3, %v2162_v3  ;;  %v32_v11 = vmul.f32 %v2164_v4, %v2164_v4  ;;  %v33_v12 = vmul.f32 %v2166_v5, %v2166_v5  ;;  %462 = vmatpush1.bf16.msra.mxu1 %v1802_v7  ;;  %v1806_v14 = vld [vmem:[%s2782_s2 + $0x24] ss:$16 sps:$4 sm:$0xff]   ;;  %v1808_v15 = vld [vmem:[%s2782_s2 + $0x20] ss:$16 sps:$4 sm:$0xff]  }
   0x5   :  { %931 = vmatprep.subr.bf16.mxu0 %v1803_v8  ;;  %v1809_v17 = vld [vmem:[%s2783_s3 + $0x24] ss:$16 sps:$4 sm:$0xff]   ;;  %v1811_v18 = vld [vmem:[%s2783_s3 + $0x20] ss:$16 sps:$4 sm:$0xff]   ;;  %463 = vmatprep.subr.bf16.mxu1 %v1806_v14 }
   0x6   :  { %v34_v16 = vadd.f32 %v31_v10, %v30_v9  ;;  %932 = vmatpush1.bf16.msra.mxu0 %v1805_v13  ;;  %v1812_v19 = vld [vmem:[%s2782_s2 + $0x44] ss:$16 sps:$4 sm:$0xff]   ;;  %v37_v20 = vadd.f32 %v33_v12, %v32_v11  ;;  %v1814_v21 = vld [vmem:[%s2782_s2 + $0x40] ss:$16 sps:$4 sm:$0xff]  }
   0x7   :  { %933 = vmatprep.subr.bf16.mxu0 %v1809_v17  ;;  %v1815_v22 = vld [vmem:[%s2783_s3 + $0x44] ss:$16 sps:$4 sm:$0xff]   ;;  %v1817_v23 = vld [vmem:[%s2783_s3 + $0x40] ss:$16 sps:$4 sm:$0xff]  }
   0x8   :  { %35 = vadd.xlane.f32.xlu0 %v34_v16  ;;  %464 = vmatpush1.bf16.msra.mxu1 %v1808_v15  ;;  %v1818_v24 = vld [vmem:[%s2782_s2 + $0x64] ss:$16 sps:$4 sm:$0xff]   ;;  %v1820_v26 = vld [vmem:[%s2782_s2 + $0x60] ss:$16 sps:$4 sm:$0xff]   ;;  %v1898_v16 = vld [vmem:[%s2782_s2 + $0xc] ss:$16 sps:$4 sm:$0xff]  }
   0x9   :  { %465 = vmatprep.subr.bf16.mxu1 %v1812_v19  ;;  %v1821_v25 = vld [vmem:[%s2783_s3 + $0x64] ss:$16 sps:$4 sm:$0xff]   ;;  %v1823_v27 = vld [vmem:[%s2783_s3 + $0x60] ss:$16 sps:$4 sm:$0xff]  }
   0xa   :  { %934 = vmatpush1.bf16.msra.mxu0 %v1811_v18  ;;  %v1824_v28 = vld [vmem:[%s2782_s2 + $0x84] ss:$16 sps:$4 sm:$0xff]   ;;  %v1826_v30 = vld [vmem:[%s2782_s2 + $0x80] ss:$16 sps:$4 sm:$0xff]  }
   0xb   :  { %935 = vmatprep.subr.bf16.mxu0 %v1815_v22  ;;  %v1827_v29 = vld [vmem:[%s2783_s3 + $0x84] ss:$16 sps:$4 sm:$0xff]   ;;  %v1829_v31 = vld [vmem:[%s2783_s3 + $0x80] ss:$16 sps:$4 sm:$0xff]   ;;  %v53_v22 = vlaneseq }
   0xc   :  { %38 = vadd.xlane.f32.xlu0 %v37_v20  ;;  %466 = vmatpush1.bf16.msra.mxu1 %v1814_v21  ;;  %v1830_v32 = vld [vmem:[%s2782_s2 + $0xa4] ss:$16 sps:$4 sm:$0xff]   ;;  %v1832_v34 = vld [vmem:[%s2782_s2 + $0xa0] ss:$16 sps:$4 sm:$0xff]  }
   0xd   :  { %467 = vmatprep.subr.bf16.mxu1 %v1818_v24  ;;  %v1833_v33 = vld [vmem:[%s2783_s3 + $0xa4] ss:$16 sps:$4 sm:$0xff]   ;;  %v1835_v35 = vld [vmem:[%s2783_s3 + $0xa0] ss:$16 sps:$4 sm:$0xff]   ;;  %v54_v24 = vshrl.u32 %v53_v22, 7 }
   0xe   :  { %936 = vmatpush1.bf16.msra.mxu0 %v1817_v23  ;;  %v1836_v36 = vld [vmem:[%s2782_s2 + $0xc4] ss:$16 sps:$4 sm:$0xff]   ;;  %v1838_v38 = vld [vmem:[%s2782_s2 + $0xc0] ss:$16 sps:$4 sm:$0xff]   ;;  %v1935_v22 = vld [vmem:[%s2782_s2 + $0x1a8] ss:$16 sps:$4 sm:$0xff]  }
   0xf   :  { %937 = vmatprep.subr.bf16.mxu0 %v1821_v25  ;;  %v1839_v37 = vld [vmem:[%s2783_s3 + $0xc4] ss:$16 sps:$4 sm:$0xff]   ;;  %v1841_v39 = vld [vmem:[%s2783_s3 + $0xc0] ss:$16 sps:$4 sm:$0xff]   ;;  %v59_v25 = vsub.s32 1, %v54_v24 }
  0x10   :  { %468 = vmatpush1.bf16.msra.mxu1 %v1820_v26  ;;  %v1842_v40 = vld [vmem:[%s2782_s2 + $0xe4] ss:$16 sps:$4 sm:$0xff]   ;;  %v1844_v42 = vld [vmem:[%s2782_s2 + $0xe0] ss:$16 sps:$4 sm:$0xff]   ;;  %v55_v26 = vsub.s32 0, %v54_v24 }
  0x11   :  { %469 = vmatprep.subr.bf16.mxu1 %v1824_v28  ;;  %v1845_v41 = vld [vmem:[%s2783_s3 + $0xe4] ss:$16 sps:$4 sm:$0xff]   ;;  %v1847_v43 = vld [vmem:[%s2783_s3 + $0xe0] ss:$16 sps:$4 sm:$0xff]   ;;  %v1938_v24 = vld [vmem:[%s2782_s2 + $0x1c8] ss:$16 sps:$4 sm:$0xff]  }
  0x12   :  { %938 = vmatpush1.bf16.msra.mxu0 %v1823_v27  ;;  %v1848_v44 = vld [vmem:[%s2782_s2 + $0x104] ss:$16 sps:$4 sm:$0xff]   ;;  %v1850_v46 = vld [vmem:[%s2782_s2 + $0x100] ss:$16 sps:$4 sm:$0xff]  }
  0x13   :  { %939 = vmatprep.subr.bf16.mxu0 %v1827_v29  ;;  %v1851_v45 = vld [vmem:[%s2783_s3 + $0x104] ss:$16 sps:$4 sm:$0xff]   ;;  %v1853_v47 = vld [vmem:[%s2783_s3 + $0x100] ss:$16 sps:$4 sm:$0xff]  }
  0x14   :  { %470 = vmatpush1.bf16.msra.mxu1 %v1826_v30  ;;  %v1854_v48 = vld [vmem:[%s2782_s2 + $0x124] ss:$16 sps:$4 sm:$0xff]   ;;  %v1856_v50 = vld [vmem:[%s2782_s2 + $0x120] ss:$16 sps:$4 sm:$0xff]  }
  0x15   :  { %471 = vmatprep.subr.bf16.mxu1 %v1830_v32  ;;  %v1857_v49 = vld [vmem:[%s2783_s3 + $0x124] ss:$16 sps:$4 sm:$0xff]   ;;  %v1859_v51 = vld [vmem:[%s2783_s3 + $0x120] ss:$16 sps:$4 sm:$0xff]  }
  0x16   :  { %940 = vmatpush1.bf16.msra.mxu0 %v1829_v31  ;;  %v1860_v52 = vld [vmem:[%s2782_s2 + $0x144] ss:$16 sps:$4 sm:$0xff]   ;;  %v1862_v54 = vld [vmem:[%s2782_s2 + $0x140] ss:$16 sps:$4 sm:$0xff]  }
  0x17   :  { %941 = vmatprep.subr.bf16.mxu0 %v1833_v33  ;;  %v1863_v53 = vld [vmem:[%s2783_s3 + $0x144] ss:$16 sps:$4 sm:$0xff]   ;;  %v1865_v55 = vld [vmem:[%s2783_s3 + $0x140] ss:$16 sps:$4 sm:$0xff]  }
  0x18   :  { %472 = vmatpush1.bf16.msra.mxu1 %v1832_v34  ;;  %v1866_v56 = vld [vmem:[%s2782_s2 + $0x164] ss:$16 sps:$4 sm:$0xff]   ;;  %v1868_v58 = vld [vmem:[%s2782_s2 + $0x160] ss:$16 sps:$4 sm:$0xff]  }
  0x19   :  { %473 = vmatprep.subr.bf16.mxu1 %v1836_v36  ;;  %v1869_v57 = vld [vmem:[%s2783_s3 + $0x164] ss:$16 sps:$4 sm:$0xff]   ;;  %v1871_v59 = vld [vmem:[%s2783_s3 + $0x160] ss:$16 sps:$4 sm:$0xff]  }
  0x1a   :  { %942 = vmatpush1.bf16.msra.mxu0 %v1835_v35  ;;  %v1872_v60 = vld [vmem:[%s2782_s2 + $0x184] ss:$16 sps:$4 sm:$0xff]   ;;  %v1874_v62 = vld [vmem:[%s2782_s2 + $0x180] ss:$16 sps:$4 sm:$0xff]  }
  0x1b   :  { %943 = vmatprep.subr.bf16.mxu0 %v1839_v37  ;;  %v1875_v61 = vld [vmem:[%s2783_s3 + $0x184] ss:$16 sps:$4 sm:$0xff]   ;;  %v1877_v63 = vld [vmem:[%s2783_s3 + $0x180] ss:$16 sps:$4 sm:$0xff]  }
  0x1c   :  { %474 = vmatpush1.bf16.msra.mxu1 %v1838_v38  ;;  %v1878_v0 = vld [vmem:[%s2782_s2 + $0x1a4] ss:$16 sps:$4 sm:$0xff]   ;;  %v1880_v6 = vld [vmem:[%s2782_s2 + $0x1a0] ss:$16 sps:$4 sm:$0xff]  }
  0x1d   :  { %475 = vmatprep.subr.bf16.mxu1 %v1842_v40  ;;  %v1881_v1 = vld [vmem:[%s2783_s3 + $0x1a4] ss:$16 sps:$4 sm:$0xff]   ;;  %v1883_v7 = vld [vmem:[%s2783_s3 + $0x1a0] ss:$16 sps:$4 sm:$0xff]  }
  0x1e   :  { %944 = vmatpush1.bf16.msra.mxu0 %v1841_v39  ;;  %v1884_v8 = vld [vmem:[%s2782_s2 + $0x1c4] ss:$16 sps:$4 sm:$0xff]   ;;  %v1886_v10 = vld [vmem:[%s2782_s2 + $0x1c0] ss:$16 sps:$4 sm:$0xff]  }
  0x1f   :  { %945 = vmatprep.subr.bf16.mxu0 %v1845_v41  ;;  %v1887_v9 = vld [vmem:[%s2783_s3 + $0x1c4] ss:$16 sps:$4 sm:$0xff]   ;;  %v1889_v11 = vld [vmem:[%s2783_s3 + $0x1c0] ss:$16 sps:$4 sm:$0xff]   ;;  %v1896_v41 = vld [vmem:[%s2782_s2 + $0x8] ss:$16 sps:$4 sm:$0xff]  }
  0x20   :  { %476 = vmatpush1.bf16.msra.mxu1 %v1844_v42  ;;  %v1890_v12 = vld [vmem:[%s2782_s2 + $0x1e4] ss:$16 sps:$4 sm:$0xff]   ;;  %v1892_v14 = vld [vmem:[%s2782_s2 + $0x1e0] ss:$16 sps:$4 sm:$0xff]  }
  0x21   :  { %477 = vmatprep.subr.bf16.mxu1 %v1848_v44  ;;  %v1893_v13 = vld [vmem:[%s2783_s3 + $0x1e4] ss:$16 sps:$4 sm:$0xff]   ;;  %v1895_v15 = vld [vmem:[%s2783_s3 + $0x1e0] ss:$16 sps:$4 sm:$0xff]   ;;  %v1899_v44 = vld [vmem:[%s2782_s2 + $0x28] ss:$16 sps:$4 sm:$0xff]  }
  0x22   :  { %946 = vmatpush1.bf16.msra.mxu0 %v1847_v43  ;;  %v51_v28 = vld [vmem:[%s2784_s1] sm:$0x3]  ;;  %v1901_v43 = vld [vmem:[%s2782_s2 + $0x2c] ss:$16 sps:$4 sm:$0xff]  }
  0x23   :  { %947 = vmatprep.subr.bf16.mxu0 %v1851_v45  ;;  %v60_v30 = vrot.slane %v51_v28, %v59_v25  ;;  %v56_v32 = vrot.slane %v51_v28, %v55_v26  ;;  %v1904_v45 = vld [vmem:[%s2782_s2 + $0x4c] ss:$16 sps:$4 sm:$0xff]   ;;  %v1941_v26 = vld [vmem:[%s2782_s2 + $0x1e8] ss:$16 sps:$4 sm:$0xff]  }
  0x24   :  { %478 = vmatpush1.bf16.msra.mxu1 %v1850_v46  ;;  %v1992_v46 = vld [vmem:[%s2785_s4] ss:$8 sps:$4 sm:$0xff]   ;;  %v1943_v25 = vld [vmem:[%s2782_s2 + $0x1ec] ss:$16 sps:$4 sm:$0xff]  }
  0x25   :  { %479 = vmatprep.subr.bf16.mxu1 %v1854_v48  ;;  %v1997_v48 = vld [vmem:[%s2785_s4 + $0x14] ss:$8 sps:$4 sm:$0xff]   ;;  %v1944_v28 = vld [vmem:[%s2783_s3 + $0x8] ss:$16 sps:$4 sm:$0xff]  }
  0x26   :  { %948 = vmatpush1.bf16.msra.mxu0 %v1853_v47  ;;  %v1994_v47 = vld [vmem:[%s2785_s4 + $0x4] ss:$8 sps:$4 sm:$0xff]  }
  0x27   :  { %949 = vmatprep.subr.bf16.mxu0 %v1857_v49  ;;  %v1902_v49 = vld [vmem:[%s2782_s2 + $0x48] ss:$16 sps:$4 sm:$0xff]  }
  0x28   :  { %480 = vmatpush1.bf16.msra.mxu1 %v1856_v50  ;;  %v1907_v50 = vld [vmem:[%s2782_s2 + $0x6c] ss:$16 sps:$4 sm:$0xff]  }
  0x29   :  { %481 = vmatprep.subr.bf16.mxu1 %v1860_v52  ;;  %v2000_v52 = vld [vmem:[%s2785_s4 + $0x24] ss:$8 sps:$4 sm:$0xff]  }
  0x2a   :  { %950 = vmatpush1.bf16.msra.mxu0 %v1859_v51  ;;  %v1995_v51 = vld [vmem:[%s2785_s4 + $0x10] ss:$8 sps:$4 sm:$0xff]  }
  0x2b   :  { %951 = vmatprep.subr.bf16.mxu0 %v1863_v53  ;;  %v1905_v53 = vld [vmem:[%s2782_s2 + $0x68] ss:$16 sps:$4 sm:$0xff]  }
  0x2c   :  { %482 = vmatpush1.bf16.msra.mxu1 %v1862_v54  ;;  %v1910_v54 = vld [vmem:[%s2782_s2 + $0x8c] ss:$16 sps:$4 sm:$0xff]  }
  0x2d   :  { %483 = vmatprep.subr.bf16.mxu1 %v1866_v56  ;;  %v2003_v56 = vld [vmem:[%s2785_s4 + $0x34] ss:$8 sps:$4 sm:$0xff]  }
  0x2e   :  { %952 = vmatpush1.bf16.msra.mxu0 %v1865_v55  ;;  %v1998_v55 = vld [vmem:[%s2785_s4 + $0x20] ss:$8 sps:$4 sm:$0xff]  }
  0x2f   :  { %953 = vmatprep.subr.bf16.mxu0 %v1869_v57  ;;  %v1908_v57 = vld [vmem:[%s2782_s2 + $0x88] ss:$16 sps:$4 sm:$0xff]  }
  0x30   :  { %484 = vmatpush1.bf16.msra.mxu1 %v1868_v58  ;;  %v2001_v58 = vld [vmem:[%s2785_s4 + $0x30] ss:$8 sps:$4 sm:$0xff]  }
  0x31   :  { %485 = vmatprep.subr.bf16.mxu1 %v1872_v60  ;;  %v2006_v60 = vld [vmem:[%s2785_s4 + $0x44] ss:$8 sps:$4 sm:$0xff]  }
  0x32   :  { %954 = vmatpush1.bf16.msra.mxu0 %v1871_v59  ;;  %v1913_v59 = vld [vmem:[%s2782_s2 + $0xac] ss:$16 sps:$4 sm:$0xff]  }
  0x33   :  { %955 = vmatprep.subr.bf16.mxu0 %v1875_v61  ;;  %v1911_v61 = vld [vmem:[%s2782_s2 + $0xa8] ss:$16 sps:$4 sm:$0xff]  }
  0x34   :  { %486 = vmatpush1.bf16.msra.mxu1 %v1874_v62  ;;  %v2004_v62 = vld [vmem:[%s2785_s4 + $0x40] ss:$8 sps:$4 sm:$0xff]  }
  0x35   :  { %487 = vmatprep.subr.bf16.mxu1 %v1878_v0  ;;  %v2009_v0 = vld [vmem:[%s2785_s4 + $0x54] ss:$8 sps:$4 sm:$0xff]  }
  0x36   :  { %956 = vmatpush1.bf16.msra.mxu0 %v1877_v63  ;;  %v1916_v63 = vld [vmem:[%s2782_s2 + $0xcc] ss:$16 sps:$4 sm:$0xff]  }
  0x37   :  { %957 = vmatprep.subr.bf16.mxu0 %v1881_v1  ;;  %v1914_v1 = vld [vmem:[%s2782_s2 + $0xc8] ss:$16 sps:$4 sm:$0xff]  }
  0x38   :  { %488 = vmatpush1.bf16.msra.mxu1 %v1880_v6  ;;  %v2007_v6 = vld [vmem:[%s2785_s4 + $0x50] ss:$8 sps:$4 sm:$0xff]  }
  0x39   :  { %489 = vmatprep.subr.bf16.mxu1 %v1884_v8  ;;  %v2012_v8 = vld [vmem:[%s2785_s4 + $0x64] ss:$8 sps:$4 sm:$0xff]  }
  0x3a   :  { %958 = vmatpush1.bf16.msra.mxu0 %v1883_v7  ;;  %v1919_v7 = vld [vmem:[%s2782_s2 + $0xec] ss:$16 sps:$4 sm:$0xff]  }
  0x3b   :  { %959 = vmatprep.subr.bf16.mxu0 %v1887_v9  ;;  %v1917_v9 = vld [vmem:[%s2782_s2 + $0xe8] ss:$16 sps:$4 sm:$0xff]  }
  0x3c   :  { %490 = vmatpush1.bf16.msra.mxu1 %v1886_v10  ;;  %v2010_v10 = vld [vmem:[%s2785_s4 + $0x60] ss:$8 sps:$4 sm:$0xff]  }
  0x3d   :  { %491 = vmatprep.subr.bf16.mxu1 %v1890_v12  ;;  %v1920_v12 = vld [vmem:[%s2782_s2 + $0x108] ss:$16 sps:$4 sm:$0xff]  }
  0x3e   :  { %960 = vmatpush1.bf16.msra.mxu0 %v1889_v11  ;;  %v1922_v11 = vld [vmem:[%s2782_s2 + $0x10c] ss:$16 sps:$4 sm:$0xff]  }
  0x3f   :  { %961 = vmatprep.subr.bf16.mxu0 %v1893_v13  ;;  %v1925_v13 = vld [vmem:[%s2782_s2 + $0x12c] ss:$16 sps:$4 sm:$0xff]  }
  0x40   :  { %492 = vmatpush1.bf16.msra.mxu1 %v1892_v14  ;;  %v1923_v14 = vld [vmem:[%s2782_s2 + $0x128] ss:$16 sps:$4 sm:$0xff]  }
  0x41   :  { %504 = vmatprep.subr.bf16.mxu1 %v1898_v16  ;;  %v1926_v16 = vld [vmem:[%s2782_s2 + $0x148] ss:$16 sps:$4 sm:$0xff]  }
  0x42   :  { %962 = vmatpush1.bf16.msra.mxu0 %v1895_v15  ;;  %v1928_v15 = vld [vmem:[%s2782_s2 + $0x14c] ss:$16 sps:$4 sm:$0xff]  }
  0x43   :  { %1473 = vmatprep.subr.bf16.mxu0 %v1994_v47  ;;  %v1965_v47 = vld [vmem:[%s2783_s3 + $0xe8] ss:$16 sps:$4 sm:$0xff]  }
  0x95   :  { %v36_v17 = vpop.xlane.xlu0 %35 }
  0x96   :  { %v41_v18 = vmul.f32 0.00390625, %v36_v17  ;;  %v1931_v17 = vld [vmem:[%s2782_s2 + $0x16c] ss:$16 sps:$4 sm:$0xff]  }
  0x98   :  { %v43_v19 = vadd.f32 1e-06, %v41_v18  ;;  %v1929_v18 = vld [vmem:[%s2782_s2 + $0x168] ss:$16 sps:$4 sm:$0xff]  }
  0x99   :  { %v39_v20 = vpop.xlane.xlu0 %38 }
  0x9a   :  { %2088 = vrsqrt.f32 %v43_v19  ;;  %v42_v21 = vmul.f32 0.00390625, %v39_v20  ;;  %v1934_v19 = vld [vmem:[%s2782_s2 + $0x18c] ss:$16 sps:$4 sm:$0xff]   ;;  %v1932_v20 = vld [vmem:[%s2782_s2 + $0x188] ss:$16 sps:$4 sm:$0xff]  }
  0x9c   :  { %v44_v23 = vadd.f32 1e-06, %v42_v21  ;;  %v1937_v21 = vld [vmem:[%s2782_s2 + $0x1ac] ss:$16 sps:$4 sm:$0xff]  }
  0x9e   :  { %2090 = vrsqrt.f32 %v44_v23  ;;  %v1940_v23 = vld [vmem:[%s2782_s2 + $0x1cc] ss:$16 sps:$4 sm:$0xff]  }
  0xa4   :  { %v2089_v27 = vpop.eup %2088 }
  0xa5   :  { %v48_v29 = vmul.f32 %v2089_v27, %v2162_v3  ;;  %v47_v31 = vmul.f32 %v2089_v27, %v2160_v2  ;;  %v1946_v27 = vld [vmem:[%s2783_s3 + $0xc] ss:$16 sps:$4 sm:$0xff]  }
  0xa7   :  { %v64_v36 = vmul.f32 %v60_v30, %v48_v29  ;;  %v63_v38 = vmul.f32 %v56_v32, %v47_v31  ;;  %v1949_v29 = vld [vmem:[%s2783_s3 + $0x2c] ss:$16 sps:$4 sm:$0xff]  }
  0xa8   :  { %v2091_v33 = vpop.eup %2090  ;;  %v1952_v31 = vld [vmem:[%s2783_s3 + $0x4c] ss:$16 sps:$4 sm:$0xff]  }
  0xa9   :  { %v50_v34 = vmul.f32 %v2091_v33, %v2166_v5  ;;  %v49_v35 = vmul.f32 %v2091_v33, %v2164_v4  ;;  %v1955_v33 = vld [vmem:[%s2783_s3 + $0x6c] ss:$16 sps:$4 sm:$0xff]  }
  0xab   :  { %v66_v37 = vmul.f32 %v60_v30, %v50_v34  ;;  %v65_v39 = vmul.f32 %v56_v32, %v49_v35  ;;  %v1947_v30 = vld [vmem:[%s2783_s3 + $0x28] ss:$16 sps:$4 sm:$0xff]   ;;  %v1958_v35 = vld [vmem:[%s2783_s3 + $0x8c] ss:$16 sps:$4 sm:$0xff]  }
  0xac   :  { %v1950_v32 = vld [vmem:[%s2783_s3 + $0x48] ss:$16 sps:$4 sm:$0xff]  }
  0xad   :  { %v2378_v40 = vpack.c.bf16 %v66_v37, %v64_v36  ;;  %v2383_v42 = vpack.c.bf16 %v65_v39, %v63_v38  ;;  %v1953_v34 = vld [vmem:[%s2783_s3 + $0x68] ss:$16 sps:$4 sm:$0xff]   ;;  %v1961_v37 = vld [vmem:[%s2783_s3 + $0xac] ss:$16 sps:$4 sm:$0xff]  }
  0xae   :  { %v1956_v36 = vld [vmem:[%s2783_s3 + $0x88] ss:$16 sps:$4 sm:$0xff]   ;;  %v1964_v39 = vld [vmem:[%s2783_s3 + $0xcc] ss:$16 sps:$4 sm:$0xff]  }
  0xaf   :  { %493 = vmatprep.mubr.bf16.mxu1 %v2378_v40  ;;  %963 = vmatprep.mubr.bf16.mxu0 %v2378_v40  ;;  %v1959_v38 = vld [vmem:[%s2783_s3 + $0xa8] ss:$16 sps:$4 sm:$0xff]  }
  0xb0   :  { %494 = vmatmul.mubr.bf16.vlgmr.msra.gmra.mrb[0].mxu1 %v2383_v42  ;;  %964 = vmatmul.mubr.bf16.vlgmr.msra.gmra.mrb[0].mxu0 %v2383_v42 }
  0xb1   :  { %505 = vmatpush1.bf16.msra.mxu1 %v1896_v41  ;;  %536 = vmatprep.mubr.bf16.mxu1 %v2378_v40  ;;  %v2013_v41 = vld [vmem:[%s2785_s4 + $0x70] ss:$8 sps:$4 sm:$0xff]  }
  0xb2   :  { %506 = vmatprep.subr.bf16.mxu1 %v1901_v43  ;;  %1474 = vmatpush1.bf16.msra.mxu0 %v1992_v46  ;;  %v1962_v43 = vld [vmem:[%s2783_s3 + $0xc8] ss:$16 sps:$4 sm:$0xff]  }
  0xb3   :  { %1475 = vmatprep.subr.bf16.mxu0 %v1997_v48  ;;  %v2016_v46 = vld [vmem:[%s2785_s4 + $0x80] ss:$8 sps:$4 sm:$0xff]   ;;  %v1970_v48 = vld [vmem:[%s2783_s3 + $0x10c] ss:$16 sps:$4 sm:$0xff]  }
  0xb5   :  { %507 = vmatpush1.bf16.msra.mxu1 %v1899_v44  ;;  %v1967_v44 = vld [vmem:[%s2783_s3 + $0xec] ss:$16 sps:$4 sm:$0xff]  }
  0xb6   :  { %508 = vmatprep.subr.bf16.mxu1 %v1904_v45  ;;  %1476 = vmatpush1.bf16.msra.mxu0 %v1995_v51  ;;  %v2018_v45 = vld [vmem:[%s2785_s4 + $0x84] ss:$8 sps:$4 sm:$0xff]   ;;  %v1968_v51 = vld [vmem:[%s2783_s3 + $0x108] ss:$16 sps:$4 sm:$0xff]  }
  0xb7   :  { %1477 = vmatprep.subr.bf16.mxu0 %v2000_v52  ;;  %v1973_v52 = vld [vmem:[%s2783_s3 + $0x12c] ss:$16 sps:$4 sm:$0xff]  }
  0xb9   :  { %509 = vmatpush1.bf16.msra.mxu1 %v1902_v49  ;;  %v2021_v49 = vld [vmem:[%s2785_s4 + $0x94] ss:$8 sps:$4 sm:$0xff]  }
  0xba   :  { %510 = vmatprep.subr.bf16.mxu1 %v1907_v50  ;;  %1478 = vmatpush1.bf16.msra.mxu0 %v1998_v55  ;;  %v2019_v50 = vld [vmem:[%s2785_s4 + $0x90] ss:$8 sps:$4 sm:$0xff]  }
  0xbb   :  { %1479 = vmatprep.subr.bf16.mxu0 %v2003_v56  ;;  %v1971_v55 = vld [vmem:[%s2783_s3 + $0x128] ss:$16 sps:$4 sm:$0xff]   ;;  %v1976_v56 = vld [vmem:[%s2783_s3 + $0x14c] ss:$16 sps:$4 sm:$0xff]  }
  0xbd   :  { %511 = vmatpush1.bf16.msra.mxu1 %v1905_v53  ;;  %v2024_v53 = vld [vmem:[%s2785_s4 + $0xa4] ss:$8 sps:$4 sm:$0xff]  }
  0xbe   :  { %512 = vmatprep.subr.bf16.mxu1 %v1910_v54  ;;  %1480 = vmatpush1.bf16.msra.mxu0 %v2001_v58  ;;  %v2022_v54 = vld [vmem:[%s2785_s4 + $0xa0] ss:$8 sps:$4 sm:$0xff]   ;;  %v2025_v58 = vld [vmem:[%s2785_s4 + $0xb0] ss:$8 sps:$4 sm:$0xff]  }
  0xbf   :  { %1481 = vmatprep.subr.bf16.mxu0 %v2006_v60  ;;  %v1979_v60 = vld [vmem:[%s2783_s3 + $0x16c] ss:$16 sps:$4 sm:$0xff]  }
  0xc1   :  { %513 = vmatpush1.bf16.msra.mxu1 %v1908_v57  ;;  %v2027_v57 = vld [vmem:[%s2785_s4 + $0xb4] ss:$8 sps:$4 sm:$0xff]  }
  0xc2   :  { %514 = vmatprep.subr.bf16.mxu1 %v1913_v59  ;;  %1482 = vmatpush1.bf16.msra.mxu0 %v2004_v62  ;;  %v1974_v59 = vld [vmem:[%s2783_s3 + $0x148] ss:$16 sps:$4 sm:$0xff]  }
  0xc3   :  { %1483 = vmatprep.subr.bf16.mxu0 %v2009_v0  ;;  %v2028_v62 = vld [vmem:[%s2785_s4 + $0xc0] ss:$8 sps:$4 sm:$0xff]   ;;  %v1982_v0 = vld [vmem:[%s2783_s3 + $0x18c] ss:$16 sps:$4 sm:$0xff]  }
  0xc5   :  { %515 = vmatpush1.bf16.msra.mxu1 %v1911_v61  ;;  %v2030_v61 = vld [vmem:[%s2785_s4 + $0xc4] ss:$8 sps:$4 sm:$0xff]  }
  0xc6   :  { %516 = vmatprep.subr.bf16.mxu1 %v1916_v63  ;;  %1484 = vmatpush1.bf16.msra.mxu0 %v2007_v6  ;;  %v1977_v63 = vld [vmem:[%s2783_s3 + $0x168] ss:$16 sps:$4 sm:$0xff]  }
  0xc7   :  { %1485 = vmatprep.subr.bf16.mxu0 %v2012_v8  ;;  %v2031_v6 = vld [vmem:[%s2785_s4 + $0xd0] ss:$8 sps:$4 sm:$0xff]   ;;  %v1985_v8 = vld [vmem:[%s2783_s3 + $0x1ac] ss:$16 sps:$4 sm:$0xff]  }
  0xc9   :  { %517 = vmatpush1.bf16.msra.mxu1 %v1914_v1  ;;  %v2033_v1 = vld [vmem:[%s2785_s4 + $0xd4] ss:$8 sps:$4 sm:$0xff]  }
  0xca   :  { %518 = vmatprep.subr.bf16.mxu1 %v1919_v7  ;;  %1486 = vmatpush1.bf16.msra.mxu0 %v2010_v10  ;;  %v1980_v7 = vld [vmem:[%s2783_s3 + $0x188] ss:$16 sps:$4 sm:$0xff]  }
  0xcb   :  { %v2034_v10 = vld [vmem:[%s2785_s4 + $0xe0] ss:$8 sps:$4 sm:$0xff]  }
  0xcd   :  { %519 = vmatpush1.bf16.msra.mxu1 %v1917_v9  ;;  %v2036_v9 = vld [vmem:[%s2785_s4 + $0xe4] ss:$8 sps:$4 sm:$0xff]  }
  0xce   :  { %520 = vmatprep.subr.bf16.mxu1 %v1922_v11  ;;  %v1983_v11 = vld [vmem:[%s2783_s3 + $0x1a8] ss:$16 sps:$4 sm:$0xff]  }
  0xd1   :  { %521 = vmatpush1.bf16.msra.mxu1 %v1920_v12  ;;  %v1988_v12 = vld [vmem:[%s2783_s3 + $0x1cc] ss:$16 sps:$4 sm:$0xff]  }
  0xd2   :  { %522 = vmatprep.subr.bf16.mxu1 %v1925_v13  ;;  %v2039_v13 = vld [vmem:[%s2785_s4 + $0xf4] ss:$8 sps:$4 sm:$0xff]  }
  0xd5   :  { %523 = vmatpush1.bf16.msra.mxu1 %v1923_v14  ;;  %v2037_v14 = vld [vmem:[%s2785_s4 + $0xf0] ss:$8 sps:$4 sm:$0xff]  }
  0xd6   :  { %524 = vmatprep.subr.bf16.mxu1 %v1928_v15  ;;  %v1986_v15 = vld [vmem:[%s2783_s3 + $0x1c8] ss:$16 sps:$4 sm:$0xff]  }
  0xd9   :  { %525 = vmatpush1.bf16.msra.mxu1 %v1926_v16  ;;  %v1991_v16 = vld [vmem:[%s2783_s3 + $0x1ec] ss:$16 sps:$4 sm:$0xff]  }
  0xda   :  { %526 = vmatprep.subr.bf16.mxu1 %v1931_v17  ;;  %v1989_v17 = vld [vmem:[%s2783_s3 + $0x1e8] ss:$16 sps:$4 sm:$0xff]  }
  0xdd   :  { %527 = vmatpush1.bf16.msra.mxu1 %v1929_v18  ;;  %v2042_v18 = vld [vmem:[%s2785_s4 + $0x104] ss:$8 sps:$4 sm:$0xff]  }
  0xde   :  { %528 = vmatprep.subr.bf16.mxu1 %v1934_v19 }
  0xe1   :  { %529 = vmatpush1.bf16.msra.mxu1 %v1932_v20 }
  0xe2   :  { %530 = vmatprep.subr.bf16.mxu1 %v1937_v21 }
  0xe5   :  { %531 = vmatpush1.bf16.msra.mxu1 %v1935_v22 }
  0xe6   :  { %532 = vmatprep.subr.bf16.mxu1 %v1940_v23 }
  0xe9   :  { %533 = vmatpush1.bf16.msra.mxu1 %v1938_v24 }
  0xea   :  { %534 = vmatprep.subr.bf16.mxu1 %v1943_v25 }
  0xed   :  { %535 = vmatpush1.bf16.msra.mxu1 %v1941_v26 }
  0xee   :  { %974 = vmatprep.subr.bf16.mxu1 %v1946_v27 }
  0xf0   :  { %537 = vmatmul.mubr.bf16.vlgmr.msra.gmra.mrb[4].mxu1 %v2383_v42 }
  0xf1   :  { %975 = vmatpush1.bf16.msra.mxu1 %v1944_v28  ;;  %1006 = vmatprep.mubr.bf16.mxu1 %v2378_v40  ;;  %v2015_v40 = vld [vmem:[%s2785_s4 + $0x74] ss:$8 sps:$4 sm:$0xff]  }
  0xf2   :  { %976 = vmatprep.subr.bf16.mxu1 %v1949_v29  ;;  %1487 = vmatprep.subr.bf16.mxu0 %v2015_v40 }
  0xf3   :  { %1488 = vmatpush1.bf16.msra.mxu0 %v2013_v41 }
  0xf4   :  { %1489 = vmatprep.subr.bf16.mxu0 %v2018_v45 }
  0xf5   :  { %977 = vmatpush1.bf16.msra.mxu1 %v1947_v30 }
  0xf6   :  { %978 = vmatprep.subr.bf16.mxu1 %v1952_v31 }
  0xf7   :  { %1490 = vmatpush1.bf16.msra.mxu0 %v2016_v46 }
  0xf8   :  { %1491 = vmatprep.subr.bf16.mxu0 %v2021_v49 }
  0xf9   :  { %979 = vmatpush1.bf16.msra.mxu1 %v1950_v32 }
  0xfa   :  { %980 = vmatprep.subr.bf16.mxu1 %v1955_v33 }
  0xfb   :  { %1492 = vmatpush1.bf16.msra.mxu0 %v2019_v50 }
  0xfc   :  { %1493 = vmatprep.subr.bf16.mxu0 %v2024_v53  ;;  %v2040_v53 = vld [vmem:[%s2785_s4 + $0x100] ss:$8 sps:$4 sm:$0xff]  }
  0xfd   :  { %981 = vmatpush1.bf16.msra.mxu1 %v1953_v34 }
  0xfe   :  { %982 = vmatprep.subr.bf16.mxu1 %v1958_v35 }
  0xff   :  { %1494 = vmatpush1.bf16.msra.mxu0 %v2022_v54  ;;  %v2045_v54 = vld [vmem:[%s2785_s4 + $0x114] ss:$8 sps:$4 sm:$0xff]  }
 0x100   :  { %1495 = vmatprep.subr.bf16.mxu0 %v2027_v57  ;;  %v2046_v57 = vld [vmem:[%s2785_s4 + $0x120] ss:$8 sps:$4 sm:$0xff]  }
 0x101   :  { %983 = vmatpush1.bf16.msra.mxu1 %v1956_v36 }
 0x102   :  { %984 = vmatprep.subr.bf16.mxu1 %v1961_v37 }
 0x103   :  { %1496 = vmatpush1.bf16.msra.mxu0 %v2025_v58  ;;  %v2051_v58 = vld [vmem:[%s2785_s4 + $0x134] ss:$8 sps:$4 sm:$0xff]  }
 0x104   :  { %1497 = vmatprep.subr.bf16.mxu0 %v2030_v61  ;;  %v2052_v61 = vld [vmem:[%s2785_s4 + $0x140] ss:$8 sps:$4 sm:$0xff]  }
 0x105   :  { %985 = vmatpush1.bf16.msra.mxu1 %v1959_v38 }
 0x106   :  { %986 = vmatprep.subr.bf16.mxu1 %v1964_v39 }
 0x107   :  { %1498 = vmatpush1.bf16.msra.mxu0 %v2028_v62  ;;  %v2057_v62 = vld [vmem:[%s2785_s4 + $0x154] ss:$8 sps:$4 sm:$0xff]  }
 0x108   :  { %1499 = vmatprep.subr.bf16.mxu0 %v2033_v1  ;;  %v2058_v1 = vld [vmem:[%s2785_s4 + $0x160] ss:$8 sps:$4 sm:$0xff]  }
 0x109   :  { %987 = vmatpush1.bf16.msra.mxu1 %v1962_v43 }
 0x10a   :  { %988 = vmatprep.subr.bf16.mxu1 %v1967_v44 }
 0x10b   :  { %1500 = vmatpush1.bf16.msra.mxu0 %v2031_v6  ;;  %v2063_v6 = vld [vmem:[%s2785_s4 + $0x174] ss:$8 sps:$4 sm:$0xff]  }
 0x10c   :  { %1501 = vmatprep.subr.bf16.mxu0 %v2036_v9 }
 0x10d   :  { %989 = vmatpush1.bf16.msra.mxu1 %v1965_v47 }
 0x10e   :  { %990 = vmatprep.subr.bf16.mxu1 %v1970_v48 }
 0x10f   :  { %1502 = vmatpush1.bf16.msra.mxu0 %v2034_v10 }
 0x110   :  { %1503 = vmatprep.subr.bf16.mxu0 %v2039_v13 }
 0x111   :  { %991 = vmatpush1.bf16.msra.mxu1 %v1968_v51 }
 0x112   :  { %992 = vmatprep.subr.bf16.mxu1 %v1973_v52 }
 0x113   :  { %1504 = vmatpush1.bf16.msra.mxu0 %v2037_v14  ;;  %v2069_v14 = vld [vmem:[%s2785_s4 + $0x194] ss:$8 sps:$4 sm:$0xff]  }
 0x114   :  { %1516 = vmatprep.subr.bf16.mxu0 %v2042_v18  ;;  %v2075_v18 = vld [vmem:[%s2785_s4 + $0x1b4] ss:$8 sps:$4 sm:$0xff]  }
 0x115   :  { %993 = vmatpush1.bf16.msra.mxu1 %v1971_v55  ;;  %v2043_v55 = vld [vmem:[%s2785_s4 + $0x110] ss:$8 sps:$4 sm:$0xff]  }
 0x116   :  { %994 = vmatprep.subr.bf16.mxu1 %v1976_v56  ;;  %v2048_v56 = vld [vmem:[%s2785_s4 + $0x124] ss:$8 sps:$4 sm:$0xff]  }
 0x119   :  { %995 = vmatpush1.bf16.msra.mxu1 %v1974_v59  ;;  %v2049_v59 = vld [vmem:[%s2785_s4 + $0x130] ss:$8 sps:$4 sm:$0xff]  }
 0x11a   :  { %996 = vmatprep.subr.bf16.mxu1 %v1979_v60  ;;  %v2054_v60 = vld [vmem:[%s2785_s4 + $0x144] ss:$8 sps:$4 sm:$0xff]  }
 0x11d   :  { %997 = vmatpush1.bf16.msra.mxu1 %v1977_v63  ;;  %v2055_v63 = vld [vmem:[%s2785_s4 + $0x150] ss:$8 sps:$4 sm:$0xff]  }
 0x11e   :  { %998 = vmatprep.subr.bf16.mxu1 %v1982_v0  ;;  %v2060_v0 = vld [vmem:[%s2785_s4 + $0x164] ss:$8 sps:$4 sm:$0xff]  }
 0x121   :  { %999 = vmatpush1.bf16.msra.mxu1 %v1980_v7  ;;  %v2061_v7 = vld [vmem:[%s2785_s4 + $0x170] ss:$8 sps:$4 sm:$0xff]  }
 0x122   :  { %1000 = vmatprep.subr.bf16.mxu1 %v1985_v8  ;;  %v2066_v8 = vld [vmem:[%s2785_s4 + $0x184] ss:$8 sps:$4 sm:$0xff]  }
 0x125   :  { %1001 = vmatpush1.bf16.msra.mxu1 %v1983_v11 }
 0x126   :  { %1002 = vmatprep.subr.bf16.mxu1 %v1988_v12  ;;  %v2064_v12 = vld [vmem:[%s2785_s4 + $0x180] ss:$8 sps:$4 sm:$0xff]  }
 0x129   :  { %1003 = vmatpush1.bf16.msra.mxu1 %v1986_v15  ;;  %v2067_v15 = vld [vmem:[%s2785_s4 + $0x190] ss:$8 sps:$4 sm:$0xff]  }
 0x12a   :  { %1004 = vmatprep.subr.bf16.mxu1 %v1991_v16  ;;  %v2072_v16 = vld [vmem:[%s2785_s4 + $0x1a4] ss:$8 sps:$4 sm:$0xff]  }
 0x12d   :  { %1005 = vmatpush1.bf16.msra.mxu1 %v1989_v17  ;;  %v2070_v17 = vld [vmem:[%s2785_s4 + $0x1a0] ss:$8 sps:$4 sm:$0xff]  }
 0x130   :  { %1007 = vmatmul.mubr.bf16.vlgmr.msra.gmra.mrb[8].mxu1 %v2383_v42 }
 0x183   :  { %v495_v19 = vpop.f32.mrb[0].mxu1  ;;  %v965_v20 = vpop.f32.mrb[0].mxu0 }
 0x184   :  { %v1720_v21 = vmul.f32 -1.442695, %v495_v19  ;;  %v497_v22 = vpop.f32.mrb[1].mxu1  ;;  %v967_v23 = vpop.f32.mrb[1].mxu0 }
 0x185   :  { %v1721_v24 = vmul.f32 -1.442695, %v497_v22  ;;  %v499_v25 = vpop.f32.mrb[2].mxu1  ;;  %v969_v26 = vpop.f32.mrb[2].mxu0 }
 0x186   :  { %2092 = vpow2.f32 %v1720_v21  ;;  %v1724_v27 = vmul.f32 -1.442695, %v499_v25  ;;  %v501_v28 = vpop.f32.mrb[3].mxu1  ;;  %v971_v29 = vpop.f32.mrb[3].mxu0  ;;  %v2076_v21 = vld [vmem:[%s2785_s4 + $0x1c0] ss:$8 sps:$4 sm:$0xff]  }
 0x187   :  { %2094 = vpow2.f32 %v1721_v24  ;;  %v1725_v30 = vmul.f32 -1.442695, %v501_v28  ;;  %v2084_v24 = vld [vmem:[%s2785_s4 + $0x1e4] ss:$8 sps:$4 sm:$0xff]  }
 0x188   :  { %2096 = vpow2.f32 %v1724_v27 }
 0x189   :  { %2098 = vpow2.f32 %v1725_v30 }
 0x190   :  { %v2093_v42 = vpop.eup %2092 }
 0x191   :  { %v2095_v31 = vpop.eup %2094  ;;  %v1041_v32 = vadd.f32 1.0, %v2093_v42 }
 0x192   :  { %v2097_v33 = vpop.eup %2096  ;;  %v1042_v34 = vadd.f32 1.0, %v2095_v31 }
 0x193   :  { %v2099_v35 = vpop.eup %2098  ;;  %2100 = vrcp.f32 %v1041_v32  ;;  %v1045_v36 = vadd.f32 1.0, %v2097_v33 }
 0x194   :  { %2102 = vrcp.f32 %v1042_v34  ;;  %v1046_v37 = vadd.f32 1.0, %v2099_v35 }
 0x195   :  { %2104 = vrcp.f32 %v1045_v36 }
 0x196   :  { %2106 = vrcp.f32 %v1046_v37 }
 0x19d   :  { %v2101_v38 = vpop.eup %2100 }
 0x19e   :  { %v2103_v39 = vpop.eup %2102  ;;  %v1065_v40 = vmul.f32 %v2101_v38, %v495_v19  ;;  %v2073_v19 = vld [vmem:[%s2785_s4 + $0x1b0] ss:$8 sps:$4 sm:$0xff]  }
 0x19f   :  { %v2105_v41 = vpop.eup %2104  ;;  %v1066_v43 = vmul.f32 %v2103_v39, %v497_v22  ;;  %v2081_v22 = vld [vmem:[%s2785_s4 + $0x1d4] ss:$8 sps:$4 sm:$0xff]  }
 0x1a0   :  { %v2107_v44 = vpop.eup %2106  ;;  %v1073_v45 = vmul.f32 %v1065_v40, %v965_v20  ;;  %v1069_v46 = vmul.f32 %v2105_v41, %v499_v25  ;;  %v2078_v20 = vld [vmem:[%s2785_s4 + $0x1c4] ss:$8 sps:$4 sm:$0xff]   ;;  %v2082_v25 = vld [vmem:[%s2785_s4 + $0x1e0] ss:$8 sps:$4 sm:$0xff]  }
 0x1a1   :  { %v1074_v47 = vmul.f32 %v1066_v43, %v967_v23  ;;  %v1070_v48 = vmul.f32 %v2107_v44, %v501_v28  ;;  %v2079_v23 = vld [vmem:[%s2785_s4 + $0x1d0] ss:$8 sps:$4 sm:$0xff]  }
 0x1a2   :  { %v1077_v49 = vmul.f32 %v1069_v46, %v969_v26  ;;  %v2087_v26 = vld [vmem:[%s2785_s4 + $0x1f4] ss:$8 sps:$4 sm:$0xff]  }
 0x1a3   :  { %v1078_v50 = vmul.f32 %v1070_v48, %v971_v29  ;;  %v2085_v29 = vld [vmem:[%s2785_s4 + $0x1f0] ss:$8 sps:$4 sm:$0xff]  }
 0x1a4   :  { %v1085_v51 = vpack.c.bf16 %v1077_v49, %v1073_v45 }
 0x1a5   :  { %v1086_v52 = vpack.c.bf16 %v1078_v50, %v1074_v47 }
 0x1a7   :  { %1505 = vmatprep.mubr.bf16.mxu0 %v1086_v52 }
 0x1a8   :  { %1506 = vmatmul.mubr.bf16.vlgmr.msra.gmra.mrb[4].mxu0 %v1085_v51 }
 0x1a9   :  { %1517 = vmatpush1.bf16.msra.mxu0 %v2040_v53 }
 0x1aa   :  { %1518 = vmatprep.subr.bf16.mxu0 %v2045_v54 }
 0x1ad   :  { %1519 = vmatpush1.bf16.msra.mxu0 %v2043_v55 }
 0x1ae   :  { %1520 = vmatprep.subr.bf16.mxu0 %v2048_v56 }
 0x1b1   :  { %1521 = vmatpush1.bf16.msra.mxu0 %v2046_v57 }
 0x1b2   :  { %1522 = vmatprep.subr.bf16.mxu0 %v2051_v58 }
 0x1b5   :  { %1523 = vmatpush1.bf16.msra.mxu0 %v2049_v59 }
 0x1b6   :  { %1524 = vmatprep.subr.bf16.mxu0 %v2054_v60 }
 0x1b9   :  { %1525 = vmatpush1.bf16.msra.mxu0 %v2052_v61 }
 0x1ba   :  { %1526 = vmatprep.subr.bf16.mxu0 %v2057_v62 }
 0x1bd   :  { %1527 = vmatpush1.bf16.msra.mxu0 %v2055_v63 }
 0x1be   :  { %1528 = vmatprep.subr.bf16.mxu0 %v2060_v0 }
 0x1c1   :  { %1529 = vmatpush1.bf16.msra.mxu0 %v2058_v1 }
 0x1c2   :  { %1530 = vmatprep.subr.bf16.mxu0 %v2063_v6 }
 0x1c3   :  { %v538_v9 = vpop.f32.mrb[4].mxu1 }
 0x1c4   :  { %v540_v10 = vpop.f32.mrb[5].mxu1  ;;  %v1722_v27 = vmul.f32 -1.442695, %v538_v9 }
 0x1c5   :  { %v542_v11 = vpop.f32.mrb[6].mxu1  ;;  %1531 = vmatpush1.bf16.msra.mxu0 %v2061_v7  ;;  %v1723_v28 = vmul.f32 -1.442695, %v540_v10 }
 0x1c6   :  { %v544_v13 = vpop.f32.mrb[7].mxu1  ;;  %1532 = vmatprep.subr.bf16.mxu0 %v2066_v8  ;;  %v1726_v30 = vmul.f32 -1.442695, %v542_v11  ;;  %2108 = vpow2.f32 %v1722_v27 }
 0x1c7   :  { %v1727_v42 = vmul.f32 -1.442695, %v544_v13  ;;  %2110 = vpow2.f32 %v1723_v28 }
 0x1c8   :  { %2112 = vpow2.f32 %v1726_v30 }
 0x1c9   :  { %1533 = vmatpush1.bf16.msra.mxu0 %v2064_v12  ;;  %2114 = vpow2.f32 %v1727_v42 }
 0x1ca   :  { %1534 = vmatprep.subr.bf16.mxu0 %v2069_v14 }
 0x1cd   :  { %1535 = vmatpush1.bf16.msra.mxu0 %v2067_v15 }
 0x1ce   :  { %1536 = vmatprep.subr.bf16.mxu0 %v2072_v16 }
 0x1d0   :  { %v2109_v31 = vpop.eup %2108 }
 0x1d1   :  { %1537 = vmatpush1.bf16.msra.mxu0 %v2070_v17  ;;  %v2111_v32 = vpop.eup %2110  ;;  %v1043_v35 = vadd.f32 1.0, %v2109_v31 }
 0x1d2   :  { %1538 = vmatprep.subr.bf16.mxu0 %v2075_v18  ;;  %v2113_v33 = vpop.eup %2112  ;;  %v1044_v36 = vadd.f32 1.0, %v2111_v32 }
 0x1d3   :  { %v2115_v34 = vpop.eup %2114  ;;  %v1047_v37 = vadd.f32 1.0, %v2113_v33  ;;  %2116 = vrcp.f32 %v1043_v35 }
 0x1d4   :  { %v1048_v38 = vadd.f32 1.0, %v2115_v34  ;;  %2118 = vrcp.f32 %v1044_v36 }
 0x1d5   :  { %1539 = vmatpush1.bf16.msra.mxu0 %v2073_v19  ;;  %2120 = vrcp.f32 %v1047_v37 }
 0x1d6   :  { %1540 = vmatprep.subr.bf16.mxu0 %v2078_v20  ;;  %2122 = vrcp.f32 %v1048_v38 }
 0x1d9   :  { %1541 = vmatpush1.bf16.msra.mxu0 %v2076_v21 }
 0x1da   :  { %1542 = vmatprep.subr.bf16.mxu0 %v2081_v22 }
 0x1dd   :  { %1543 = vmatpush1.bf16.msra.mxu0 %v2079_v23  ;;  %v2117_v39 = vpop.eup %2116 }
 0x1de   :  { %1544 = vmatprep.subr.bf16.mxu0 %v2084_v24  ;;  %v2119_v40 = vpop.eup %2118  ;;  %v1067_v44 = vmul.f32 %v2117_v39, %v538_v9 }
 0x1df   :  { %v2121_v41 = vpop.eup %2120  ;;  %v1068_v45 = vmul.f32 %v2119_v40, %v540_v10 }
 0x1e0   :  { %v2123_v43 = vpop.eup %2122  ;;  %v1071_v47 = vmul.f32 %v2121_v41, %v542_v11 }
 0x1e1   :  { %1545 = vmatpush1.bf16.msra.mxu0 %v2082_v25  ;;  %v1072_v50 = vmul.f32 %v2123_v43, %v544_v13 }
 0x1e2   :  { %1546 = vmatprep.subr.bf16.mxu0 %v2087_v26 }
 0x1e5   :  { %1547 = vmatpush1.bf16.msra.mxu0 %v2085_v29 }
 0x203   :  { %v1008_v46 = vpop.f32.mrb[8].mxu1 }
 0x204   :  { %v1075_v48 = vmul.f32 %v1067_v44, %v1008_v46  ;;  %v1010_v49 = vpop.f32.mrb[9].mxu1 }
 0x205   :  { %v1076_v51 = vmul.f32 %v1068_v45, %v1010_v49  ;;  %v1012_v52 = vpop.f32.mrb[10].mxu1 }
 0x206   :  { %v1079_v53 = vmul.f32 %v1071_v47, %v1012_v52  ;;  %v1014_v54 = vpop.f32.mrb[11].mxu1 }
 0x207   :  { %v1080_v55 = vmul.f32 %v1072_v50, %v1014_v54 }
 0x208   :  { %v1087_v56 = vpack.c.bf16 %v1079_v53, %v1075_v48 }
 0x209   :  { %v1088_v57 = vpack.c.bf16 %v1080_v55, %v1076_v51 }
 0x20b   :  { %1548 = vmatprep.mubr.bf16.mxu0 %v1088_v57 }
 0x20c   :  { %1549 = vmatmul.mubr.bf16.vlgmr.msra.gmra.mrb[4].mxu0 %v1087_v56 }
 0x2df   :  { %v1550_v58 = vpop.f32.mrb[4].mxu0 }
 0x2e0   :  { %v1559_v59 = vadd.f32 %v1550_v58, %v2160_v2  ;;  %v1552_v60 = vpop.f32.mrb[5].mxu0 }
 0x2e1   :  { %v1560_v61 = vadd.f32 %v1552_v60, %v2162_v3  ;;  %v1554_v62 = vpop.f32.mrb[6].mxu0 }
 0x2e2   :  { %v1561_v63 = vadd.f32 %v1554_v62, %v2164_v4  ;;  %v1556_v0 = vpop.f32.mrb[7].mxu0 }
 0x2e3   :  { %v1794_v1 = vpack.c.bf16 %v1560_v61, %v1559_v59  ;;  %v1562_v6 = vadd.f32 %v1556_v0, %v2166_v5 }
 0x2e5   :  { %1586 = vst [vmem:[%s2786_s5] sm:$0xff] %v1794_v1  ;;  %v1795_v7 = vpack.c.bf16 %v1562_v6, %v1561_v63 }
 0x2e7   :  { %1587 = vst [vmem:[%s2786_s5 + $0x8] sm:$0xff] %v1795_v7 }

</bundles_post_ra>
